<compile_context>
chip_gen: v7x
topology: tpu7x:2x2x1
jax: 0.10.0
libtpu: 0.0.40
codegen_flags: <defaults>
</compile_context>

<pallas_src>
import jax
import jax.numpy as jnp
from jax.experimental import pallas as pl
from jax.experimental.pallas import tpu as pltpu

NUM_ENC_XYZ = 6
NUM_ENC_DIR = 4
DIM_XYZ = 3 + 2 * 3 * NUM_ENC_XYZ      # 39
DIM_DIR = 3 + 2 * 3 * NUM_ENC_DIR      # 27
HIDDEN = 128
HALF = HIDDEN // 2                     # 64
IN_DIMS = DIM_XYZ + DIM_DIR            # 66


def _relu(t):
    return jnp.maximum(t, 0.0)


def nerf_kernel(x_ref, w_in, b_in, w_hid, b_hid, w_fa, b_fa,
                w_df, b_d, w_o, b_o, out_ref):
    def mm(a, w):
        # bf16 operands on the MXU, f32 accumulation.
        return jnp.dot(a, w, preferred_element_type=jnp.float32)

    x = x_ref[...].astype(jnp.bfloat16)                     # (tm, 66)

    # Fused input matmul: cols 0:128 = layer1(xyz), cols 128:192 = view @ Wd_view.
    t_in = mm(x, w_in[...]) + b_in[...]                     # (tm, 192) f32
    h = _relu(t_in[:, :HIDDEN]).astype(jnp.bfloat16)        # layer1 output
    view_dir = t_in[:, HIDDEN:]                             # (tm, 64) f32, reused below

    for i in range(3):                                      # layers_xyz[0..2]
        h = _relu(mm(h, w_hid[i]) + b_hid[i]).astype(jnp.bfloat16)

    # Fused fc_feat + fc_alpha: cols 0:128 -> relu -> feat; col 131 -> alpha.
    t_fa = mm(h, w_fa[...]) + b_fa[...]                     # (tm, 132) f32
    feat = _relu(t_fa[:, :HIDDEN]).astype(jnp.bfloat16)
    alpha4 = t_fa[:, HIDDEN:]                               # (tm, 4): cols 0:3 == 0

    # layers_dir[0] on cat(feat, view): feat part here + view part from t_in.
    hd = _relu(mm(feat, w_df[...]) + view_dir + b_d[...]).astype(jnp.bfloat16)

    # Fused output head: cols 0:3 = fc_rgb(hd), col 3 = alpha.
    out_ref[...] = mm(hd, w_o[...]) + b_o[...] + alpha4     # single (tm, 4) store


def _choose_tile(n, tile_m):
    # Amortise the ~0.35 us/step grid overhead with big tiles, but keep >= 4
    # grid steps for small N so v7x's 2 TensorCores both get work.
    t = min(tile_m, max(256, -(-n // 4)))
    return ((t + 255) // 256) * 256


def dfa_nerf_forward(x, kparams, *, tile_m=4096,
                     vmem_limit_bytes=48 * 1024 * 1024):
    """x: (N, 66) float32; kparams: list of 10 packed weight/bias arrays."""
    N = x.shape[0]
    assert x.shape[1] == IN_DIMS, "kernel hard-codes the default NeRF config"

    tile = _choose_tile(N, tile_m)
    grid = (pl.cdiv(N, tile),)                              # ragged last block OK

    def full_spec(a):
        nd = a.ndim
        return pl.BlockSpec(a.shape, lambda i, _nd=nd: (0,) * _nd)

    weight_specs = [full_spec(p) for p in kparams]

    return pl.pallas_call(
        nerf_kernel,
        out_shape=jax.ShapeDtypeStruct((N, 4), jnp.float32),
        grid_spec=pltpu.PrefetchScalarGridSpec(
            num_scalar_prefetch=0,
            grid=grid,
            in_specs=[pl.BlockSpec((tile, IN_DIMS), lambda i: (i, 0))]
                     + weight_specs,
            out_specs=pl.BlockSpec((tile, 4), lambda i: (i, 0)),
        ),
        compiler_params=pltpu.CompilerParams(
            # "parallel" lets the runtime shard the row grid across v7x's 2 TCs.
            dimension_semantics=("parallel",),
            vmem_limit_bytes=vmem_limit_bytes),
    )(x, *kparams)


def init_torch_params(key):
    """Deterministic synthetic parameters in PyTorch nn.Linear layout:
    weight (out, in), bias (out,)."""
    ks = jax.random.split(key, 8)

    def lin(k, fan_out, fan_in):
        kw, kb = jax.random.split(k)
        w = jax.random.normal(kw, (fan_out, fan_in), jnp.float32) * 0.1
        b = jax.random.normal(kb, (fan_out,), jnp.float32) * 0.1
        return w, b

    return {
        "layer1": lin(ks[0], HIDDEN, DIM_XYZ),
        "layers_xyz0": lin(ks[1], HIDDEN, HIDDEN),
        "layers_xyz1": lin(ks[2], HIDDEN, HIDDEN),
        "layers_xyz2": lin(ks[3], HIDDEN, HIDDEN),
        "fc_alpha": lin(ks[4], 1, HIDDEN),
        "fc_feat": lin(ks[5], HIDDEN, HIDDEN),
        "layers_dir0": lin(ks[6], HALF, HIDDEN + DIM_DIR),
        "fc_rgb": lin(ks[7], 3, HALF),
    }


def pack_kernel_params(p):
    """Pack / fuse torch-layout params into the kernel's 10 arrays."""
    f32, bf16 = jnp.float32, jnp.bfloat16

    w1, b1 = p["layer1"]                       # (128, 39), (128,)
    hid = [p[f"layers_xyz{i}"] for i in range(3)]
    wa, ba = p["fc_alpha"]                     # (1, 128), (1,)
    wf, bfeat = p["fc_feat"]                   # (128, 128), (128,)
    wd, bd = p["layers_dir0"]                  # (64, 155), (64,)
    wr, br = p["fc_rgb"]                       # (3, 64), (3,)

    # Config sanity (kernel is specialised to the default architecture).
    assert w1.shape == (HIDDEN, DIM_XYZ) and wd.shape == (HALF, HIDDEN + DIM_DIR)
    assert wa.shape == (1, HIDDEN) and wr.shape == (3, HALF)

    # 1) fused input weight (66, 192): xyz->layer1 | view->dir(view part).
    w_in = jnp.zeros((IN_DIMS, HIDDEN + HALF), f32)
    w_in = w_in.at[:DIM_XYZ, :HIDDEN].set(w1.T)
    w_in = w_in.at[DIM_XYZ:, HIDDEN:].set(wd[:, HIDDEN:].T)
    b_in = jnp.zeros((1, HIDDEN + HALF), f32).at[0, :HIDDEN].set(b1)

    # 2) hidden stack (3, 128, 128) + biases (3, 1, 128).
    w_hid = jnp.stack([w.T for (w, _) in hid]).astype(bf16)
    b_hid = jnp.stack([b.reshape(1, -1) for (_, b) in hid]).astype(f32)

    # 3) fused fc_feat + fc_alpha (128, 132): cols 0:128 feat, col 131 alpha.
    w_fa = jnp.zeros((HIDDEN, HIDDEN + 4), f32)
    w_fa = w_fa.at[:, :HIDDEN].set(wf.T).at[:, HIDDEN + 3:].set(wa.T)
    b_fa = jnp.zeros((1, HIDDEN + 4), f32)
    b_fa = b_fa.at[0, :HIDDEN].set(bfeat).at[0, HIDDEN + 3].set(ba[0])

    # 4) dir layer (feat part) + fused rgb head.
    w_df = wd[:, :HIDDEN].T.astype(bf16)                        # (128, 64)
    b_d = bd.reshape(1, -1).astype(f32)                         # (1, 64)
    w_o = jnp.zeros((HALF, 4), f32).at[:, :3].set(wr.T).astype(bf16)
    b_o = jnp.zeros((1, 4), f32).at[0, :3].set(br)

    return [w_in.astype(bf16), b_in, w_hid, b_hid,
            w_fa.astype(bf16), b_fa, w_df, b_d, w_o, b_o]


def reference(x, p):
    """Faithful translation of DFAFlexibleNeRFModel.forward (DFA wrappers are
    identity in forward), using the same bf16-matmul / f32-accumulate policy."""
    def lin(a, wb):
        w, b = wb
        return jnp.dot(a.astype(jnp.bfloat16), w.T.astype(jnp.bfloat16),
                       preferred_element_type=jnp.float32) + b

    xb = x.astype(jnp.bfloat16)
    xyz, view = xb[:, :DIM_XYZ], xb[:, DIM_XYZ:]
    h = _relu(lin(xyz, p["layer1"]))
    for name in ("layers_xyz0", "layers_xyz1", "layers_xyz2"):
        h = _relu(lin(h, p[name]))
    alpha = lin(h, p["fc_alpha"])
    feat = _relu(lin(h, p["fc_feat"]))
    hd = _relu(lin(jnp.concatenate([feat, view.astype(jnp.float32)], axis=-1),
                   p["layers_dir0"]))
    rgb = lin(hd, p["fc_rgb"])
    return jnp.concatenate([rgb, alpha], axis=-1)


if __name__ == "__main__":
    key = jax.random.PRNGKey(0)
    k_x, k_p = jax.random.split(key)

    N = 2048                                 # small flattened-ray-sample batch
    x = jax.random.normal(k_x, (N, IN_DIMS), jnp.float32)
    tparams = init_torch_params(k_p)
    kparams = pack_kernel_params(tparams)

    # Adaptive tile -> 512 rows/step here (4 grid steps); 4096 at large N.
    out = dfa_nerf_forward(x, kparams)
    out = jax.block_until_ready(out)

    ref = reference(x, tparams)
    assert out.shape == (N, 4)
    assert jnp.allclose(out, ref, atol=2e-2, rtol=2e-2), \
        float(jnp.max(jnp.abs(out - ref)))

    print("KERNEL_OK")
</pallas_src>

<mosaic_0001>
module attributes {stable_mosaic.version = 11 : i64} {
  func.func @nerf_kernel(%arg0: i32, %arg1: memref<512x66xf32, #tpu.memory_space<vmem>>, %arg2: memref<66x192xbf16, #tpu.memory_space<vmem>>, %arg3: memref<1x192xf32, #tpu.memory_space<vmem>>, %arg4: memref<3x128x128xbf16, #tpu.memory_space<vmem>>, %arg5: memref<3x1x128xf32, #tpu.memory_space<vmem>>, %arg6: memref<128x132xbf16, #tpu.memory_space<vmem>>, %arg7: memref<1x132xf32, #tpu.memory_space<vmem>>, %arg8: memref<128x64xbf16, #tpu.memory_space<vmem>>, %arg9: memref<1x64xf32, #tpu.memory_space<vmem>>, %arg10: memref<64x4xbf16, #tpu.memory_space<vmem>>, %arg11: memref<1x4xf32, #tpu.memory_space<vmem>>, %arg12: memref<512x4xf32, #tpu.memory_space<vmem>>) attributes {dimension_semantics = [#tpu.dimension_semantics<parallel>], iteration_bounds = array<i64: 4>, scalar_prefetch = 0 : i64, scratch_operands = 0 : i64, tpu.core_type = #tpu.core_type<tc>, window_params = [{transform_indices = @transform_0, window_bounds = array<i64: 512, 66>}, {pipeline_mode = #tpu.pipeline_mode<synchronous>, transform_indices = @transform_1, window_bounds = array<i64: 66, 192>}, {pipeline_mode = #tpu.pipeline_mode<synchronous>, transform_indices = @transform_2, window_bounds = array<i64: 1, 192>}, {pipeline_mode = #tpu.pipeline_mode<synchronous>, transform_indices = @transform_3, window_bounds = array<i64: 3, 128, 128>}, {pipeline_mode = #tpu.pipeline_mode<synchronous>, transform_indices = @transform_4, window_bounds = array<i64: 3, 1, 128>}, {pipeline_mode = #tpu.pipeline_mode<synchronous>, transform_indices = @transform_5, window_bounds = array<i64: 128, 132>}, {pipeline_mode = #tpu.pipeline_mode<synchronous>, transform_indices = @transform_6, window_bounds = array<i64: 1, 132>}, {pipeline_mode = #tpu.pipeline_mode<synchronous>, transform_indices = @transform_7, window_bounds = array<i64: 128, 64>}, {pipeline_mode = #tpu.pipeline_mode<synchronous>, transform_indices = @transform_8, window_bounds = array<i64: 1, 64>}, {pipeline_mode = #tpu.pipeline_mode<synchronous>, transform_indices = @transform_9, window_bounds = array<i64: 64, 4>}, {pipeline_mode = #tpu.pipeline_mode<synchronous>, transform_indices = @transform_10, window_bounds = array<i64: 1, 4>}, {transform_indices = @transform_11, window_bounds = array<i64: 512, 4>}]} {
    %c0 = arith.constant 0 : index
    %c0_0 = arith.constant 0 : index
    %0 = vector.load %arg1[%c0, %c0_0] : memref<512x66xf32, #tpu.memory_space<vmem>>, vector<512x66xf32>
    %1 = arith.truncf %0 : vector<512x66xf32> to vector<512x66xbf16>
    %c0_1 = arith.constant 0 : index
    %c0_2 = arith.constant 0 : index
    %2 = vector.load %arg2[%c0_1, %c0_2] : memref<66x192xbf16, #tpu.memory_space<vmem>>, vector<66x192xbf16>
    %cst = arith.constant dense<0.000000e+00> : vector<512x192xf32>
    %3 = tpu.matmul %1, %2, %cst {dimension_numbers = #tpu.dot_dimension_numbers<[1], [0], [0], [1], [0, 0, 1, 1], [], []>} : vector<512x66xbf16>, vector<66x192xbf16>, vector<512x192xf32> -> vector<512x192xf32>
    %c0_3 = arith.constant 0 : index
    %c0_4 = arith.constant 0 : index
    %4 = vector.load %arg3[%c0_3, %c0_4] : memref<1x192xf32, #tpu.memory_space<vmem>>, vector<1x192xf32>
    %5 = vector.broadcast %4 : vector<1x192xf32> to vector<512x192xf32>
    %6 = arith.addf %3, %5 : vector<512x192xf32>
    %7 = vector.extract_strided_slice %6 {offsets = [0, 0], sizes = [512, 128], strides = [1, 1]} : vector<512x192xf32> to vector<512x128xf32>
    %cst_5 = arith.constant 0.000000e+00 : f32
    %8 = vector.broadcast %cst_5 : f32 to vector<512x128xf32>
    %9 = arith.maximumf %7, %8 : vector<512x128xf32>
    %10 = arith.truncf %9 : vector<512x128xf32> to vector<512x128xbf16>
    %11 = vector.extract_strided_slice %6 {offsets = [0, 128], sizes = [512, 64], strides = [1, 1]} : vector<512x192xf32> to vector<512x64xf32>
    %c0_6 = arith.constant 0 : index
    %c0_7 = arith.constant 0 : index
    %c0_8 = arith.constant 0 : index
    %12 = vector.load %arg4[%c0_6, %c0_7, %c0_8] : memref<3x128x128xbf16, #tpu.memory_space<vmem>>, vector<1x128x128xbf16>
    %13 = vector.shape_cast %12 : vector<1x128x128xbf16> to vector<128x128xbf16>
    %cst_9 = arith.constant dense<0.000000e+00> : vector<512x128xf32>
    %14 = tpu.matmul %10, %13, %cst_9 {dimension_numbers = #tpu.dot_dimension_numbers<[1], [0], [0], [1], [0, 0, 1, 1], [], []>} : vector<512x128xbf16>, vector<128x128xbf16>, vector<512x128xf32> -> vector<512x128xf32>
    %c0_10 = arith.constant 0 : index
    %c0_11 = arith.constant 0 : index
    %c0_12 = arith.constant 0 : index
    %15 = vector.load %arg5[%c0_10, %c0_11, %c0_12] : memref<3x1x128xf32, #tpu.memory_space<vmem>>, vector<1x1x128xf32>
    %16 = vector.shape_cast %15 : vector<1x1x128xf32> to vector<1x128xf32>
    %17 = vector.broadcast %16 : vector<1x128xf32> to vector<512x128xf32>
    %18 = arith.addf %14, %17 : vector<512x128xf32>
    %cst_13 = arith.constant 0.000000e+00 : f32
    %19 = vector.broadcast %cst_13 : f32 to vector<512x128xf32>
    %20 = arith.maximumf %18, %19 : vector<512x128xf32>
    %21 = arith.truncf %20 : vector<512x128xf32> to vector<512x128xbf16>
    %c1 = arith.constant 1 : index
    %c0_14 = arith.constant 0 : index
    %c0_15 = arith.constant 0 : index
    %22 = vector.load %arg4[%c1, %c0_14, %c0_15] : memref<3x128x128xbf16, #tpu.memory_space<vmem>>, vector<1x128x128xbf16>
    %23 = vector.shape_cast %22 : vector<1x128x128xbf16> to vector<128x128xbf16>
    %cst_16 = arith.constant dense<0.000000e+00> : vector<512x128xf32>
    %24 = tpu.matmul %21, %23, %cst_16 {dimension_numbers = #tpu.dot_dimension_numbers<[1], [0], [0], [1], [0, 0, 1, 1], [], []>} : vector<512x128xbf16>, vector<128x128xbf16>, vector<512x128xf32> -> vector<512x128xf32>
    %c1_17 = arith.constant 1 : index
    %c0_18 = arith.constant 0 : index
    %c0_19 = arith.constant 0 : index
    %25 = vector.load %arg5[%c1_17, %c0_18, %c0_19] : memref<3x1x128xf32, #tpu.memory_space<vmem>>, vector<1x1x128xf32>
    %26 = vector.shape_cast %25 : vector<1x1x128xf32> to vector<1x128xf32>
    %27 = vector.broadcast %26 : vector<1x128xf32> to vector<512x128xf32>
    %28 = arith.addf %24, %27 : vector<512x128xf32>
    %cst_20 = arith.constant 0.000000e+00 : f32
    %29 = vector.broadcast %cst_20 : f32 to vector<512x128xf32>
    %30 = arith.maximumf %28, %29 : vector<512x128xf32>
    %31 = arith.truncf %30 : vector<512x128xf32> to vector<512x128xbf16>
    %c2 = arith.constant 2 : index
    %c0_21 = arith.constant 0 : index
    %c0_22 = arith.constant 0 : index
    %32 = vector.load %arg4[%c2, %c0_21, %c0_22] : memref<3x128x128xbf16, #tpu.memory_space<vmem>>, vector<1x128x128xbf16>
    %33 = vector.shape_cast %32 : vector<1x128x128xbf16> to vector<128x128xbf16>
    %cst_23 = arith.constant dense<0.000000e+00> : vector<512x128xf32>
    %34 = tpu.matmul %31, %33, %cst_23 {dimension_numbers = #tpu.dot_dimension_numbers<[1], [0], [0], [1], [0, 0, 1, 1], [], []>} : vector<512x128xbf16>, vector<128x128xbf16>, vector<512x128xf32> -> vector<512x128xf32>
    %c2_24 = arith.constant 2 : index
    %c0_25 = arith.constant 0 : index
    %c0_26 = arith.constant 0 : index
    %35 = vector.load %arg5[%c2_24, %c0_25, %c0_26] : memref<3x1x128xf32, #tpu.memory_space<vmem>>, vector<1x1x128xf32>
    %36 = vector.shape_cast %35 : vector<1x1x128xf32> to vector<1x128xf32>
    %37 = vector.broadcast %36 : vector<1x128xf32> to vector<512x128xf32>
    %38 = arith.addf %34, %37 : vector<512x128xf32>
    %cst_27 = arith.constant 0.000000e+00 : f32
    %39 = vector.broadcast %cst_27 : f32 to vector<512x128xf32>
    %40 = arith.maximumf %38, %39 : vector<512x128xf32>
    %41 = arith.truncf %40 : vector<512x128xf32> to vector<512x128xbf16>
    %c0_28 = arith.constant 0 : index
    %c0_29 = arith.constant 0 : index
    %42 = vector.load %arg6[%c0_28, %c0_29] : memref<128x132xbf16, #tpu.memory_space<vmem>>, vector<128x132xbf16>
    %cst_30 = arith.constant dense<0.000000e+00> : vector<512x132xf32>
    %43 = tpu.matmul %41, %42, %cst_30 {dimension_numbers = #tpu.dot_dimension_numbers<[1], [0], [0], [1], [0, 0, 1, 1], [], []>} : vector<512x128xbf16>, vector<128x132xbf16>, vector<512x132xf32> -> vector<512x132xf32>
    %c0_31 = arith.constant 0 : index
    %c0_32 = arith.constant 0 : index
    %44 = vector.load %arg7[%c0_31, %c0_32] : memref<1x132xf32, #tpu.memory_space<vmem>>, vector<1x132xf32>
    %45 = vector.broadcast %44 : vector<1x132xf32> to vector<512x132xf32>
    %46 = arith.addf %43, %45 : vector<512x132xf32>
    %47 = vector.extract_strided_slice %46 {offsets = [0, 0], sizes = [512, 128], strides = [1, 1]} : vector<512x132xf32> to vector<512x128xf32>
    %cst_33 = arith.constant 0.000000e+00 : f32
    %48 = vector.broadcast %cst_33 : f32 to vector<512x128xf32>
    %49 = arith.maximumf %47, %48 : vector<512x128xf32>
    %50 = arith.truncf %49 : vector<512x128xf32> to vector<512x128xbf16>
    %51 = vector.extract_strided_slice %46 {offsets = [0, 128], sizes = [512, 4], strides = [1, 1]} : vector<512x132xf32> to vector<512x4xf32>
    %c0_34 = arith.constant 0 : index
    %c0_35 = arith.constant 0 : index
    %52 = vector.load %arg8[%c0_34, %c0_35] : memref<128x64xbf16, #tpu.memory_space<vmem>>, vector<128x64xbf16>
    %cst_36 = arith.constant dense<0.000000e+00> : vector<512x64xf32>
    %53 = tpu.matmul %50, %52, %cst_36 {dimension_numbers = #tpu.dot_dimension_numbers<[1], [0], [0], [1], [0, 0, 1, 1], [], []>} : vector<512x128xbf16>, vector<128x64xbf16>, vector<512x64xf32> -> vector<512x64xf32>
    %54 = arith.addf %53, %11 : vector<512x64xf32>
    %c0_37 = arith.constant 0 : index
    %c0_38 = arith.constant 0 : index
    %55 = vector.load %arg9[%c0_37, %c0_38] : memref<1x64xf32, #tpu.memory_space<vmem>>, vector<1x64xf32>
    %56 = vector.broadcast %55 : vector<1x64xf32> to vector<512x64xf32>
    %57 = arith.addf %54, %56 : vector<512x64xf32>
    %cst_39 = arith.constant 0.000000e+00 : f32
    %58 = vector.broadcast %cst_39 : f32 to vector<512x64xf32>
    %59 = arith.maximumf %57, %58 : vector<512x64xf32>
    %60 = arith.truncf %59 : vector<512x64xf32> to vector<512x64xbf16>
    %c0_40 = arith.constant 0 : index
    %c0_41 = arith.constant 0 : index
    %61 = vector.load %arg10[%c0_40, %c0_41] : memref<64x4xbf16, #tpu.memory_space<vmem>>, vector<64x4xbf16>
    %cst_42 = arith.constant dense<0.000000e+00> : vector<512x4xf32>
    %62 = tpu.matmul %60, %61, %cst_42 {dimension_numbers = #tpu.dot_dimension_numbers<[1], [0], [0], [1], [0, 0, 1, 1], [], []>} : vector<512x64xbf16>, vector<64x4xbf16>, vector<512x4xf32> -> vector<512x4xf32>
    %c0_43 = arith.constant 0 : index
    %c0_44 = arith.constant 0 : index
    %63 = vector.load %arg11[%c0_43, %c0_44] : memref<1x4xf32, #tpu.memory_space<vmem>>, vector<1x4xf32>
    %64 = vector.broadcast %63 : vector<1x4xf32> to vector<512x4xf32>
    %65 = arith.addf %62, %64 : vector<512x4xf32>
    %66 = arith.addf %65, %51 : vector<512x4xf32>
    %c0_45 = arith.constant 0 : index
    %c0_46 = arith.constant 0 : index
    %67 = vector.load %arg12[%c0_45, %c0_46] : memref<512x4xf32, #tpu.memory_space<vmem>>, vector<512x4xf32>
    tpu.vector_store %arg12[%c0_45, %c0_46], %66 {strides = array<i32>} : memref<512x4xf32, #tpu.memory_space<vmem>>, vector<512x4xf32>,
    return
  }
  func.func @transform_0(%arg0: i32) -> (i32, i32) {
    %c0_i32 = arith.constant 0 : i32
    %c0_i32_0 = arith.constant 0 : i32
    return %arg0, %c0_i32 : i32, i32
  }
  func.func @transform_1(%arg0: i32) -> (i32, i32) {
    %c0_i32 = arith.constant 0 : i32
    %c0_i32_0 = arith.constant 0 : i32
    %c0_i32_1 = arith.constant 0 : i32
    return %c0_i32, %c0_i32_0 : i32, i32
  }
  func.func @transform_2(%arg0: i32) -> (i32, i32) {
    %c0_i32 = arith.constant 0 : i32
    %c0_i32_0 = arith.constant 0 : i32
    %c0_i32_1 = arith.constant 0 : i32
    return %c0_i32, %c0_i32_0 : i32, i32
  }
  func.func @transform_3(%arg0: i32) -> (i32, i32, i32) {
    %c0_i32 = arith.constant 0 : i32
    %c0_i32_0 = arith.constant 0 : i32
    %c0_i32_1 = arith.constant 0 : i32
    %c0_i32_2 = arith.constant 0 : i32
    return %c0_i32, %c0_i32_0, %c0_i32_1 : i32, i32, i32
  }
  func.func @transform_4(%arg0: i32) -> (i32, i32, i32) {
    %c0_i32 = arith.constant 0 : i32
    %c0_i32_0 = arith.constant 0 : i32
    %c0_i32_1 = arith.constant 0 : i32
    %c0_i32_2 = arith.constant 0 : i32
    return %c0_i32, %c0_i32_0, %c0_i32_1 : i32, i32, i32
  }
  func.func @transform_5(%arg0: i32) -> (i32, i32) {
    %c0_i32 = arith.constant 0 : i32
    %c0_i32_0 = arith.constant 0 : i32
    %c0_i32_1 = arith.constant 0 : i32
    return %c0_i32, %c0_i32_0 : i32, i32
  }
  func.func @transform_6(%arg0: i32) -> (i32, i32) {
    %c0_i32 = arith.constant 0 : i32
    %c0_i32_0 = arith.constant 0 : i32
    %c0_i32_1 = arith.constant 0 : i32
    return %c0_i32, %c0_i32_0 : i32, i32
  }
  func.func @transform_7(%arg0: i32) -> (i32, i32) {
    %c0_i32 = arith.constant 0 : i32
    %c0_i32_0 = arith.constant 0 : i32
    %c0_i32_1 = arith.constant 0 : i32
    return %c0_i32, %c0_i32_0 : i32, i32
  }
  func.func @transform_8(%arg0: i32) -> (i32, i32) {
    %c0_i32 = arith.constant 0 : i32
    %c0_i32_0 = arith.constant 0 : i32
    %c0_i32_1 = arith.constant 0 : i32
    return %c0_i32, %c0_i32_0 : i32, i32
  }
  func.func @transform_9(%arg0: i32) -> (i32, i32) {
    %c0_i32 = arith.constant 0 : i32
    %c0_i32_0 = arith.constant 0 : i32
    %c0_i32_1 = arith.constant 0 : i32
    return %c0_i32, %c0_i32_0 : i32, i32
  }
  func.func @transform_10(%arg0: i32) -> (i32, i32) {
    %c0_i32 = arith.constant 0 : i32
    %c0_i32_0 = arith.constant 0 : i32
    %c0_i32_1 = arith.constant 0 : i32
    return %c0_i32, %c0_i32_0 : i32, i32
  }
  func.func @transform_11(%arg0: i32) -> (i32, i32) {
    %c0_i32 = arith.constant 0 : i32
    %c0_i32_0 = arith.constant 0 : i32
    return %arg0, %c0_i32 : i32, i32
  }
}

</mosaic_0001>

<bundles_post_ra>
// kernel: tpu_custom_call.1
= control target key start
LH: loop header
LB: loop body
LE: loop exit
PB: predicated region body
PF: predicated region fallthrough
CT: control target
= control target key end

     0   :  { %s5094_s17 = smov 0   ;;  %s6669_s0 = inlined_call_operand.vmem [shape: f32[2048,66], index: 0, kind: input, shape index: {}]   ;;  %s6670_s1 = inlined_call_operand.vmem [shape: bf16[66,192], index: 1, kind: input, shape index: {}]   ;;  %s6671_s2 = inlined_call_operand.vmem [shape: f32[1,192], index: 2, kind: input, shape index: {}]   ;;  %s6672_s3 = inlined_call_operand.vmem [shape: bf16[3,128,128], index: 3, kind: input, shape index: {}]   ;;  %s6673_s4 = inlined_call_operand.vmem [shape: f32[3,1,128], index: 4, kind: input, shape index: {}]   ;;  %s6674_s5 = inlined_call_operand.vmem [shape: bf16[128,132], index: 5, kind: input, shape index: {}]   ;;  %s6675_s6 = inlined_call_operand.vmem [shape: f32[1,132], index: 6, kind: input, shape index: {}]   ;;  %s6676_s7 = inlined_call_operand.vmem [shape: bf16[128,64], index: 7, kind: input, shape index: {}]   ;;  %s6677_s8 = inlined_call_operand.vmem [shape: f32[1,64], index: 8, kind: input, shape index: {}]   ;;  %s6678_s9 = inlined_call_operand.vmem [shape: bf16[64,4], index: 9, kind: input, shape index: {}]   ;;  %s6679_s10 = inlined_call_operand.vmem [shape: f32[1,4], index: 10, kind: input, shape index: {}]   ;;  %s6680_s11 = inlined_call_operand.vmem [shape: f32[2048,4], index: 11, kind: output, shape index: {}]  }
   0x1 LB: > { %s4165_s18 = sadd.s32 4294967295, %s5031_s17   ;;  %p4169_p0 = scmp.ge.s32.totalorder %s5031_s17, 1  ;;  %s5031_s17 = sphi %s5094_s17, %s21_s17  }
   0x2   : > { %p338_p1 = scmp.lt.s32.totalorder %s5031_s17, 5 }
   0x4   : > { %p339_p2 = pnand %p4169_p0, %p338_p1 }
   0x6   : > { %342 = sbr.rel (%p339_p2) target bundleno = 1840 (0x730), region = 64 }
   0xd   : > { %v4949_v0 = vld [vmem:[%s6670_s1 + $0x4] ss:$8 sps:$4 sm:$0xff]   ;;  %v4951_v1 = vld [vmem:[%s6670_s1] ss:$8 sps:$4 sm:$0xff]   ;;  %v6682_v2 = vmov 0   ;;  %s4170_s23 = sshll.u32 %s4165_s18, 6 }
   0xe   : > { %689 = vmatprep.mubr.bf16.mxu0 %v6682_v2  ;;  %929 = vmatprep.mubr.bf16.mxu1 %v6682_v2  ;;  %v4952_v3 = vld [vmem:[%s6670_s1 + $0x14] ss:$8 sps:$4 sm:$0xff]   ;;  %p379_p3 = scmp.lt.s32.totalorder %s4170_s23, 255  ;;  %v4954_v4 = vld [vmem:[%s6670_s1 + $0x10] ss:$8 sps:$4 sm:$0xff]   ;;  %vm650_vm0 = vcmask 1040384  }
   0xf   : > { %657 = vmatprep.subr.bf16.mxu0 %v4949_v0  ;;  %4930 = vmatprep.subr.bf16.mxu1 %v4949_v0  ;;  %v4955_v5 = vld [vmem:[%s6670_s1 + $0x24] ss:$8 sps:$4 sm:$0xff]   ;;  %v4957_v6 = vld [vmem:[%s6670_s1 + $0x20] ss:$8 sps:$4 sm:$0xff]   ;;  %v4958_v7 = vld [vmem:[%s6670_s1 + $0x34] ss:$8 sps:$4 sm:$0xff]  }
  0x10   : > { %658 = vmatpush1.bf16.msra.mxu0 %v4951_v1  ;;  %4935 = vmatpush1.bf16.msra.mxu1 %v4951_v1  ;;  %s6851_s23 = smov (!%p379_p3, %s4170_s23), 255  ;;  %v495_v8 = vld [vmem:[%s6670_s1 + $0x40] sm:$0x11]  ;;  %v4960_v9 = vld [vmem:[%s6670_s1 + $0x30] ss:$8 sps:$4 sm:$0xff]   ;;  %vm553_vm1 = vcmask 539648  }
  0x11   : > { %659 = vmatprep.subr.bf16.mxu0 %v4952_v3  ;;  %4931 = vmatprep.subr.bf16.mxu1 %v4952_v3  ;;  %s4171_s18 = sshll.u32 %s6851_s23, 3  ;;  %v4183_v10 = vcombine.high %v495_v8, %v495_v8  ;;  %v4182_v11 = vcombine.low %v495_v8, %v495_v8  ;;  %v4963_v31 = vld [vmem:[%s6672_s3] sm:$0xff]   ;;  %v4964_v38 = vld [vmem:[%s6672_s3 + $0x8] sm:$0xff]   ;;  %v4965_v45 = vld [vmem:[%s6672_s3 + $0x10] sm:$0xff]   ;;  %vm3594_vm2 = vcmask 523264   ;;  %vm4044_vm3 = vcmask 31744  }
  0x12   : > { %s5139_s24 = scalar_lea.vmem %s6669_s0, %s4171_s18  ;;  %v4966_v54 = vld [vmem:[%s6672_s3 + $0x18] sm:$0xff]   ;;  %v4967_v57 = vld [vmem:[%s6672_s3 + $0x20] sm:$0xff]   ;;  %v4968_v60 = vld [vmem:[%s6672_s3 + $0x28] sm:$0xff]   ;;  %s6347_s20 = scalar_lea.vmem %s6680_s11, %s4171_s18 }
  0x13   : > { %v391_v12 = vld [vmem:[%s5139_s24] sm:$0xff]  ;;  %v392_v13 = vld [vmem:[%s5139_s24 + $0x8] sm:$0xff]  ;;  %v652_v14 = vsel %vm650_vm0, %v4182_v11, 0  ;;  %v393_v16 = vld [vmem:[%s5139_s24 + $0x10] sm:$0xff] }
  0x14   : > { %660 = vmatpush1.bf16.msra.mxu0 %v4954_v4  ;;  %4936 = vmatpush1.bf16.msra.mxu1 %v4954_v4  ;;  %v455_v15 = vpack.c.bf16 %v392_v13, %v391_v12  ;;  %v394_v17 = vld [vmem:[%s5139_s24 + $0x18] sm:$0xff]  ;;  %v395_v19 = vld [vmem:[%s5139_s24 + $0x20] sm:$0xff]  ;;  %v396_v20 = vld [vmem:[%s5139_s24 + $0x28] sm:$0xff] }
  0x15   : > { %661 = vmatprep.subr.bf16.mxu0 %v4955_v5  ;;  %4932 = vmatprep.subr.bf16.mxu1 %v4955_v5  ;;  %v456_v18 = vpack.c.bf16 %v394_v17, %v393_v16  ;;  %v457_v21 = vpack.c.bf16 %v396_v20, %v395_v19  ;;  %v397_v22 = vld [vmem:[%s5139_s24 + $0x30] sm:$0xff]  ;;  %v398_v23 = vld [vmem:[%s5139_s24 + $0x38] sm:$0xff]  ;;  %v399_v25 = vld [vmem:[%s5139_s24 + $0x40] sm:$0xff] }
  0x16   : > { %v458_v24 = vpack.c.bf16 %v398_v23, %v397_v22  ;;  %v400_v26 = vld [vmem:[%s5139_s24 + $0x48] sm:$0xff]  ;;  %v439_v28 = vld [vmem:[%s5139_s24 + $0x180] sm:$0xff]  ;;  %v401_v32 = vld [vmem:[%s5139_s24 + $0x50] sm:$0xff] }
  0x17   : > { %v459_v27 = vpack.c.bf16 %v400_v26, %v399_v25  ;;  %v440_v29 = vld [vmem:[%s5139_s24 + $0x188] sm:$0xff]  ;;  %v402_v33 = vld [vmem:[%s5139_s24 + $0x58] sm:$0xff]  ;;  %v441_v35 = vld [vmem:[%s5139_s24 + $0x190] sm:$0xff] }
  0x18   : > { %662 = vmatpush1.bf16.msra.mxu0 %v4957_v6  ;;  %4937 = vmatpush1.bf16.msra.mxu1 %v4957_v6  ;;  %v479_v30 = vpack.c.bf16 %v440_v29, %v439_v28  ;;  %v460_v34 = vpack.c.bf16 %v402_v33, %v401_v32  ;;  %v442_v36 = vld [vmem:[%s5139_s24 + $0x198] sm:$0xff]  ;;  %v403_v39 = vld [vmem:[%s5139_s24 + $0x60] sm:$0xff]  ;;  %v404_v40 = vld [vmem:[%s5139_s24 + $0x68] sm:$0xff] }
  0x19   : > { %663 = vmatprep.subr.bf16.mxu0 %v4958_v7  ;;  %4933 = vmatprep.subr.bf16.mxu1 %v4958_v7  ;;  %v480_v37 = vpack.c.bf16 %v442_v36, %v441_v35  ;;  %v461_v41 = vpack.c.bf16 %v404_v40, %v403_v39  ;;  %v443_v42 = vld [vmem:[%s5139_s24 + $0x1a0] sm:$0xff]  ;;  %v444_v43 = vld [vmem:[%s5139_s24 + $0x1a8] sm:$0xff]  ;;  %v405_v46 = vld [vmem:[%s5139_s24 + $0x70] sm:$0xff] }
  0x1a   : > { %v481_v44 = vpack.c.bf16 %v444_v43, %v443_v42  ;;  %v406_v47 = vld [vmem:[%s5139_s24 + $0x78] sm:$0xff]  ;;  %v445_v49 = vld [vmem:[%s5139_s24 + $0x1b0] sm:$0xff]  ;;  %v407_v52 = vld [vmem:[%s5139_s24 + $0x80] sm:$0xff] }
  0x1b   : > { %v462_v48 = vpack.c.bf16 %v406_v47, %v405_v46  ;;  %v446_v50 = vld [vmem:[%s5139_s24 + $0x1b8] sm:$0xff]  ;;  %v408_v53 = vld [vmem:[%s5139_s24 + $0x88] sm:$0xff]  ;;  %v447_v55 = vld [vmem:[%s5139_s24 + $0x1c0] sm:$0xff] }
  0x1c   : > { %664 = vmatpush1.bf16.msra.mxu0 %v4960_v9  ;;  %4938 = vmatpush1.bf16.msra.mxu1 %v4960_v9  ;;  %v482_v51 = vpack.c.bf16 %v446_v50, %v445_v49  ;;  %v448_v56 = vld [vmem:[%s5139_s24 + $0x1c8] sm:$0xff]  ;;  %v463_v58 = vpack.c.bf16 %v408_v53, %v407_v52  ;;  %v409_v61 = vld [vmem:[%s5139_s24 + $0x90] sm:$0xff]  ;;  %v410_v62 = vld [vmem:[%s5139_s24 + $0x98] sm:$0xff] }
  0x1d   : > { %4184 = vmatprep.subr.msk.bf16.mxu0 %vm650_vm0, %v4183_v10  ;;  %4934 = vmatprep.subr.msk.bf16.mxu1 %vm650_vm0, %v4183_v10  ;;  %v483_v59 = vpack.c.bf16 %v448_v56, %v447_v55  ;;  %v449_v63 = vld [vmem:[%s5139_s24 + $0x1d0] sm:$0xff]  ;;  %v450_v0 = vld [vmem:[%s5139_s24 + $0x1d8] sm:$0xff]  ;;  %v464_v1 = vpack.c.bf16 %v410_v62, %v409_v61  ;;  %v411_v4 = vld [vmem:[%s5139_s24 + $0xa0] sm:$0xff]  ;;  %v498_v55 = vlaneseq }
  0x1e   : > { %v484_v3 = vpack.c.bf16 %v450_v0, %v449_v63  ;;  %v412_v5 = vld [vmem:[%s5139_s24 + $0xa8] sm:$0xff]  ;;  %v451_v6 = vld [vmem:[%s5139_s24 + $0x1e0] sm:$0xff]  ;;  %v413_v10 = vld [vmem:[%s5139_s24 + $0xb0] sm:$0xff] }
  0x1f   : > { %v452_v7 = vld [vmem:[%s5139_s24 + $0x1e8] sm:$0xff]  ;;  %v465_v8 = vpack.c.bf16 %v412_v5, %v411_v4  ;;  %v414_v11 = vld [vmem:[%s5139_s24 + $0xb8] sm:$0xff]  ;;  %v453_v13 = vld [vmem:[%s5139_s24 + $0x1f0] sm:$0xff]  ;;  %v5294_v56 = vshrl.u32 %v498_v55, 7 }
  0x20   : > { %666 = vmatpush1.bf16.msra.mxu0 %v652_v14  ;;  %4939 = vmatpush1.bf16.msra.mxu1 %v652_v14  ;;  %v485_v9 = vpack.c.bf16 %v452_v7, %v451_v6  ;;  %v466_v12 = vpack.c.bf16 %v414_v11, %v413_v10  ;;  %v454_v14 = vld [vmem:[%s5139_s24 + $0x1f8] sm:$0xff]  ;;  %v415_v17 = vld [vmem:[%s5139_s24 + $0xc0] sm:$0xff]  ;;  %v420_v25 = vld [vmem:[%s5139_s24 + $0xe8] sm:$0xff] }
  0x21   : > { %4538 = vmatprep.subr.bf16.mxu1 %v4963_v31  ;;  %v486_v16 = vpack.c.bf16 %v454_v14, %v453_v13  ;;  %v4970_v20 = vld [vmem:[%s6672_s3 + $0x38] sm:$0xff]   ;;  %v425_v33 = vld [vmem:[%s5139_s24 + $0x110] sm:$0xff]  ;;  %v427_v36 = vld [vmem:[%s5139_s24 + $0x120] sm:$0xff] }
  0x22   : > { %v418_v22 = vld [vmem:[%s5139_s24 + $0xd8] sm:$0xff]  ;;  %v429_v39 = vld [vmem:[%s5139_s24 + $0x130] sm:$0xff]  ;;  %v431_v42 = vld [vmem:[%s5139_s24 + $0x140] sm:$0xff] }
  0x23   : > { %4185 = vmatmul.mubr.msk.bf16.vlgmr.msra.gmra.mrb[0].mxu0 %vm553_vm1, %v455_v15  ;;  %4209 = vmatmul.mubr.msk.bf16.vlgmr.msra.gmra.mrb[0].mxu1 %vm553_vm1, %v479_v30  ;;  %v4969_v15 = vld [vmem:[%s6672_s3 + $0x30] sm:$0xff]   ;;  %v422_v28 = vld [vmem:[%s5139_s24 + $0xf8] sm:$0xff]  ;;  %v423_v30 = vld [vmem:[%s5139_s24 + $0x100] sm:$0xff] }
  0x24   : > { %699 = vmatprep.mubr.bf16.mxu0 %v6682_v2  ;;  %939 = vmatprep.mubr.bf16.mxu1 %v6682_v2  ;;  %v430_v40 = vld [vmem:[%s5139_s24 + $0x138] sm:$0xff]  ;;  %v432_v43 = vld [vmem:[%s5139_s24 + $0x148] sm:$0xff] }
  0x25   : > { %4539 = vmatpush3.bf16.msra.mxu1 %v4963_v31  ;;  %v424_v31 = vld [vmem:[%s5139_s24 + $0x108] sm:$0xff]  ;;  %v434_v46 = vld [vmem:[%s5139_s24 + $0x158] sm:$0xff] }
  0x26   : > { %4540 = vmatprep.subr.bf16.mxu1 %v4964_v38  ;;  %v471_v32 = vpack.c.bf16 %v424_v31, %v423_v30  ;;  %v436_v49 = vld [vmem:[%s5139_s24 + $0x168] sm:$0xff]  ;;  %v438_v52 = vld [vmem:[%s5139_s24 + $0x178] sm:$0xff] }
  0x29   : > { %4541 = vmatpush3.bf16.msra.mxu1 %v4964_v38 }
  0x2a   : > { %4542 = vmatprep.subr.bf16.mxu1 %v4965_v45 }
  0x2b   : > { %4186 = vmatmul.mubr.msk.bf16.gmra.mrb[4].mxu0 %vm553_vm1, %v456_v18  ;;  %4210 = vmatmul.mubr.msk.bf16.gmra.mrb[4].mxu1 %vm553_vm1, %v480_v37  ;;  %v416_v18 = vld [vmem:[%s5139_s24 + $0xc8] sm:$0xff] }
  0x2c   : > { %709 = vmatprep.mubr.bf16.mxu0 %v6682_v2  ;;  %949 = vmatprep.mubr.bf16.mxu1 %v6682_v2  ;;  %v467_v19 = vpack.c.bf16 %v416_v18, %v415_v17  ;;  %v428_v37 = vld [vmem:[%s5139_s24 + $0x128] sm:$0xff] }
  0x2d   : > { %4543 = vmatpush3.bf16.msra.mxu1 %v4965_v45  ;;  %v473_v38 = vpack.c.bf16 %v428_v37, %v427_v36  ;;  %v433_v45 = vld [vmem:[%s5139_s24 + $0x150] sm:$0xff] }
  0x2e   : > { %4544 = vmatprep.subr.bf16.mxu1 %v4966_v54  ;;  %v476_v47 = vpack.c.bf16 %v434_v46, %v433_v45 }
  0x31   : > { %4545 = vmatpush3.bf16.msra.mxu1 %v4966_v54  ;;  %v4971_v54 = vld [vmem:[%s6672_s3 + $0x40] sm:$0xff]  }
  0x32   : > { %4546 = vmatprep.subr.bf16.mxu1 %v4967_v57 }
  0x33   : > { %4187 = vmatmul.mubr.msk.bf16.gmra.mrb[8].mxu0 %vm553_vm1, %v457_v21  ;;  %4211 = vmatmul.mubr.msk.bf16.gmra.mrb[8].mxu1 %vm553_vm1, %v481_v44  ;;  %v417_v21 = vld [vmem:[%s5139_s24 + $0xd0] sm:$0xff]  ;;  %v475_v44 = vpack.c.bf16 %v432_v43, %v431_v42 }
  0x34   : > { %719 = vmatprep.mubr.bf16.mxu0 %v6682_v2  ;;  %959 = vmatprep.mubr.bf16.mxu1 %v6682_v2  ;;  %v468_v23 = vpack.c.bf16 %v418_v22, %v417_v21  ;;  %v4973_v22 = vld [vmem:[%s6672_s3 + $0x50] sm:$0xff]  }
  0x35   : > { %4547 = vmatpush3.bf16.msra.mxu1 %v4967_v57  ;;  %v6681_v57 = vsub.s32 0, %v5294_v56 }
  0x36   : > { %4548 = vmatprep.subr.bf16.mxu1 %v4968_v60 }
  0x39   : > { %4549 = vmatpush3.bf16.msra.mxu1 %v4968_v60 }
  0x3a   : > { %4550 = vmatprep.subr.bf16.mxu1 %v4969_v15 }
  0x3b   : > { %4188 = vmatmul.mubr.msk.bf16.gmra.mrb[12].mxu0 %vm553_vm1, %v458_v24  ;;  %4212 = vmatmul.mubr.msk.bf16.gmra.mrb[12].mxu1 %vm553_vm1, %v482_v51  ;;  %v419_v24 = vld [vmem:[%s5139_s24 + $0xe0] sm:$0xff]  ;;  %v437_v51 = vld [vmem:[%s5139_s24 + $0x170] sm:$0xff] }
  0x3c   : > { %729 = vmatprep.mubr.bf16.mxu0 %v6682_v2  ;;  %969 = vmatprep.mubr.bf16.mxu1 %v6682_v2  ;;  %v469_v26 = vpack.c.bf16 %v420_v25, %v419_v24  ;;  %v478_v53 = vpack.c.bf16 %v438_v52, %v437_v51 }
  0x3d   : > { %4551 = vmatpush3.bf16.msra.mxu1 %v4969_v15  ;;  %v4972_v15 = vld [vmem:[%s6672_s3 + $0x48] sm:$0xff]  }
  0x3e   : > { %4552 = vmatprep.subr.bf16.mxu1 %v4970_v20 }
  0x41   : > { %4553 = vmatpush3.bf16.msra.mxu1 %v4970_v20 }
  0x42   : > { %4618 = vmatprep.subr.bf16.mxu1 %v4971_v54 }
  0x43   : > { %4189 = vmatmul.mubr.msk.bf16.gmra.mrb[16].mxu0 %vm553_vm1, %v459_v27  ;;  %4213 = vmatmul.mubr.msk.bf16.gmra.mrb[16].mxu1 %vm553_vm1, %v483_v59  ;;  %v421_v27 = vld [vmem:[%s5139_s24 + $0xf0] sm:$0xff] }
  0x44   : > { %739 = vmatprep.mubr.bf16.mxu0 %v6682_v2  ;;  %979 = vmatprep.mubr.bf16.mxu1 %v6682_v2  ;;  %v470_v29 = vpack.c.bf16 %v422_v28, %v421_v27 }
  0x4b   : > { %4190 = vmatmul.mubr.msk.bf16.gmra.mrb[20].mxu0 %vm553_vm1, %v460_v34  ;;  %4214 = vmatmul.mubr.msk.bf16.gmra.mrb[20].mxu1 %vm553_vm1, %v484_v3  ;;  %v426_v34 = vld [vmem:[%s5139_s24 + $0x118] sm:$0xff] }
  0x4c   : > { %749 = vmatprep.mubr.bf16.mxu0 %v6682_v2  ;;  %989 = vmatprep.mubr.bf16.mxu1 %v6682_v2  ;;  %v472_v35 = vpack.c.bf16 %v426_v34, %v425_v33 }
  0x53   : > { %4191 = vmatmul.mubr.msk.bf16.gmra.mrb[24].mxu0 %vm553_vm1, %v461_v41  ;;  %4215 = vmatmul.mubr.msk.bf16.gmra.mrb[24].mxu1 %vm553_vm1, %v485_v9  ;;  %v474_v41 = vpack.c.bf16 %v430_v40, %v429_v39 }
  0x54   : > { %759 = vmatprep.mubr.bf16.mxu0 %v6682_v2  ;;  %999 = vmatprep.mubr.bf16.mxu1 %v6682_v2 }
  0x5b   : > { %4192 = vmatmul.mubr.msk.bf16.gmra.mrb[28].mxu0 %vm553_vm1, %v462_v48  ;;  %4216 = vmatmul.mubr.msk.bf16.gmra.mrb[28].mxu1 %vm553_vm1, %v486_v16  ;;  %v435_v48 = vld [vmem:[%s5139_s24 + $0x160] sm:$0xff] }
  0x5c   : > { %769 = vmatprep.mubr.bf16.mxu0 %v6682_v2  ;;  %v477_v50 = vpack.c.bf16 %v436_v49, %v435_v48 }
  0x63   : > { %4193 = vmatmul.mubr.msk.bf16.gmra.mrb[32].mxu0 %vm553_vm1, %v463_v58  ;;  %v496_v58 = vld [vmem:[%s6671_s2] sm:$0x3] }
  0x64   : > { %779 = vmatprep.mubr.bf16.mxu0 %v6682_v2  ;;  %v5302_v59 = vrot.slane %v496_v58, %v6681_v57 }
  0x6b   : > { %4194 = vmatmul.mubr.msk.bf16.gmra.mrb[36].mxu0 %vm553_vm1, %v464_v1 }
  0x6c   : > { %789 = vmatprep.mubr.bf16.mxu0 %v6682_v2 }
  0x73   : > { %4195 = vmatmul.mubr.msk.bf16.gmra.mrb[40].mxu0 %vm553_vm1, %v465_v8 }
  0x74   : > { %799 = vmatprep.mubr.bf16.mxu0 %v6682_v2 }
  0x7b   : > { %4196 = vmatmul.mubr.msk.bf16.gmra.mrb[44].mxu0 %vm553_vm1, %v466_v12 }
  0x7c   : > { %809 = vmatprep.mubr.bf16.mxu0 %v6682_v2 }
  0x83   : > { %4197 = vmatmul.mubr.msk.bf16.gmra.mrb[48].mxu0 %vm553_vm1, %v467_v19 }
  0x84   : > { %819 = vmatprep.mubr.bf16.mxu0 %v6682_v2 }
  0x8b   : > { %4198 = vmatmul.mubr.msk.bf16.gmra.mrb[52].mxu0 %vm553_vm1, %v468_v23 }
  0x8c   : > { %829 = vmatprep.mubr.bf16.mxu0 %v6682_v2 }
  0x93   : > { %4199 = vmatmul.mubr.msk.bf16.gmra.mrb[56].mxu0 %vm553_vm1, %v469_v26 }
  0x94   : > { %839 = vmatprep.mubr.bf16.mxu0 %v6682_v2 }
  0x9b   : > { %4200 = vmatmul.mubr.msk.bf16.gmra.mrb[60].mxu0 %vm553_vm1, %v470_v29 }
  0x9c   : > { %849 = vmatprep.mubr.bf16.mxu0 %v6682_v2 }
  0xa3   : > { %4201 = vmatmul.mubr.msk.bf16.gmra.mrb[64].mxu0 %vm553_vm1, %v471_v32 }
  0xa4   : > { %859 = vmatprep.mubr.bf16.mxu0 %v6682_v2 }
  0xab   : > { %4202 = vmatmul.mubr.msk.bf16.gmra.mrb[68].mxu0 %vm553_vm1, %v472_v35  ;;  %v4974_v35 = vld [vmem:[%s6672_s3 + $0x58] sm:$0xff]  }
  0xac   : > { %869 = vmatprep.mubr.bf16.mxu0 %v6682_v2 }
  0xb3   : > { %4203 = vmatmul.mubr.msk.bf16.gmra.mrb[72].mxu0 %vm553_vm1, %v473_v38 }
  0xb4   : > { %879 = vmatprep.mubr.bf16.mxu0 %v6682_v2 }
  0xbb   : > { %4204 = vmatmul.mubr.msk.bf16.gmra.mrb[76].mxu0 %vm553_vm1, %v474_v41 }
  0xbc   : > { %889 = vmatprep.mubr.bf16.mxu0 %v6682_v2 }
  0xc3   : > { %4205 = vmatmul.mubr.msk.bf16.gmra.mrb[80].mxu0 %vm553_vm1, %v475_v44 }
  0xc4   : > { %899 = vmatprep.mubr.bf16.mxu0 %v6682_v2 }
  0xcb   : > { %4206 = vmatmul.mubr.msk.bf16.gmra.mrb[84].mxu0 %vm553_vm1, %v476_v47 }
  0xcc   : > { %909 = vmatprep.mubr.bf16.mxu0 %v6682_v2 }
  0xd3   : > { %4207 = vmatmul.mubr.msk.bf16.gmra.mrb[88].mxu0 %vm553_vm1, %v477_v50 }
  0xd4   : > { %919 = vmatprep.mubr.bf16.mxu0 %v6682_v2 }
  0xdb   : > { %4208 = vmatmul.mubr.msk.bf16.gmra.mrb[92].mxu0 %vm553_vm1, %v478_v53 }
  0xf6   : > { %v691_v60 = vpop.f32.mrb[0].mxu0  ;;  %v931_v39 = vpop.f32.mrb[0].mxu1 }
  0xf7   : > { %v692_v61 = vadd.f32 %v691_v60, %v5302_v59  ;;  %v5305_v62 = vpop.f32.mrb[1].mxu0  ;;  %v5340_v41 = vpop.f32.mrb[1].mxu1  ;;  %v932_v44 = vadd.f32 %v931_v39, %v5302_v59 }
  0xf8   : > { %v695_v63 = vpop.f32.mrb[2].mxu0  ;;  %6685 = vst [vmem:[#allocation2_spill] sm:$0xff] %v5340_v41  ;;  %v935_v45 = vpop.f32.mrb[2].mxu1 }
  0xf9   : > { %v696_v0 = vadd.f32 %v695_v63, %v5302_v59  ;;  %v5308_v1 = vpop.f32.mrb[3].mxu0  ;;  %v1010_v3 = vmax.f32 %v692_v61, 0.0  ;;  %v5346_v46 = vpop.f32.mrb[3].mxu1  ;;  %v1058_v49 = vmax.f32 %v932_v44, 0.0  ;;  %v936_v50 = vadd.f32 %v935_v45, %v5302_v59 }
  0xfa   : > { %6686 = vst [vmem:[#allocation3_spill] sm:$0xff] %v5346_v46 }
  0xfb   : > { %v1011_v4 = vmax.f32 %v696_v0, 0.0  ;;  %v1059_v52 = vmax.f32 %v936_v50, 0.0 }
  0xfd   : > { %v1074_v5 = vpack.c.bf16 %v1011_v4, %v1010_v3  ;;  %v5352_v60 = vpack.c.bf16 %v1059_v52, %v1058_v49 }
  0xfe   : > { %v701_v6 = vpop.f32.mrb[4].mxu0  ;;  %v941_v58 = vpop.f32.mrb[4].mxu1 }
  0xff   : > { %v702_v7 = vadd.f32 %v701_v6, %v5302_v59  ;;  %v5311_v8 = vpop.f32.mrb[5].mxu0  ;;  %4554 = vmatprep.mubr.bf16.mxu1 %v1074_v5  ;;  %v5354_v63 = vpop.f32.mrb[5].mxu1  ;;  %v942_v4 = vadd.f32 %v941_v58, %v5302_v59 }
 0x100   : > { %v705_v9 = vpop.f32.mrb[6].mxu0  ;;  %6687 = vst [vmem:[#allocation4_spill] sm:$0xff] %v5354_v63  ;;  %v945_v5 = vpop.f32.mrb[6].mxu1 }
 0x101   : > { %v706_v10 = vadd.f32 %v705_v9, %v5302_v59  ;;  %v5314_v11 = vpop.f32.mrb[7].mxu0  ;;  %v1012_v12 = vmax.f32 %v702_v7, 0.0  ;;  %v5360_v6 = vpop.f32.mrb[7].mxu1 }
 0x102   : > { %6688 = vst [vmem:[#allocation5_spill] sm:$0xff] %v5360_v6 }
 0x103   : > { %v1013_v13 = vmax.f32 %v706_v10, 0.0  ;;  %v1060_v10 = vmax.f32 %v942_v4, 0.0 }
 0x105   : > { %v1075_v14 = vpack.c.bf16 %v1013_v13, %v1012_v12  ;;  %v946_v12 = vadd.f32 %v945_v5, %v5302_v59 }
 0x106   : > { %v711_v16 = vpop.f32.mrb[8].mxu0 }
 0x107   : > { %v712_v17 = vadd.f32 %v711_v16, %v5302_v59  ;;  %v5320_v18 = vpop.f32.mrb[9].mxu0  ;;  %4555 = vmatmul.mubr.bf16.vlgmr.msra.gmra.mrb[32].mxu1 %v1075_v14  ;;  %v1061_v14 = vmax.f32 %v946_v12, 0.0 }
 0x108   : > { %v715_v19 = vpop.f32.mrb[10].mxu0  ;;  %4619 = vmatpush3.bf16.msra.mxu1 %v4971_v54 }
 0x109   : > { %v716_v20 = vadd.f32 %v715_v19, %v5302_v59  ;;  %v5323_v21 = vpop.f32.mrb[11].mxu0  ;;  %4620 = vmatprep.subr.bf16.mxu1 %v4972_v15  ;;  %v1014_v23 = vmax.f32 %v712_v17, 0.0 }
 0x10b   : > { %v1015_v24 = vmax.f32 %v716_v20, 0.0  ;;  %v951_v20 = vpop.f32.mrb[8].mxu1 }
 0x10c   : > { %4621 = vmatpush3.bf16.msra.mxu1 %v4972_v15  ;;  %v4975_v15 = vld [vmem:[%s6672_s3 + $0x60] sm:$0xff]  }
 0x10d   : > { %v1076_v25 = vpack.c.bf16 %v1015_v24, %v1014_v23  ;;  %4622 = vmatprep.subr.bf16.mxu1 %v4973_v22  ;;  %v5371_v24 = vpop.f32.mrb[9].mxu1 }
 0x10e   : > { %v721_v26 = vpop.f32.mrb[12].mxu0  ;;  %6689 = vst [vmem:[#allocation6_spill] sm:$0xff] %v5371_v24 }
 0x10f   : > { %v722_v27 = vadd.f32 %v721_v26, %v5302_v59  ;;  %v5329_v28 = vpop.f32.mrb[13].mxu0  ;;  %4558 = vmatprep.mubr.bf16.mxu1 %v1076_v25 }
 0x110   : > { %v725_v29 = vpop.f32.mrb[14].mxu0  ;;  %4623 = vmatpush3.bf16.msra.mxu1 %v4973_v22  ;;  %v5369_v22 = vpack.c.bf16 %v1061_v14, %v1060_v10 }
 0x111   : > { %v726_v30 = vadd.f32 %v725_v29, %v5302_v59  ;;  %v5332_v31 = vpop.f32.mrb[15].mxu0  ;;  %v1016_v32 = vmax.f32 %v722_v27, 0.0  ;;  %4624 = vmatprep.subr.bf16.mxu1 %v4974_v35  ;;  %v952_v27 = vadd.f32 %v951_v20, %v5302_v59  ;;  %v955_v29 = vpop.f32.mrb[10].mxu1 }
 0x113   : > { %v1017_v33 = vmax.f32 %v726_v30, 0.0  ;;  %v5377_v30 = vpop.f32.mrb[11].mxu1 }
 0x114   : > { %4625 = vmatpush3.bf16.msra.mxu1 %v4974_v35  ;;  %6690 = vst [vmem:[#allocation7_spill] sm:$0xff] %v5377_v30  ;;  %v956_v35 = vadd.f32 %v955_v29, %v5302_v59  ;;  %v961_v44 = vpop.f32.mrb[12].mxu1 }
 0x115   : > { %v1077_v34 = vpack.c.bf16 %v1017_v33, %v1016_v32  ;;  %4626 = vmatprep.subr.bf16.mxu1 %v4975_v15 }
 0x116   : > { %v731_v36 = vpop.f32.mrb[16].mxu0 }
 0x117   : > { %v732_v37 = vadd.f32 %v731_v36, %v5302_v59  ;;  %v5338_v38 = vpop.f32.mrb[17].mxu0  ;;  %4559 = vmatmul.mubr.bf16.gmra.mrb[36].mxu1 %v1077_v34  ;;  %v1062_v34 = vmax.f32 %v952_v27, 0.0 }
 0x118   : > { %v735_v40 = vpop.f32.mrb[18].mxu0  ;;  %4627 = vmatpush3.bf16.msra.mxu1 %v4975_v15 }
 0x119   : > { %v736_v42 = vadd.f32 %v735_v40, %v5302_v59  ;;  %v5343_v43 = vpop.f32.mrb[19].mxu0  ;;  %v1018_v47 = vmax.f32 %v732_v37, 0.0  ;;  %v1063_v37 = vmax.f32 %v956_v35, 0.0 }
 0x11b   : > { %v1019_v48 = vmax.f32 %v736_v42, 0.0  ;;  %v5383_v45 = vpack.c.bf16 %v1063_v37, %v1062_v34 }
 0x11d   : > { %v1078_v51 = vpack.c.bf16 %v1019_v48, %v1018_v47  ;;  %v5385_v48 = vpop.f32.mrb[13].mxu1 }
 0x11e   : > { %v741_v53 = vpop.f32.mrb[20].mxu0  ;;  %6691 = vst [vmem:[#allocation8_spill] sm:$0xff] %v5385_v48  ;;  %v965_v52 = vpop.f32.mrb[14].mxu1 }
 0x11f   : > { %v742_v54 = vadd.f32 %v741_v53, %v5302_v59  ;;  %v5350_v55 = vpop.f32.mrb[21].mxu0  ;;  %4562 = vmatprep.mubr.bf16.mxu1 %v1078_v51  ;;  %v962_v51 = vadd.f32 %v961_v44, %v5302_v59  ;;  %v5391_v53 = vpop.f32.mrb[15].mxu1 }
 0x120   : > { %v745_v61 = vpop.f32.mrb[22].mxu0  ;;  %6692 = vst [vmem:[#allocation9_spill] sm:$0xff] %v5391_v53  ;;  %v971_v10 = vpop.f32.mrb[16].mxu1 }
 0x121   : > { %v746_v0 = vadd.f32 %v745_v61, %v5302_v59  ;;  %v5357_v3 = vpop.f32.mrb[23].mxu0  ;;  %v1020_v7 = vmax.f32 %v742_v54, 0.0  ;;  %v1064_v61 = vmax.f32 %v962_v51, 0.0  ;;  %v972_v14 = vadd.f32 %v971_v10, %v5302_v59  ;;  %v5401_v15 = vpop.f32.mrb[17].mxu1 }
 0x122   : > { %6693 = vst [vmem:[#allocation10_spill] sm:$0xff] %v5401_v15  ;;  %v975_v20 = vpop.f32.mrb[18].mxu1 }
 0x123   : > { %v1021_v9 = vmax.f32 %v746_v0, 0.0  ;;  %v966_v0 = vadd.f32 %v965_v52, %v5302_v59  ;;  %v976_v27 = vadd.f32 %v975_v20, %v5302_v59  ;;  %v5409_v29 = vpop.f32.mrb[19].mxu1  ;;  %v1066_v34 = vmax.f32 %v972_v14, 0.0 }
 0x124   : > { %6694 = vst [vmem:[#allocation11_spill] sm:$0xff] %v5409_v29 }
 0x125   : > { %v1079_v13 = vpack.c.bf16 %v1021_v9, %v1020_v7  ;;  %v1065_v5 = vmax.f32 %v966_v0, 0.0  ;;  %v4976_v7 = vld [vmem:[%s6672_s3 + $0x68] sm:$0xff]   ;;  %v1067_v35 = vmax.f32 %v976_v27, 0.0 }
 0x126   : > { %v751_v16 = vpop.f32.mrb[24].mxu0  ;;  %4628 = vmatprep.subr.bf16.mxu1 %v4976_v7 }
 0x127   : > { %v752_v17 = vadd.f32 %v751_v16, %v5302_v59  ;;  %v5367_v19 = vpop.f32.mrb[25].mxu0  ;;  %4563 = vmatmul.mubr.bf16.gmra.mrb[40].mxu1 %v1079_v13  ;;  %v5403_v16 = vpack.c.bf16 %v1065_v5, %v1064_v61  ;;  %v5417_v51 = vpack.c.bf16 %v1067_v35, %v1066_v34 }
 0x128   : > { %v755_v23 = vpop.f32.mrb[26].mxu0  ;;  %4629 = vmatpush3.bf16.msra.mxu1 %v4976_v7 }
 0x129   : > { %v756_v25 = vadd.f32 %v755_v23, %v5302_v59  ;;  %v5374_v26 = vpop.f32.mrb[27].mxu0  ;;  %v1022_v32 = vmax.f32 %v752_v17, 0.0 }
 0x12b   : > { %v1023_v33 = vmax.f32 %v756_v25, 0.0 }
 0x12d   : > { %v1080_v36 = vpack.c.bf16 %v1023_v33, %v1022_v32 }
 0x12e   : > { %v761_v39 = vpop.f32.mrb[28].mxu0 }
 0x12f   : > { %v762_v40 = vadd.f32 %v761_v39, %v5302_v59  ;;  %v5381_v42 = vpop.f32.mrb[29].mxu0  ;;  %4566 = vmatprep.mubr.bf16.mxu1 %v1080_v36  ;;  %v981_v39 = vpop.f32.mrb[20].mxu1 }
 0x130   : > { %v765_v47 = vpop.f32.mrb[30].mxu0 }
 0x131   : > { %v766_v49 = vadd.f32 %v765_v47, %v5302_v59  ;;  %v5388_v50 = vpop.f32.mrb[31].mxu0  ;;  %v1024_v54 = vmax.f32 %v762_v40, 0.0  ;;  %v982_v47 = vadd.f32 %v981_v39, %v5302_v59 }
 0x133   : > { %v1025_v58 = vmax.f32 %v766_v49, 0.0  ;;  %v5415_v49 = vpop.f32.mrb[21].mxu1  ;;  %v1068_v10 = vmax.f32 %v982_v47, 0.0 }
 0x134   : > { %6695 = vst [vmem:[#allocation12_spill] sm:$0xff] %v5415_v49 }
 0x135   : > { %v1081_v4 = vpack.c.bf16 %v1025_v58, %v1024_v54  ;;  %v985_v54 = vpop.f32.mrb[22].mxu1  ;;  %v4977_v58 = vld [vmem:[%s6672_s3 + $0x70] sm:$0xff]  }
 0x136   : > { %v771_v9 = vpop.f32.mrb[32].mxu0  ;;  %v5426_v5 = vpop.f32.mrb[23].mxu1  ;;  %4630 = vmatprep.subr.bf16.mxu1 %v4977_v58 }
 0x137   : > { %v772_v12 = vadd.f32 %v771_v9, %v5302_v59  ;;  %v5398_v13 = vpop.f32.mrb[33].mxu0  ;;  %4567 = vmatmul.mubr.bf16.gmra.mrb[44].mxu1 %v1081_v4  ;;  %v986_v4 = vadd.f32 %v985_v54, %v5302_v59  ;;  %6696 = vst [vmem:[#allocation13_spill] sm:$0xff] %v5426_v5  ;;  %v991_v20 = vpop.f32.mrb[24].mxu1 }
 0x138   : > { %v775_v17 = vpop.f32.mrb[34].mxu0  ;;  %4631 = vmatpush3.bf16.msra.mxu1 %v4977_v58 }
 0x139   : > { %v776_v23 = vadd.f32 %v775_v17, %v5302_v59  ;;  %v5406_v25 = vpop.f32.mrb[35].mxu0  ;;  %v1026_v32 = vmax.f32 %v772_v12, 0.0  ;;  %v1069_v12 = vmax.f32 %v986_v4, 0.0 }
 0x13b   : > { %v1027_v33 = vmax.f32 %v776_v23, 0.0  ;;  %v5434_v34 = vpack.c.bf16 %v1069_v12, %v1068_v10 }
 0x13d   : > { %v1082_v36 = vpack.c.bf16 %v1027_v33, %v1026_v32  ;;  %v992_v32 = vadd.f32 %v991_v20, %v5302_v59  ;;  %v5432_v33 = vpop.f32.mrb[25].mxu1  ;;  %v4978_v20 = vld [vmem:[%s6672_s3 + $0x78] sm:$0xff]  }
 0x13e   : > { %v781_v37 = vpop.f32.mrb[36].mxu0  ;;  %6697 = vst [vmem:[#allocation14_spill] sm:$0xff] %v5432_v33  ;;  %4632 = vmatprep.subr.bf16.mxu1 %v4978_v20 }
 0x13f   : > { %v782_v40 = vadd.f32 %v781_v37, %v5302_v59  ;;  %v5412_v44 = vpop.f32.mrb[37].mxu0  ;;  %4570 = vmatprep.mubr.bf16.mxu1 %v1082_v36  ;;  %v995_v36 = vpop.f32.mrb[26].mxu1  ;;  %v1070_v58 = vmax.f32 %v992_v32, 0.0  ;;  %4633 = vmatpush3.bf16.msra.mxu1 %v4978_v20 }
 0x140   : > { %v785_v52 = vpop.f32.mrb[38].mxu0  ;;  %v5440_v47 = vpop.f32.mrb[27].mxu1 }
 0x141   : > { %v786_v61 = vadd.f32 %v785_v52, %v5302_v59  ;;  %v5423_v0 = vpop.f32.mrb[39].mxu0  ;;  %v1028_v7 = vmax.f32 %v782_v40, 0.0  ;;  %v996_v40 = vadd.f32 %v995_v36, %v5302_v59  ;;  %6698 = vst [vmem:[#allocation15_spill] sm:$0xff] %v5440_v47 }
 0x143   : > { %v1029_v9 = vmax.f32 %v786_v61, 0.0  ;;  %v1071_v61 = vmax.f32 %v996_v40, 0.0 }
 0x145   : > { %v1083_v14 = vpack.c.bf16 %v1029_v9, %v1028_v7  ;;  %v5445_v12 = vpack.c.bf16 %v1071_v61, %v1070_v58 }
 0x146   : > { %v791_v17 = vpop.f32.mrb[40].mxu0 }
 0x147   : > { %v792_v23 = vadd.f32 %v791_v17, %v5302_v59  ;;  %v5429_v27 = vpop.f32.mrb[41].mxu0  ;;  %4571 = vmatmul.mubr.bf16.gmra.mrb[48].mxu1 %v1083_v14  ;;  %v1001_v17 = vpop.f32.mrb[28].mxu1 }
 0x148   : > { %v795_v35 = vpop.f32.mrb[42].mxu0  ;;  %v1002_v32 = vadd.f32 %v1001_v17, %v5302_v59  ;;  %v5454_v36 = vpop.f32.mrb[29].mxu1 }
 0x149   : > { %v796_v37 = vadd.f32 %v795_v35, %v5302_v59  ;;  %v5437_v39 = vpop.f32.mrb[43].mxu0  ;;  %v1030_v52 = vmax.f32 %v792_v23, 0.0  ;;  %6699 = vst [vmem:[#allocation16_spill] sm:$0xff] %v5454_v36 }
 0x14b   : > { %v1031_v54 = vmax.f32 %v796_v37, 0.0  ;;  %v1005_v37 = vpop.f32.mrb[30].mxu1 }
 0x14c   : > { %v1006_v58 = vadd.f32 %v1005_v37, %v5302_v59  ;;  %v5457_v61 = vpop.f32.mrb[31].mxu1 }
 0x14d   : > { %v1084_v4 = vpack.c.bf16 %v1031_v54, %v1030_v52  ;;  %v1072_v54 = vmax.f32 %v1002_v32, 0.0  ;;  %6700 = vst [vmem:[#allocation17_spill] sm:$0xff] %v5457_v61 }
 0x14e   : > { %v801_v7 = vpop.f32.mrb[44].mxu0 }
 0x14f   : > { %v802_v9 = vadd.f32 %v801_v7, %v5302_v59  ;;  %v5443_v10 = vpop.f32.mrb[45].mxu0  ;;  %4574 = vmatprep.mubr.bf16.mxu1 %v1084_v4  ;;  %v1073_v7 = vmax.f32 %v1006_v58, 0.0 }
 0x150   : > { %v805_v14 = vpop.f32.mrb[46].mxu0 }
 0x151   : > { %v806_v23 = vadd.f32 %v805_v14, %v5302_v59  ;;  %v5451_v35 = vpop.f32.mrb[47].mxu0  ;;  %v1032_v40 = vmax.f32 %v802_v9, 0.0  ;;  %v5462_v17 = vpack.c.bf16 %v1073_v7, %v1072_v54 }
 0x153   : > { %v1033_v52 = vmax.f32 %v806_v23, 0.0 }
 0x155   : > { %v1085_v4 = vpack.c.bf16 %v1033_v52, %v1032_v40 }
 0x156   : > { %v811_v57 = vpop.f32.mrb[48].mxu0 }
 0x157   : > { %v812_v14 = vadd.f32 %v811_v57, %v5302_v59  ;;  %v5460_v2 = vpop.f32.mrb[49].mxu0  ;;  %4575 = vmatmul.mubr.bf16.gmra.mrb[52].mxu1 %v1085_v4 }
 0x158   : > { %v815_v47 = vpop.f32.mrb[50].mxu0 }
 0x159   : > { %v816_v9 = vadd.f32 %v815_v47, %v5302_v59  ;;  %v5465_v23 = vpop.f32.mrb[51].mxu0  ;;  %v1034_v32 = vmax.f32 %v812_v14, 0.0 }
 0x15b   : > { %v1035_v37 = vmax.f32 %v816_v9, 0.0 }
 0x15d   : > { %v1086_v33 = vpack.c.bf16 %v1035_v37, %v1034_v32 }
 0x15e   : > { %v821_v61 = vpop.f32.mrb[52].mxu0 }
 0x15f   : > { %v822_v20 = vadd.f32 %v821_v61, %v5302_v59  ;;  %v5468_v40 = vpop.f32.mrb[53].mxu0  ;;  %4578 = vmatprep.mubr.bf16.mxu1 %v1086_v33 }
 0x160   : > { %v825_v57 = vpop.f32.mrb[54].mxu0 }
 0x161   : > { %v826_v52 = vadd.f32 %v825_v57, %v5302_v59  ;;  %v5471_v58 = vpop.f32.mrb[55].mxu0  ;;  %v1036_v54 = vmax.f32 %v822_v20, 0.0 }
 0x163   : > { %v1037_v4 = vmax.f32 %v826_v52, 0.0 }
 0x165   : > { %v1087_v7 = vpack.c.bf16 %v1037_v4, %v1036_v54 }
 0x166   : > { %v831_v47 = vpop.f32.mrb[56].mxu0 }
 0x167   : > { %v832_v36 = vadd.f32 %v831_v47, %v5302_v59  ;;  %v5474_v14 = vpop.f32.mrb[57].mxu0  ;;  %4579 = vmatmul.mubr.bf16.gmra.mrb[56].mxu1 %v1087_v7 }
 0x168   : > { %v835_v9 = vpop.f32.mrb[58].mxu0 }
 0x169   : > { %v836_v61 = vadd.f32 %v835_v9, %v5302_v59  ;;  %v5477_v32 = vpop.f32.mrb[59].mxu0  ;;  %v1038_v33 = vmax.f32 %v832_v36, 0.0 }
 0x16b   : > { %v1039_v37 = vmax.f32 %v836_v61, 0.0 }
 0x16d   : > { %v1088_v29 = vpack.c.bf16 %v1039_v37, %v1038_v33 }
 0x16e   : > { %v841_v57 = vpop.f32.mrb[60].mxu0 }
 0x16f   : > { %v842_v5 = vadd.f32 %v841_v57, %v5302_v59  ;;  %v5480_v20 = vpop.f32.mrb[61].mxu0  ;;  %4582 = vmatprep.mubr.bf16.mxu1 %v1088_v29 }
 0x170   : > { %v845_v52 = vpop.f32.mrb[62].mxu0 }
 0x171   : > { %v846_v54 = vadd.f32 %v845_v52, %v5302_v59  ;;  %v5483_v4 = vpop.f32.mrb[63].mxu0  ;;  %v1040_v7 = vmax.f32 %v842_v5, 0.0 }
 0x173   : > { %v1041_v47 = vmax.f32 %v846_v54, 0.0 }
 0x175   : > { %v1089_v15 = vpack.c.bf16 %v1041_v47, %v1040_v7 }
 0x176   : > { %v851_v9 = vpop.f32.mrb[64].mxu0 }
 0x177   : > { %v852_v49 = vadd.f32 %v851_v9, %v5302_v59  ;;  %v5486_v36 = vpop.f32.mrb[65].mxu0  ;;  %4583 = vmatmul.mubr.bf16.gmra.mrb[60].mxu1 %v1089_v15  ;;  %v4979_v15 = vld [vmem:[%s6672_s3 + $0x80] sm:$0xff]  }
 0x178   : > { %v855_v61 = vpop.f32.mrb[66].mxu0  ;;  %4698 = vmatprep.subr.bf16.mxu0 %v4979_v15 }
 0x179   : > { %v856_v33 = vadd.f32 %v855_v61, %v5302_v59  ;;  %v5489_v37 = vpop.f32.mrb[67].mxu0  ;;  %v1042_v29 = vmax.f32 %v852_v49, 0.0  ;;  %4699 = vmatpush3.bf16.msra.mxu0 %v4979_v15 }
 0x17b   : > { %v1043_v57 = vmax.f32 %v856_v33, 0.0 }
 0x17d   : > { %v1090_v30 = vpack.c.bf16 %v1043_v57, %v1042_v29 }
 0x17e   : > { %v861_v52 = vpop.f32.mrb[68].mxu0 }
 0x17f   : > { %v862_v53 = vadd.f32 %v861_v52, %v5302_v59  ;;  %v5492_v5 = vpop.f32.mrb[69].mxu0  ;;  %4586 = vmatprep.mubr.bf16.mxu1 %v1090_v30 }
 0x180   : > { %v865_v54 = vpop.f32.mrb[70].mxu0 }
 0x181   : > { %v866_v7 = vadd.f32 %v865_v54, %v5302_v59  ;;  %v5495_v47 = vpop.f32.mrb[71].mxu0  ;;  %v1044_v9 = vmax.f32 %v862_v53, 0.0 }
 0x183   : > { %v1045_v61 = vmax.f32 %v866_v7, 0.0 }
 0x185   : > { %v1091_v49 = vpack.c.bf16 %v1045_v61, %v1044_v9 }
 0x186   : > { %v871_v33 = vpop.f32.mrb[72].mxu0 }
 0x187   : > { %v872_v29 = vadd.f32 %v871_v33, %v5302_v59  ;;  %v5501_v57 = vpop.f32.mrb[73].mxu0  ;;  %4587 = vmatmul.mubr.bf16.gmra.mrb[64].mxu1 %v1091_v49 }
 0x188   : > { %v875_v30 = vpop.f32.mrb[74].mxu0 }
 0x189   : > { %v876_v52 = vadd.f32 %v875_v30, %v5302_v59  ;;  %v5504_v54 = vpop.f32.mrb[75].mxu0  ;;  %v1046_v24 = vmax.f32 %v872_v29, 0.0 }
 0x18a   : > { %6701 = vst [vmem:[#allocation18_spill] sm:$0xff] %v5504_v54 }
 0x18b   : > { %v1047_v48 = vmax.f32 %v876_v52, 0.0 }
 0x18d   : > { %v1092_v46 = vpack.c.bf16 %v1047_v48, %v1046_v24 }
 0x18e   : > { %v881_v6 = vpop.f32.mrb[76].mxu0 }
 0x18f   : > { %v882_v53 = vadd.f32 %v881_v6, %v5302_v59  ;;  %v5507_v7 = vpop.f32.mrb[77].mxu0  ;;  %4590 = vmatprep.mubr.bf16.mxu1 %v1092_v46 }
 0x190   : > { %v885_v15 = vpop.f32.mrb[78].mxu0 }
 0x191   : > { %v886_v9 = vadd.f32 %v885_v15, %v5302_v59  ;;  %v5510_v61 = vpop.f32.mrb[79].mxu0  ;;  %v1048_v49 = vmax.f32 %v882_v53, 0.0  ;;  %v4980_v53 = vld [vmem:[%s6672_s3 + $0x88] sm:$0xff]  }
 0x192   : > { %6702 = vst [vmem:[#allocation19_spill] sm:$0xff] %v5510_v61  ;;  %4700 = vmatprep.subr.bf16.mxu0 %v4980_v53 }
 0x193   : > { %v1049_v33 = vmax.f32 %v886_v9, 0.0  ;;  %4701 = vmatpush3.bf16.msra.mxu0 %v4980_v53 }
 0x195   : > { %v1093_v41 = vpack.c.bf16 %v1049_v33, %v1048_v49 }
 0x196   : > { %v891_v30 = vpop.f32.mrb[80].mxu0 }
 0x197   : > { %v892_v63 = vadd.f32 %v891_v30, %v5302_v59  ;;  %v5513_v29 = vpop.f32.mrb[81].mxu0  ;;  %4591 = vmatmul.mubr.bf16.gmra.mrb[68].mxu1 %v1093_v41 }
 0x198   : > { %6703 = vst [vmem:[#allocation20_spill] sm:$0xff] %v5513_v29  ;;  %v895_v24 = vpop.f32.mrb[82].mxu0 }
 0x199   : > { %v896_v6 = vadd.f32 %v895_v24, %v5302_v59  ;;  %v5516_v48 = vpop.f32.mrb[83].mxu0  ;;  %v1050_v46 = vmax.f32 %v892_v63, 0.0 }
 0x19a   : > { %6704 = vst [vmem:[#allocation21_spill] sm:$0xff] %v5516_v48 }
 0x19b   : > { %v1051_v52 = vmax.f32 %v896_v6, 0.0 }
 0x19d   : > { %v1094_v54 = vpack.c.bf16 %v1051_v52, %v1050_v46 }
 0x19e   : > { %v901_v15 = vpop.f32.mrb[84].mxu0 }
 0x19f   : > { %v902_v9 = vadd.f32 %v901_v15, %v5302_v59  ;;  %v5522_v49 = vpop.f32.mrb[85].mxu0  ;;  %4594 = vmatprep.mubr.bf16.mxu1 %v1094_v54 }
 0x1a0   : > { %6705 = vst [vmem:[#allocation22_spill] sm:$0xff] %v5522_v49  ;;  %v905_v41 = vpop.f32.mrb[86].mxu0 }
 0x1a1   : > { %v906_v33 = vadd.f32 %v905_v41, %v5302_v59  ;;  %v5525_v30 = vpop.f32.mrb[87].mxu0  ;;  %v1052_v63 = vmax.f32 %v902_v9, 0.0 }
 0x1a2   : > { %6706 = vst [vmem:[#allocation23_spill] sm:$0xff] %v5525_v30 }
 0x1a3   : > { %v1053_v24 = vmax.f32 %v906_v33, 0.0 }
 0x1a5   : > { %v1095_v6 = vpack.c.bf16 %v1053_v24, %v1052_v63 }
 0x1a6   : > { %v911_v46 = vpop.f32.mrb[88].mxu0 }
 0x1a7   : > { %v912_v52 = vadd.f32 %v911_v46, %v5302_v59  ;;  %v5528_v48 = vpop.f32.mrb[89].mxu0  ;;  %4595 = vmatmul.mubr.bf16.gmra.mrb[72].mxu1 %v1095_v6  ;;  %v4981_v6 = vld [vmem:[%s6672_s3 + $0x90] sm:$0xff]  }
 0x1a8   : > { %v915_v15 = vpop.f32.mrb[90].mxu0  ;;  %4702 = vmatprep.subr.bf16.mxu0 %v4981_v6 }
 0x1a9   : > { %v916_v29 = vadd.f32 %v915_v15, %v5302_v59  ;;  %v5531_v54 = vpop.f32.mrb[91].mxu0  ;;  %v1054_v49 = vmax.f32 %v912_v52, 0.0  ;;  %4703 = vmatpush3.bf16.msra.mxu0 %v4981_v6 }
 0x1aa   : > { %6707 = vst [vmem:[#allocation24_spill] sm:$0xff] %v5531_v54 }
 0x1ab   : > { %v1055_v53 = vmax.f32 %v916_v29, 0.0 }
 0x1ad   : > { %v1096_v61 = vpack.c.bf16 %v1055_v53, %v1054_v49 }
 0x1ae   : > { %v921_v41 = vpop.f32.mrb[92].mxu0 }
 0x1af   : > { %v922_v30 = vadd.f32 %v921_v41, %v5302_v59  ;;  %v5534_v9 = vpop.f32.mrb[93].mxu0  ;;  %4598 = vmatprep.mubr.bf16.mxu1 %v1096_v61 }
 0x1b0   : > { %v925_v33 = vpop.f32.mrb[94].mxu0 }
 0x1b1   : > { %v926_v63 = vadd.f32 %v925_v33, %v5302_v59  ;;  %v5537_v24 = vpop.f32.mrb[95].mxu0  ;;  %v1056_v46 = vmax.f32 %v922_v30, 0.0  ;;  %v4982_v59 = vld [vmem:[%s6672_s3 + $0x98] sm:$0xff]  }
 0x1b2   : > { %6708 = vst [vmem:[#allocation25_spill] sm:$0xff] %v5537_v24  ;;  %4704 = vmatprep.subr.bf16.mxu0 %v4982_v59 }
 0x1b3   : > { %v1057_v15 = vmax.f32 %v926_v63, 0.0  ;;  %4705 = vmatpush3.bf16.msra.mxu0 %v4982_v59  ;;  %v4983_v63 = vld [vmem:[%s6672_s3 + $0xa0] sm:$0xff]  }
 0x1b4   : > { %4706 = vmatprep.subr.bf16.mxu0 %v4983_v63 }
 0x1b5   : > { %v1097_v29 = vpack.c.bf16 %v1057_v15, %v1056_v46 }
 0x1b7   : > { %4599 = vmatmul.mubr.bf16.gmra.mrb[76].mxu1 %v1097_v29  ;;  %4707 = vmatpush3.bf16.msra.mxu0 %v4983_v63 }
 0x1b8   : > { %4602 = vmatprep.mubr.bf16.mxu1 %v5352_v60  ;;  %v5556_v60 = vld [vmem:[%s6673_s4] ss:$0 sm:$0xff] }
 0x1bf   : > { %4603 = vmatmul.mubr.bf16.gmra.mrb[80].mxu1 %v5369_v22 }
 0x1c0   : > { %4606 = vmatprep.mubr.bf16.mxu1 %v5383_v45 }
 0x1c7   : > { %4607 = vmatmul.mubr.bf16.gmra.mrb[84].mxu1 %v5403_v16 }
 0x1c8   : > { %4610 = vmatprep.mubr.bf16.mxu1 %v5417_v51 }
 0x1cf   : > { %4611 = vmatmul.mubr.bf16.gmra.mrb[88].mxu1 %v5434_v34 }
 0x1d0   : > { %4614 = vmatprep.mubr.bf16.mxu1 %v5445_v12 }
 0x1d7   : > { %4615 = vmatmul.mubr.bf16.gmra.mrb[92].mxu1 %v5462_v17 }
 0x1da   : > { %v4556_v22 = vpop.f32.mrb[32].mxu1 }
 0x1db   : > { %v1220_v45 = vadd.f32 %v4556_v22, %v5556_v60  ;;  %v1211_v16 = vpop.f32.mrb[33].mxu1 }
 0x1dc   : > { %v1212_v51 = vadd.f32 %v5556_v60, %v1211_v16  ;;  %v4557_v61 = vpop.f32.mrb[34].mxu1 }
 0x1dd   : > { %v1223_v34 = vadd.f32 %v4557_v61, %v5556_v60  ;;  %v1214_v49 = vpop.f32.mrb[35].mxu1  ;;  %v1468_v30 = vmax.f32 %v1220_v45, 0.0 }
 0x1de   : > { %v1215_v12 = vadd.f32 %v5556_v60, %v1214_v49  ;;  %v1466_v17 = vmax.f32 %v1212_v51, 0.0 }
 0x1df   : > { %v1469_v52 = vmax.f32 %v1223_v34, 0.0 }
 0x1e0   : > { %v1467_v53 = vmax.f32 %v1215_v12, 0.0 }
 0x1e1   : > { %v1531_v41 = vpack.c.bf16 %v1469_v52, %v1468_v30 }
 0x1e2   : > { %v1530_v33 = vpack.c.bf16 %v1467_v53, %v1466_v17 }
 0x1e4   : > { %4634 = vmatprep.mubr.bf16.mxu1 %v1530_v33 }
 0x1e5   : > { %4635 = vmatmul.mubr.bf16.vlgmr.msra.gmra.mrb[96].mxu1 %v1531_v41 }
 0x1ea   : > { %v4560_v6 = vpop.f32.mrb[36].mxu1 }
 0x1eb   : > { %v1236_v46 = vadd.f32 %v4560_v6, %v5556_v60  ;;  %v1227_v15 = vpop.f32.mrb[37].mxu1 }
 0x1ec   : > { %v1228_v29 = vadd.f32 %v5556_v60, %v1227_v15  ;;  %v4561_v59 = vpop.f32.mrb[38].mxu1 }
 0x1ed   : > { %v1239_v22 = vadd.f32 %v4561_v59, %v5556_v60  ;;  %v1230_v45 = vpop.f32.mrb[39].mxu1  ;;  %v1472_v51 = vmax.f32 %v1236_v46, 0.0  ;;  %v4984_v46 = vld [vmem:[%s6672_s3 + $0xa8] sm:$0xff]  }
 0x1ee   : > { %v1231_v16 = vadd.f32 %v5556_v60, %v1230_v45  ;;  %v1470_v34 = vmax.f32 %v1228_v29, 0.0  ;;  %4708 = vmatprep.subr.bf16.mxu0 %v4984_v46 }
 0x1ef   : > { %v1473_v61 = vmax.f32 %v1239_v22, 0.0  ;;  %4709 = vmatpush3.bf16.msra.mxu0 %v4984_v46 }
 0x1f0   : > { %v1471_v49 = vmax.f32 %v1231_v16, 0.0 }
 0x1f1   : > { %v1533_v12 = vpack.c.bf16 %v1473_v61, %v1472_v51 }
 0x1f2   : > { %v1532_v30 = vpack.c.bf16 %v1471_v49, %v1470_v34 }
 0x1f4   : > { %4638 = vmatprep.mubr.bf16.mxu1 %v1532_v30 }
 0x1f5   : > { %4639 = vmatmul.mubr.bf16.gmra.mrb[100].mxu1 %v1533_v12 }
 0x1fa   : > { %v4564_v52 = vpop.f32.mrb[40].mxu1 }
 0x1fb   : > { %v1252_v17 = vadd.f32 %v4564_v52, %v5556_v60  ;;  %v1243_v53 = vpop.f32.mrb[41].mxu1 }
 0x1fc   : > { %v1244_v41 = vadd.f32 %v5556_v60, %v1243_v53  ;;  %v4565_v33 = vpop.f32.mrb[42].mxu1 }
 0x1fd   : > { %v1255_v63 = vadd.f32 %v4565_v33, %v5556_v60  ;;  %v1246_v6 = vpop.f32.mrb[43].mxu1  ;;  %v1476_v29 = vmax.f32 %v1252_v17, 0.0 }
 0x1fe   : > { %v1247_v15 = vadd.f32 %v5556_v60, %v1246_v6  ;;  %v1474_v22 = vmax.f32 %v1244_v41, 0.0 }
 0x1ff   : > { %v1477_v59 = vmax.f32 %v1255_v63, 0.0 }
 0x200   : > { %v1475_v45 = vmax.f32 %v1247_v15, 0.0 }
 0x201   : > { %v1535_v16 = vpack.c.bf16 %v1477_v59, %v1476_v29  ;;  %v4985_v29 = vld [vmem:[%s6672_s3 + $0xb0] sm:$0xff]  }
 0x202   : > { %v1534_v51 = vpack.c.bf16 %v1475_v45, %v1474_v22  ;;  %4710 = vmatprep.subr.bf16.mxu0 %v4985_v29 }
 0x203   : > { %4711 = vmatpush3.bf16.msra.mxu0 %v4985_v29 }
 0x204   : > { %4642 = vmatprep.mubr.bf16.mxu1 %v1534_v51 }
 0x205   : > { %4643 = vmatmul.mubr.bf16.gmra.mrb[104].mxu1 %v1535_v16 }
 0x20a   : > { %v4568_v61 = vpop.f32.mrb[44].mxu1 }
 0x20b   : > { %v1268_v34 = vadd.f32 %v4568_v61, %v5556_v60  ;;  %v1259_v49 = vpop.f32.mrb[45].mxu1 }
 0x20c   : > { %v1260_v12 = vadd.f32 %v5556_v60, %v1259_v49  ;;  %v4569_v30 = vpop.f32.mrb[46].mxu1 }
 0x20d   : > { %v1271_v52 = vadd.f32 %v4569_v30, %v5556_v60  ;;  %v1262_v53 = vpop.f32.mrb[47].mxu1  ;;  %v1480_v33 = vmax.f32 %v1268_v34, 0.0 }
 0x20e   : > { %v1263_v17 = vadd.f32 %v5556_v60, %v1262_v53  ;;  %v1478_v63 = vmax.f32 %v1260_v12, 0.0 }
 0x20f   : > { %v1481_v41 = vmax.f32 %v1271_v52, 0.0 }
 0x210   : > { %v1479_v6 = vmax.f32 %v1263_v17, 0.0 }
 0x211   : > { %v1537_v46 = vpack.c.bf16 %v1481_v41, %v1480_v33 }
 0x212   : > { %v1536_v15 = vpack.c.bf16 %v1479_v6, %v1478_v63 }
 0x214   : > { %4646 = vmatprep.mubr.bf16.mxu1 %v1536_v15 }
 0x215   : > { %4647 = vmatmul.mubr.bf16.gmra.mrb[108].mxu1 %v1537_v46 }
 0x21a   : > { %v4572_v59 = vpop.f32.mrb[48].mxu1 }
 0x21b   : > { %v1284_v22 = vadd.f32 %v4572_v59, %v5556_v60  ;;  %v1275_v45 = vpop.f32.mrb[49].mxu1 }
 0x21c   : > { %v1276_v16 = vadd.f32 %v5556_v60, %v1275_v45  ;;  %v4573_v51 = vpop.f32.mrb[50].mxu1 }
 0x21d   : > { %v1287_v61 = vadd.f32 %v4573_v51, %v5556_v60  ;;  %v1278_v34 = vpop.f32.mrb[51].mxu1  ;;  %v1484_v12 = vmax.f32 %v1284_v22, 0.0  ;;  %v4986_v22 = vld [vmem:[%s6672_s3 + $0xb8] sm:$0xff]  }
 0x21e   : > { %v1279_v49 = vadd.f32 %v5556_v60, %v1278_v34  ;;  %v1482_v52 = vmax.f32 %v1276_v16, 0.0  ;;  %4712 = vmatprep.subr.bf16.mxu0 %v4986_v22 }
 0x21f   : > { %v1485_v30 = vmax.f32 %v1287_v61, 0.0  ;;  %4713 = vmatpush3.bf16.msra.mxu0 %v4986_v22 }
 0x220   : > { %v1483_v53 = vmax.f32 %v1279_v49, 0.0 }
 0x221   : > { %v1539_v17 = vpack.c.bf16 %v1485_v30, %v1484_v12 }
 0x222   : > { %v1538_v33 = vpack.c.bf16 %v1483_v53, %v1482_v52 }
 0x224   : > { %4650 = vmatprep.mubr.bf16.mxu1 %v1538_v33 }
 0x225   : > { %4651 = vmatmul.mubr.bf16.gmra.mrb[112].mxu1 %v1539_v17 }
 0x22a   : > { %v4576_v41 = vpop.f32.mrb[52].mxu1 }
 0x22b   : > { %v1300_v63 = vadd.f32 %v4576_v41, %v5556_v60  ;;  %v1291_v6 = vpop.f32.mrb[53].mxu1 }
 0x22c   : > { %v1292_v46 = vadd.f32 %v5556_v60, %v1291_v6  ;;  %v4577_v15 = vpop.f32.mrb[54].mxu1 }
 0x22d   : > { %v1303_v29 = vadd.f32 %v4577_v15, %v5556_v60  ;;  %v1294_v59 = vpop.f32.mrb[55].mxu1  ;;  %v1488_v16 = vmax.f32 %v1300_v63, 0.0 }
 0x22e   : > { %v1295_v45 = vadd.f32 %v5556_v60, %v1294_v59  ;;  %v1486_v61 = vmax.f32 %v1292_v46, 0.0 }
 0x22f   : > { %v1489_v51 = vmax.f32 %v1303_v29, 0.0 }
 0x230   : > { %v1487_v34 = vmax.f32 %v1295_v45, 0.0 }
 0x231   : > { %v1541_v49 = vpack.c.bf16 %v1489_v51, %v1488_v16 }
 0x232   : > { %v1540_v12 = vpack.c.bf16 %v1487_v34, %v1486_v61 }
 0x234   : > { %4654 = vmatprep.mubr.bf16.mxu1 %v1540_v12 }
 0x235   : > { %4655 = vmatmul.mubr.bf16.gmra.mrb[116].mxu1 %v1541_v49 }
 0x23a   : > { %v4580_v30 = vpop.f32.mrb[56].mxu1 }
 0x23b   : > { %v1316_v52 = vadd.f32 %v4580_v30, %v5556_v60  ;;  %v1307_v53 = vpop.f32.mrb[57].mxu1 }
 0x23c   : > { %v1308_v17 = vadd.f32 %v5556_v60, %v1307_v53  ;;  %v4581_v33 = vpop.f32.mrb[58].mxu1 }
 0x23d   : > { %v1319_v41 = vadd.f32 %v4581_v33, %v5556_v60  ;;  %v1310_v6 = vpop.f32.mrb[59].mxu1  ;;  %v1492_v15 = vmax.f32 %v1316_v52, 0.0 }
 0x23e   : > { %v1311_v63 = vadd.f32 %v5556_v60, %v1310_v6  ;;  %v1490_v29 = vmax.f32 %v1308_v17, 0.0 }
 0x23f   : > { %v1493_v46 = vmax.f32 %v1319_v41, 0.0 }
 0x240   : > { %v1491_v59 = vmax.f32 %v1311_v63, 0.0 }
 0x241   : > { %v1543_v22 = vpack.c.bf16 %v1493_v46, %v1492_v15 }
 0x242   : > { %v1542_v45 = vpack.c.bf16 %v1491_v59, %v1490_v29 }
 0x244   : > { %4658 = vmatprep.mubr.bf16.mxu1 %v1542_v45 }
 0x245   : > { %4659 = vmatmul.mubr.bf16.gmra.mrb[120].mxu1 %v1543_v22 }
 0x24a   : > { %v4584_v16 = vpop.f32.mrb[60].mxu1 }
 0x24b   : > { %v1332_v51 = vadd.f32 %v4584_v16, %v5556_v60  ;;  %v1323_v61 = vpop.f32.mrb[61].mxu1 }
 0x24c   : > { %v1324_v34 = vadd.f32 %v5556_v60, %v1323_v61  ;;  %v4585_v49 = vpop.f32.mrb[62].mxu1 }
 0x24d   : > { %v1335_v12 = vadd.f32 %v4585_v49, %v5556_v60  ;;  %v1326_v30 = vpop.f32.mrb[63].mxu1  ;;  %v1496_v52 = vmax.f32 %v1332_v51, 0.0 }
 0x24e   : > { %v1327_v53 = vadd.f32 %v5556_v60, %v1326_v30  ;;  %v1494_v17 = vmax.f32 %v1324_v34, 0.0 }
 0x24f   : > { %v1497_v33 = vmax.f32 %v1335_v12, 0.0 }
 0x250   : > { %v1495_v41 = vmax.f32 %v1327_v53, 0.0 }
 0x251   : > { %v1545_v6 = vpack.c.bf16 %v1497_v33, %v1496_v52 }
 0x252   : > { %v1544_v63 = vpack.c.bf16 %v1495_v41, %v1494_v17 }
 0x254   : > { %4662 = vmatprep.mubr.bf16.mxu1 %v1544_v63 }
 0x255   : > { %4663 = vmatmul.mubr.bf16.gmra.mrb[124].mxu1 %v1545_v6 }
 0x25a   : > { %v4588_v15 = vpop.f32.mrb[64].mxu1 }
 0x25b   : > { %v1348_v46 = vadd.f32 %v4588_v15, %v5556_v60  ;;  %v1339_v29 = vpop.f32.mrb[65].mxu1 }
 0x25c   : > { %v1340_v59 = vadd.f32 %v5556_v60, %v1339_v29  ;;  %v4589_v22 = vpop.f32.mrb[66].mxu1 }
 0x25d   : > { %v1351_v45 = vadd.f32 %v4589_v22, %v5556_v60  ;;  %v1342_v16 = vpop.f32.mrb[67].mxu1  ;;  %v1500_v51 = vmax.f32 %v1348_v46, 0.0 }
 0x25e   : > { %v1343_v61 = vadd.f32 %v5556_v60, %v1342_v16  ;;  %v1498_v34 = vmax.f32 %v1340_v59, 0.0 }
 0x25f   : > { %v1501_v49 = vmax.f32 %v1351_v45, 0.0 }
 0x260   : > { %v1499_v12 = vmax.f32 %v1343_v61, 0.0 }
 0x261   : > { %v1547_v30 = vpack.c.bf16 %v1501_v49, %v1500_v51 }
 0x262   : > { %v1546_v53 = vpack.c.bf16 %v1499_v12, %v1498_v34 }
 0x264   : > { %4666 = vmatprep.mubr.bf16.mxu1 %v1546_v53 }
 0x265   : > { %4667 = vmatmul.mubr.bf16.gmra.mrb[128].mxu1 %v1547_v30 }
 0x26a   : > { %v4592_v52 = vpop.f32.mrb[68].mxu1 }
 0x26b   : > { %v1364_v33 = vadd.f32 %v4592_v52, %v5556_v60  ;;  %v1355_v17 = vpop.f32.mrb[69].mxu1 }
 0x26c   : > { %v1356_v41 = vadd.f32 %v5556_v60, %v1355_v17  ;;  %v4593_v6 = vpop.f32.mrb[70].mxu1 }
 0x26d   : > { %v1367_v63 = vadd.f32 %v4593_v6, %v5556_v60  ;;  %v1358_v15 = vpop.f32.mrb[71].mxu1  ;;  %v1504_v46 = vmax.f32 %v1364_v33, 0.0 }
 0x26e   : > { %v1359_v29 = vadd.f32 %v5556_v60, %v1358_v15  ;;  %v1502_v59 = vmax.f32 %v1356_v41, 0.0 }
 0x26f   : > { %v1505_v22 = vmax.f32 %v1367_v63, 0.0 }
 0x270   : > { %v1503_v45 = vmax.f32 %v1359_v29, 0.0 }
 0x271   : > { %v1549_v16 = vpack.c.bf16 %v1505_v22, %v1504_v46 }
 0x272   : > { %v1548_v61 = vpack.c.bf16 %v1503_v45, %v1502_v59 }
 0x274   : > { %4670 = vmatprep.mubr.bf16.mxu1 %v1548_v61 }
 0x275   : > { %4671 = vmatmul.mubr.bf16.gmra.mrb[132].mxu1 %v1549_v16 }
 0x27a   : > { %v4596_v51 = vpop.f32.mrb[72].mxu1 }
 0x27b   : > { %v1380_v49 = vadd.f32 %v4596_v51, %v5556_v60  ;;  %v1371_v34 = vpop.f32.mrb[73].mxu1 }
 0x27c   : > { %v1372_v12 = vadd.f32 %v5556_v60, %v1371_v34  ;;  %v4597_v30 = vpop.f32.mrb[74].mxu1 }
 0x27d   : > { %v1383_v53 = vadd.f32 %v4597_v30, %v5556_v60  ;;  %v1374_v52 = vpop.f32.mrb[75].mxu1  ;;  %v1508_v33 = vmax.f32 %v1380_v49, 0.0 }
 0x27e   : > { %v1375_v17 = vadd.f32 %v5556_v60, %v1374_v52  ;;  %v1506_v41 = vmax.f32 %v1372_v12, 0.0 }
 0x27f   : > { %v1509_v6 = vmax.f32 %v1383_v53, 0.0 }
 0x280   : > { %v1507_v63 = vmax.f32 %v1375_v17, 0.0 }
 0x281   : > { %v1551_v15 = vpack.c.bf16 %v1509_v6, %v1508_v33 }
 0x282   : > { %v1550_v29 = vpack.c.bf16 %v1507_v63, %v1506_v41 }
 0x284   : > { %4674 = vmatprep.mubr.bf16.mxu1 %v1550_v29 }
 0x285   : > { %4675 = vmatmul.mubr.bf16.gmra.mrb[136].mxu1 %v1551_v15 }
 0x28a   : > { %v4600_v46 = vpop.f32.mrb[76].mxu1 }
 0x28b   : > { %v1396_v22 = vadd.f32 %v4600_v46, %v5556_v60  ;;  %v1387_v59 = vpop.f32.mrb[77].mxu1 }
 0x28c   : > { %v1388_v45 = vadd.f32 %v5556_v60, %v1387_v59  ;;  %v4601_v16 = vpop.f32.mrb[78].mxu1 }
 0x28d   : > { %v1399_v61 = vadd.f32 %v4601_v16, %v5556_v60  ;;  %v1390_v51 = vpop.f32.mrb[79].mxu1  ;;  %v1512_v49 = vmax.f32 %v1396_v22, 0.0 }
 0x28e   : > { %v1391_v34 = vadd.f32 %v5556_v60, %v1390_v51  ;;  %v1510_v12 = vmax.f32 %v1388_v45, 0.0 }
 0x28f   : > { %v1513_v30 = vmax.f32 %v1399_v61, 0.0 }
 0x290   : > { %v1511_v53 = vmax.f32 %v1391_v34, 0.0 }
 0x291   : > { %v1553_v52 = vpack.c.bf16 %v1513_v30, %v1512_v49 }
 0x292   : > { %v1552_v17 = vpack.c.bf16 %v1511_v53, %v1510_v12  ;;  %v4604_v33 = vpop.f32.mrb[80].mxu1 }
 0x293   : > { %v1412_v6 = vadd.f32 %v4604_v33, %v5556_v60  ;;  %v1403_v41 = vpop.f32.mrb[81].mxu1 }
 0x294   : > { %v1404_v63 = vadd.f32 %v5556_v60, %v1403_v41  ;;  %v4605_v15 = vpop.f32.mrb[82].mxu1  ;;  %4678 = vmatprep.mubr.bf16.mxu1 %v1552_v17 }
 0x295   : > { %v1415_v29 = vadd.f32 %v4605_v15, %v5556_v60  ;;  %v1406_v46 = vpop.f32.mrb[83].mxu1  ;;  %4679 = vmatmul.mubr.bf16.gmra.mrb[140].mxu1 %v1553_v52  ;;  %v1516_v22 = vmax.f32 %v1412_v6, 0.0 }
 0x296   : > { %v1407_v59 = vadd.f32 %v5556_v60, %v1406_v46  ;;  %v1514_v45 = vmax.f32 %v1404_v63, 0.0  ;;  %v4987_v46 = vld [vmem:[%s6674_s5] ss:$8 sps:$4 sm:$0xff]  }
 0x297   : > { %v1517_v16 = vmax.f32 %v1415_v29, 0.0 }
 0x298   : > { %v1515_v61 = vmax.f32 %v1407_v59, 0.0  ;;  %v4989_v59 = vld [vmem:[%s6674_s5 + $0x4] ss:$8 sps:$4 sm:$0xff]  }
 0x299   : > { %v1555_v51 = vpack.c.bf16 %v1517_v16, %v1516_v22  ;;  %2586 = vmatprep.subr.bf16.mxu1 %v4989_v59 }
 0x29a   : > { %v1554_v34 = vpack.c.bf16 %v1515_v61, %v1514_v45  ;;  %v4608_v49 = vpop.f32.mrb[84].mxu1  ;;  %2587 = vmatpush1.bf16.msra.mxu1 %v4987_v46 }
 0x29b   : > { %v1428_v30 = vadd.f32 %v4608_v49, %v5556_v60  ;;  %v1419_v12 = vpop.f32.mrb[85].mxu1 }
 0x29c   : > { %v1420_v53 = vadd.f32 %v5556_v60, %v1419_v12  ;;  %v4609_v33 = vpop.f32.mrb[86].mxu1  ;;  %4682 = vmatprep.mubr.bf16.mxu1 %v1554_v34 }
 0x29d   : > { %v1431_v17 = vadd.f32 %v4609_v33, %v5556_v60  ;;  %v1422_v41 = vpop.f32.mrb[87].mxu1  ;;  %4683 = vmatmul.mubr.bf16.gmra.mrb[144].mxu1 %v1555_v51  ;;  %v1520_v6 = vmax.f32 %v1428_v30, 0.0 }
 0x29e   : > { %v1423_v52 = vadd.f32 %v5556_v60, %v1422_v41  ;;  %v1518_v63 = vmax.f32 %v1420_v53, 0.0 }
 0x29f   : > { %v1521_v15 = vmax.f32 %v1431_v17, 0.0 }
 0x2a0   : > { %v1519_v29 = vmax.f32 %v1423_v52, 0.0 }
 0x2a1   : > { %v1557_v22 = vpack.c.bf16 %v1521_v15, %v1520_v6 }
 0x2a2   : > { %v1556_v16 = vpack.c.bf16 %v1519_v29, %v1518_v63  ;;  %v4612_v45 = vpop.f32.mrb[88].mxu1 }
 0x2a3   : > { %v1444_v61 = vadd.f32 %v4612_v45, %v5556_v60  ;;  %v1435_v51 = vpop.f32.mrb[89].mxu1 }
 0x2a4   : > { %v1436_v34 = vadd.f32 %v5556_v60, %v1435_v51  ;;  %v4613_v49 = vpop.f32.mrb[90].mxu1  ;;  %4686 = vmatprep.mubr.bf16.mxu1 %v1556_v16 }
 0x2a5   : > { %v1447_v30 = vadd.f32 %v4613_v49, %v5556_v60  ;;  %v1438_v12 = vpop.f32.mrb[91].mxu1  ;;  %4687 = vmatmul.mubr.bf16.gmra.mrb[148].mxu1 %v1557_v22  ;;  %v1524_v33 = vmax.f32 %v1444_v61, 0.0 }
 0x2a6   : > { %v1439_v53 = vadd.f32 %v5556_v60, %v1438_v12  ;;  %v1522_v41 = vmax.f32 %v1436_v34, 0.0  ;;  %v4990_v12 = vld [vmem:[%s6674_s5 + $0x10] ss:$8 sps:$4 sm:$0xff]  }
 0x2a7   : > { %v1525_v17 = vmax.f32 %v1447_v30, 0.0 }
 0x2a8   : > { %v1523_v52 = vmax.f32 %v1439_v53, 0.0  ;;  %v4992_v53 = vld [vmem:[%s6674_s5 + $0x14] ss:$8 sps:$4 sm:$0xff]  }
 0x2a9   : > { %v1559_v6 = vpack.c.bf16 %v1525_v17, %v1524_v33  ;;  %2588 = vmatprep.subr.bf16.mxu1 %v4992_v53 }
 0x2aa   : > { %v1558_v15 = vpack.c.bf16 %v1523_v52, %v1522_v41  ;;  %v4616_v63 = vpop.f32.mrb[92].mxu1  ;;  %2589 = vmatpush1.bf16.msra.mxu1 %v4990_v12  ;;  %v6709_v41 = vmov 0   ;;  %v4995_v12 = vld [vmem:[%s6674_s5 + $0x24] ss:$8 sps:$4 sm:$0xff]  }
 0x2ab   : > { %v1460_v29 = vadd.f32 %v4616_v63, %v5556_v60  ;;  %v1451_v46 = vpop.f32.mrb[93].mxu1  ;;  %2590 = vmatprep.subr.bf16.mxu1 %v4995_v12 }
 0x2ac   : > { %v1452_v59 = vadd.f32 %v5556_v60, %v1451_v46  ;;  %v4617_v45 = vpop.f32.mrb[94].mxu1  ;;  %4690 = vmatprep.mubr.bf16.mxu1 %v1558_v15 }
 0x2ad   : > { %v1528_v16 = vmax.f32 %v1460_v29, 0.0  ;;  %v1463_v51 = vadd.f32 %v4617_v45, %v5556_v60  ;;  %v1454_v22 = vpop.f32.mrb[95].mxu1  ;;  %4691 = vmatmul.mubr.bf16.gmra.mrb[152].mxu1 %v1559_v6 }
 0x2ae   : > { %v1526_v49 = vmax.f32 %v1452_v59, 0.0  ;;  %v1455_v61 = vadd.f32 %v5556_v60, %v1454_v22  ;;  %v5649_v60 = vld [vmem:[%s6673_s4 + $0x1] ss:$0 sm:$0xff] }
 0x2af   : > { %v1529_v34 = vmax.f32 %v1463_v51, 0.0 }
 0x2b0   : > { %v1527_v30 = vmax.f32 %v1455_v61, 0.0 }
 0x2b1   : > { %v1561_v33 = vpack.c.bf16 %v1529_v34, %v1528_v16 }
 0x2b2   : > { %v1560_v17 = vpack.c.bf16 %v1527_v30, %v1526_v49  ;;  %v4993_v30 = vld [vmem:[%s6674_s5 + $0x20] ss:$8 sps:$4 sm:$0xff]  }
 0x2b3   : > { %2591 = vmatpush1.bf16.msra.mxu1 %v4993_v30 }
 0x2b4   : > { %4694 = vmatprep.mubr.bf16.mxu1 %v1560_v17 }
 0x2b5   : > { %4695 = vmatmul.mubr.bf16.gmra.mrb[156].mxu1 %v1561_v33 }
 0x2b6   : > { %2618 = vmatprep.mubr.bf16.mxu1 %v6709_v41 }
 0x2b8   : > { %v4636_v52 = vpop.f32.mrb[96].mxu1 }
 0x2b9   : > { %v1678_v6 = vadd.f32 %v4636_v52, %v5649_v60  ;;  %v1669_v15 = vpop.f32.mrb[97].mxu1 }
 0x2ba   : > { %v1670_v63 = vadd.f32 %v5649_v60, %v1669_v15  ;;  %v4637_v29 = vpop.f32.mrb[98].mxu1 }
 0x2bb   : > { %v1681_v46 = vadd.f32 %v4637_v29, %v5649_v60  ;;  %v1672_v59 = vpop.f32.mrb[99].mxu1  ;;  %v1926_v16 = vmax.f32 %v1678_v6, 0.0 }
 0x2bc   : > { %v1673_v45 = vadd.f32 %v5649_v60, %v1672_v59  ;;  %v1924_v22 = vmax.f32 %v1670_v63, 0.0 }
 0x2bd   : > { %v1927_v51 = vmax.f32 %v1681_v46, 0.0 }
 0x2be   : > { %v1925_v49 = vmax.f32 %v1673_v45, 0.0 }
 0x2bf   : > { %v1989_v61 = vpack.c.bf16 %v1927_v51, %v1926_v16 }
 0x2c0   : > { %v1988_v34 = vpack.c.bf16 %v1925_v49, %v1924_v22  ;;  %v4996_v49 = vld [vmem:[%s6674_s5 + $0x30] ss:$8 sps:$4 sm:$0xff]  }
 0x2c2   : > { %4714 = vmatprep.mubr.bf16.mxu0 %v1988_v34 }
 0x2c3   : > { %4715 = vmatmul.mubr.bf16.vlgmr.msra.gmra.mrb[96].mxu0 %v1989_v61  ;;  %v4998_v61 = vld [vmem:[%s6674_s5 + $0x34] ss:$8 sps:$4 sm:$0xff]  }
 0x2c4   : > { %2592 = vmatprep.subr.bf16.mxu1 %v4998_v61 }
 0x2c5   : > { %2593 = vmatpush1.bf16.msra.mxu1 %v4996_v49 }
 0x2c8   : > { %v4640_v53 = vpop.f32.mrb[100].mxu1 }
 0x2c9   : > { %v1694_v33 = vadd.f32 %v4640_v53, %v5649_v60  ;;  %v1685_v17 = vpop.f32.mrb[101].mxu1 }
 0x2ca   : > { %v1686_v52 = vadd.f32 %v5649_v60, %v1685_v17  ;;  %v4641_v6 = vpop.f32.mrb[102].mxu1 }
 0x2cb   : > { %v1697_v15 = vadd.f32 %v4641_v6, %v5649_v60  ;;  %v1688_v63 = vpop.f32.mrb[103].mxu1  ;;  %v1930_v46 = vmax.f32 %v1694_v33, 0.0 }
 0x2cc   : > { %v1689_v29 = vadd.f32 %v5649_v60, %v1688_v63  ;;  %v1928_v45 = vmax.f32 %v1686_v52, 0.0 }
 0x2cd   : > { %v1931_v59 = vmax.f32 %v1697_v15, 0.0 }
 0x2ce   : > { %v1929_v16 = vmax.f32 %v1689_v29, 0.0 }
 0x2cf   : > { %v1991_v51 = vpack.c.bf16 %v1931_v59, %v1930_v46 }
 0x2d0   : > { %v1990_v22 = vpack.c.bf16 %v1929_v16, %v1928_v45  ;;  %v4999_v16 = vld [vmem:[%s6674_s5 + $0x40] ss:$8 sps:$4 sm:$0xff]  }
 0x2d2   : > { %4718 = vmatprep.mubr.bf16.mxu0 %v1990_v22 }
 0x2d3   : > { %4719 = vmatmul.mubr.bf16.gmra.mrb[100].mxu0 %v1991_v51  ;;  %v5001_v51 = vld [vmem:[%s6674_s5 + $0x44] ss:$8 sps:$4 sm:$0xff]  }
 0x2d4   : > { %2594 = vmatprep.subr.bf16.mxu1 %v5001_v51 }
 0x2d5   : > { %2595 = vmatpush1.bf16.msra.mxu1 %v4999_v16 }
 0x2d8   : > { %v4644_v34 = vpop.f32.mrb[104].mxu1 }
 0x2d9   : > { %v1710_v30 = vadd.f32 %v4644_v34, %v5649_v60  ;;  %v1701_v12 = vpop.f32.mrb[105].mxu1 }
 0x2da   : > { %v1702_v53 = vadd.f32 %v5649_v60, %v1701_v12  ;;  %v4645_v33 = vpop.f32.mrb[106].mxu1 }
 0x2db   : > { %v1713_v17 = vadd.f32 %v4645_v33, %v5649_v60  ;;  %v1704_v52 = vpop.f32.mrb[107].mxu1  ;;  %v1934_v15 = vmax.f32 %v1710_v30, 0.0 }
 0x2dc   : > { %v1705_v6 = vadd.f32 %v5649_v60, %v1704_v52  ;;  %v1932_v29 = vmax.f32 %v1702_v53, 0.0 }
 0x2dd   : > { %v1935_v63 = vmax.f32 %v1713_v17, 0.0 }
 0x2de   : > { %v1933_v46 = vmax.f32 %v1705_v6, 0.0 }
 0x2df   : > { %v1993_v59 = vpack.c.bf16 %v1935_v63, %v1934_v15 }
 0x2e0   : > { %v1992_v45 = vpack.c.bf16 %v1933_v46, %v1932_v29  ;;  %v5002_v46 = vld [vmem:[%s6674_s5 + $0x50] ss:$8 sps:$4 sm:$0xff]  }
 0x2e2   : > { %4722 = vmatprep.mubr.bf16.mxu0 %v1992_v45 }
 0x2e3   : > { %4723 = vmatmul.mubr.bf16.gmra.mrb[104].mxu0 %v1993_v59  ;;  %v5004_v59 = vld [vmem:[%s6674_s5 + $0x54] ss:$8 sps:$4 sm:$0xff]  }
 0x2e4   : > { %2596 = vmatprep.subr.bf16.mxu1 %v5004_v59 }
 0x2e5   : > { %2597 = vmatpush1.bf16.msra.mxu1 %v5002_v46 }
 0x2e8   : > { %v4648_v22 = vpop.f32.mrb[108].mxu1 }
 0x2e9   : > { %v1726_v49 = vadd.f32 %v4648_v22, %v5649_v60  ;;  %v1717_v61 = vpop.f32.mrb[109].mxu1 }
 0x2ea   : > { %v1718_v34 = vadd.f32 %v5649_v60, %v1717_v61  ;;  %v4649_v30 = vpop.f32.mrb[110].mxu1 }
 0x2eb   : > { %v1729_v12 = vadd.f32 %v4649_v30, %v5649_v60  ;;  %v1720_v53 = vpop.f32.mrb[111].mxu1  ;;  %v1938_v17 = vmax.f32 %v1726_v49, 0.0 }
 0x2ec   : > { %v1721_v33 = vadd.f32 %v5649_v60, %v1720_v53  ;;  %v1936_v6 = vmax.f32 %v1718_v34, 0.0 }
 0x2ed   : > { %v1939_v52 = vmax.f32 %v1729_v12, 0.0 }
 0x2ee   : > { %v1937_v15 = vmax.f32 %v1721_v33, 0.0 }
 0x2ef   : > { %v1995_v63 = vpack.c.bf16 %v1939_v52, %v1938_v17 }
 0x2f0   : > { %v1994_v29 = vpack.c.bf16 %v1937_v15, %v1936_v6  ;;  %v5005_v15 = vld [vmem:[%s6674_s5 + $0x60] ss:$8 sps:$4 sm:$0xff]  }
 0x2f2   : > { %4726 = vmatprep.mubr.bf16.mxu0 %v1994_v29 }
 0x2f3   : > { %4727 = vmatmul.mubr.bf16.gmra.mrb[108].mxu0 %v1995_v63  ;;  %v5007_v63 = vld [vmem:[%s6674_s5 + $0x64] ss:$8 sps:$4 sm:$0xff]  }
 0x2f4   : > { %2598 = vmatprep.subr.bf16.mxu1 %v5007_v63 }
 0x2f5   : > { %2599 = vmatpush1.bf16.msra.mxu1 %v5005_v15 }
 0x2f8   : > { %v4652_v45 = vpop.f32.mrb[112].mxu1 }
 0x2f9   : > { %v1742_v16 = vadd.f32 %v4652_v45, %v5649_v60  ;;  %v1733_v51 = vpop.f32.mrb[113].mxu1 }
 0x2fa   : > { %v1734_v22 = vadd.f32 %v5649_v60, %v1733_v51  ;;  %v4653_v49 = vpop.f32.mrb[114].mxu1 }
 0x2fb   : > { %v1745_v61 = vadd.f32 %v4653_v49, %v5649_v60  ;;  %v1736_v34 = vpop.f32.mrb[115].mxu1  ;;  %v1942_v12 = vmax.f32 %v1742_v16, 0.0 }
 0x2fc   : > { %v1737_v30 = vadd.f32 %v5649_v60, %v1736_v34  ;;  %v1940_v33 = vmax.f32 %v1734_v22, 0.0 }
 0x2fd   : > { %v1943_v53 = vmax.f32 %v1745_v61, 0.0 }
 0x2fe   : > { %v1941_v17 = vmax.f32 %v1737_v30, 0.0 }
 0x2ff   : > { %v1997_v52 = vpack.c.bf16 %v1943_v53, %v1942_v12 }
 0x300   : > { %v1996_v6 = vpack.c.bf16 %v1941_v17, %v1940_v33  ;;  %v5008_v17 = vld [vmem:[%s6674_s5 + $0x70] ss:$8 sps:$4 sm:$0xff]  }
 0x302   : > { %4730 = vmatprep.mubr.bf16.mxu0 %v1996_v6 }
 0x303   : > { %4731 = vmatmul.mubr.bf16.gmra.mrb[112].mxu0 %v1997_v52  ;;  %v5010_v52 = vld [vmem:[%s6674_s5 + $0x74] ss:$8 sps:$4 sm:$0xff]  }
 0x304   : > { %2600 = vmatprep.subr.bf16.mxu1 %v5010_v52 }
 0x305   : > { %2601 = vmatpush1.bf16.msra.mxu1 %v5008_v17 }
 0x308   : > { %v4656_v29 = vpop.f32.mrb[116].mxu1 }
 0x309   : > { %v1758_v46 = vadd.f32 %v4656_v29, %v5649_v60  ;;  %v1749_v59 = vpop.f32.mrb[117].mxu1 }
 0x30a   : > { %v1750_v45 = vadd.f32 %v5649_v60, %v1749_v59  ;;  %v4657_v16 = vpop.f32.mrb[118].mxu1 }
 0x30b   : > { %v1761_v51 = vadd.f32 %v4657_v16, %v5649_v60  ;;  %v1752_v22 = vpop.f32.mrb[119].mxu1  ;;  %v1946_v61 = vmax.f32 %v1758_v46, 0.0 }
 0x30c   : > { %v1753_v49 = vadd.f32 %v5649_v60, %v1752_v22  ;;  %v1944_v30 = vmax.f32 %v1750_v45, 0.0 }
 0x30d   : > { %v1947_v34 = vmax.f32 %v1761_v51, 0.0 }
 0x30e   : > { %v1945_v12 = vmax.f32 %v1753_v49, 0.0 }
 0x30f   : > { %v1999_v53 = vpack.c.bf16 %v1947_v34, %v1946_v61 }
 0x310   : > { %v1998_v33 = vpack.c.bf16 %v1945_v12, %v1944_v30 }
 0x312   : > { %4734 = vmatprep.mubr.bf16.mxu0 %v1998_v33 }
 0x313   : > { %4735 = vmatmul.mubr.bf16.gmra.mrb[116].mxu0 %v1999_v53 }
 0x318   : > { %v4660_v6 = vpop.f32.mrb[120].mxu1 }
 0x319   : > { %v1774_v15 = vadd.f32 %v4660_v6, %v5649_v60  ;;  %v1765_v63 = vpop.f32.mrb[121].mxu1 }
 0x31a   : > { %v1766_v29 = vadd.f32 %v5649_v60, %v1765_v63  ;;  %v4661_v46 = vpop.f32.mrb[122].mxu1 }
 0x31b   : > { %v1777_v59 = vadd.f32 %v4661_v46, %v5649_v60  ;;  %v1768_v45 = vpop.f32.mrb[123].mxu1  ;;  %v1950_v51 = vmax.f32 %v1774_v15, 0.0 }
 0x31c   : > { %v1769_v16 = vadd.f32 %v5649_v60, %v1768_v45  ;;  %v1948_v49 = vmax.f32 %v1766_v29, 0.0 }
 0x31d   : > { %v1951_v22 = vmax.f32 %v1777_v59, 0.0 }
 0x31e   : > { %v1949_v61 = vmax.f32 %v1769_v16, 0.0 }
 0x31f   : > { %v2001_v34 = vpack.c.bf16 %v1951_v22, %v1950_v51 }
 0x320   : > { %v2000_v30 = vpack.c.bf16 %v1949_v61, %v1948_v49 }
 0x322   : > { %4738 = vmatprep.mubr.bf16.mxu0 %v2000_v30 }
 0x323   : > { %4739 = vmatmul.mubr.bf16.gmra.mrb[120].mxu0 %v2001_v34 }
 0x328   : > { %v4664_v12 = vpop.f32.mrb[124].mxu1 }
 0x329   : > { %v1790_v53 = vadd.f32 %v4664_v12, %v5649_v60  ;;  %v1781_v33 = vpop.f32.mrb[125].mxu1 }
 0x32a   : > { %v1782_v17 = vadd.f32 %v5649_v60, %v1781_v33  ;;  %v4665_v52 = vpop.f32.mrb[126].mxu1 }
 0x32b   : > { %v1793_v6 = vadd.f32 %v4665_v52, %v5649_v60  ;;  %v1784_v63 = vpop.f32.mrb[127].mxu1  ;;  %v1954_v15 = vmax.f32 %v1790_v53, 0.0 }
 0x32c   : > { %v1785_v46 = vadd.f32 %v5649_v60, %v1784_v63  ;;  %v1952_v29 = vmax.f32 %v1782_v17, 0.0 }
 0x32d   : > { %v1955_v59 = vmax.f32 %v1793_v6, 0.0 }
 0x32e   : > { %v1953_v45 = vmax.f32 %v1785_v46, 0.0 }
 0x32f   : > { %v2003_v16 = vpack.c.bf16 %v1955_v59, %v1954_v15 }
 0x330   : > { %v2002_v51 = vpack.c.bf16 %v1953_v45, %v1952_v29 }
 0x332   : > { %4742 = vmatprep.mubr.bf16.mxu0 %v2002_v51 }
 0x333   : > { %4743 = vmatmul.mubr.bf16.gmra.mrb[124].mxu0 %v2003_v16 }
 0x338   : > { %v4668_v22 = vpop.f32.mrb[128].mxu1 }
 0x339   : > { %v1806_v49 = vadd.f32 %v4668_v22, %v5649_v60  ;;  %v1797_v61 = vpop.f32.mrb[129].mxu1 }
 0x33a   : > { %v1798_v34 = vadd.f32 %v5649_v60, %v1797_v61  ;;  %v4669_v30 = vpop.f32.mrb[130].mxu1 }
 0x33b   : > { %v1809_v12 = vadd.f32 %v4669_v30, %v5649_v60  ;;  %v1800_v33 = vpop.f32.mrb[131].mxu1  ;;  %v1958_v53 = vmax.f32 %v1806_v49, 0.0 }
 0x33c   : > { %v1801_v52 = vadd.f32 %v5649_v60, %v1800_v33  ;;  %v1956_v17 = vmax.f32 %v1798_v34, 0.0 }
 0x33d   : > { %v1959_v6 = vmax.f32 %v1809_v12, 0.0 }
 0x33e   : > { %v1957_v63 = vmax.f32 %v1801_v52, 0.0 }
 0x33f   : > { %v2005_v46 = vpack.c.bf16 %v1959_v6, %v1958_v53 }
 0x340   : > { %v2004_v15 = vpack.c.bf16 %v1957_v63, %v1956_v17 }
 0x342   : > { %4746 = vmatprep.mubr.bf16.mxu0 %v2004_v15 }
 0x343   : > { %4747 = vmatmul.mubr.bf16.gmra.mrb[128].mxu0 %v2005_v46 }
 0x348   : > { %v4672_v59 = vpop.f32.mrb[132].mxu1 }
 0x349   : > { %v1822_v29 = vadd.f32 %v4672_v59, %v5649_v60  ;;  %v1813_v45 = vpop.f32.mrb[133].mxu1 }
 0x34a   : > { %v1814_v16 = vadd.f32 %v5649_v60, %v1813_v45  ;;  %v4673_v51 = vpop.f32.mrb[134].mxu1 }
 0x34b   : > { %v1825_v22 = vadd.f32 %v4673_v51, %v5649_v60  ;;  %v1816_v61 = vpop.f32.mrb[135].mxu1  ;;  %v1962_v49 = vmax.f32 %v1822_v29, 0.0 }
 0x34c   : > { %v1817_v30 = vadd.f32 %v5649_v60, %v1816_v61  ;;  %v1960_v34 = vmax.f32 %v1814_v16, 0.0 }
 0x34d   : > { %v1963_v12 = vmax.f32 %v1825_v22, 0.0 }
 0x34e   : > { %v1961_v33 = vmax.f32 %v1817_v30, 0.0 }
 0x34f   : > { %v2007_v52 = vpack.c.bf16 %v1963_v12, %v1962_v49 }
 0x350   : > { %v2006_v53 = vpack.c.bf16 %v1961_v33, %v1960_v34 }
 0x352   : > { %4750 = vmatprep.mubr.bf16.mxu0 %v2006_v53 }
 0x353   : > { %4751 = vmatmul.mubr.bf16.gmra.mrb[132].mxu0 %v2007_v52 }
 0x358   : > { %v4676_v6 = vpop.f32.mrb[136].mxu1 }
 0x359   : > { %v1838_v17 = vadd.f32 %v4676_v6, %v5649_v60  ;;  %v1829_v63 = vpop.f32.mrb[137].mxu1 }
 0x35a   : > { %v1830_v46 = vadd.f32 %v5649_v60, %v1829_v63  ;;  %v4677_v15 = vpop.f32.mrb[138].mxu1 }
 0x35b   : > { %v1841_v59 = vadd.f32 %v4677_v15, %v5649_v60  ;;  %v1832_v45 = vpop.f32.mrb[139].mxu1  ;;  %v1966_v29 = vmax.f32 %v1838_v17, 0.0 }
 0x35c   : > { %v1833_v51 = vadd.f32 %v5649_v60, %v1832_v45  ;;  %v1964_v16 = vmax.f32 %v1830_v46, 0.0 }
 0x35d   : > { %v1967_v22 = vmax.f32 %v1841_v59, 0.0 }
 0x35e   : > { %v1965_v61 = vmax.f32 %v1833_v51, 0.0 }
 0x35f   : > { %v2009_v30 = vpack.c.bf16 %v1967_v22, %v1966_v29 }
 0x360   : > { %v2008_v49 = vpack.c.bf16 %v1965_v61, %v1964_v16 }
 0x362   : > { %4754 = vmatprep.mubr.bf16.mxu0 %v2008_v49 }
 0x363   : > { %4755 = vmatmul.mubr.bf16.gmra.mrb[136].mxu0 %v2009_v30 }
 0x368   : > { %v4680_v12 = vpop.f32.mrb[140].mxu1 }
 0x369   : > { %v1854_v34 = vadd.f32 %v4680_v12, %v5649_v60  ;;  %v1845_v33 = vpop.f32.mrb[141].mxu1 }
 0x36a   : > { %v1846_v52 = vadd.f32 %v5649_v60, %v1845_v33  ;;  %v4681_v53 = vpop.f32.mrb[142].mxu1 }
 0x36b   : > { %v1857_v6 = vadd.f32 %v4681_v53, %v5649_v60  ;;  %v1848_v63 = vpop.f32.mrb[143].mxu1  ;;  %v1970_v17 = vmax.f32 %v1854_v34, 0.0 }
 0x36c   : > { %v1849_v15 = vadd.f32 %v5649_v60, %v1848_v63  ;;  %v1968_v46 = vmax.f32 %v1846_v52, 0.0 }
 0x36d   : > { %v1971_v59 = vmax.f32 %v1857_v6, 0.0 }
 0x36e   : > { %v1969_v45 = vmax.f32 %v1849_v15, 0.0 }
 0x36f   : > { %v2011_v51 = vpack.c.bf16 %v1971_v59, %v1970_v17 }
 0x370   : > { %v2010_v29 = vpack.c.bf16 %v1969_v45, %v1968_v46  ;;  %v4684_v22 = vpop.f32.mrb[144].mxu1 }
 0x371   : > { %v1870_v16 = vadd.f32 %v4684_v22, %v5649_v60  ;;  %v1861_v61 = vpop.f32.mrb[145].mxu1 }
 0x372   : > { %v1862_v30 = vadd.f32 %v5649_v60, %v1861_v61  ;;  %v4685_v49 = vpop.f32.mrb[146].mxu1  ;;  %4758 = vmatprep.mubr.bf16.mxu0 %v2010_v29 }
 0x373   : > { %v1873_v12 = vadd.f32 %v4685_v49, %v5649_v60  ;;  %v1864_v33 = vpop.f32.mrb[147].mxu1  ;;  %4759 = vmatmul.mubr.bf16.gmra.mrb[140].mxu0 %v2011_v51  ;;  %v1974_v34 = vmax.f32 %v1870_v16, 0.0 }
 0x374   : > { %v1865_v53 = vadd.f32 %v5649_v60, %v1864_v33  ;;  %v1972_v52 = vmax.f32 %v1862_v30, 0.0 }
 0x375   : > { %v1975_v6 = vmax.f32 %v1873_v12, 0.0 }
 0x376   : > { %v1973_v63 = vmax.f32 %v1865_v53, 0.0 }
 0x377   : > { %v2013_v15 = vpack.c.bf16 %v1975_v6, %v1974_v34 }
 0x378   : > { %v2012_v17 = vpack.c.bf16 %v1973_v63, %v1972_v52  ;;  %v4688_v59 = vpop.f32.mrb[148].mxu1 }
 0x379   : > { %v1886_v46 = vadd.f32 %v4688_v59, %v5649_v60  ;;  %v1877_v45 = vpop.f32.mrb[149].mxu1 }
 0x37a   : > { %v1878_v22 = vadd.f32 %v5649_v60, %v1877_v45  ;;  %v4689_v61 = vpop.f32.mrb[150].mxu1  ;;  %4762 = vmatprep.mubr.bf16.mxu0 %v2012_v17 }
 0x37b   : > { %v1889_v29 = vadd.f32 %v4689_v61, %v5649_v60  ;;  %v1880_v49 = vpop.f32.mrb[151].mxu1  ;;  %4763 = vmatmul.mubr.bf16.gmra.mrb[144].mxu0 %v2013_v15  ;;  %v1978_v16 = vmax.f32 %v1886_v46, 0.0 }
 0x37c   : > { %v1881_v51 = vadd.f32 %v5649_v60, %v1880_v49  ;;  %v1976_v30 = vmax.f32 %v1878_v22, 0.0 }
 0x37d   : > { %v1979_v12 = vmax.f32 %v1889_v29, 0.0 }
 0x37e   : > { %v1977_v33 = vmax.f32 %v1881_v51, 0.0 }
 0x37f   : > { %v2015_v53 = vpack.c.bf16 %v1979_v12, %v1978_v16 }
 0x380   : > { %v2014_v34 = vpack.c.bf16 %v1977_v33, %v1976_v30  ;;  %v4692_v6 = vpop.f32.mrb[152].mxu1 }
 0x381   : > { %v1902_v52 = vadd.f32 %v4692_v6, %v5649_v60  ;;  %v1893_v63 = vpop.f32.mrb[153].mxu1 }
 0x382   : > { %v1894_v59 = vadd.f32 %v5649_v60, %v1893_v63  ;;  %v4693_v45 = vpop.f32.mrb[154].mxu1  ;;  %4766 = vmatprep.mubr.bf16.mxu0 %v2014_v34 }
 0x383   : > { %v1905_v17 = vadd.f32 %v4693_v45, %v5649_v60  ;;  %v1896_v61 = vpop.f32.mrb[155].mxu1  ;;  %4767 = vmatmul.mubr.bf16.gmra.mrb[148].mxu0 %v2015_v53  ;;  %v1982_v46 = vmax.f32 %v1902_v52, 0.0 }
 0x384   : > { %v1897_v15 = vadd.f32 %v5649_v60, %v1896_v61  ;;  %v1980_v22 = vmax.f32 %v1894_v59, 0.0 }
 0x385   : > { %v1983_v29 = vmax.f32 %v1905_v17, 0.0 }
 0x386   : > { %v1981_v49 = vmax.f32 %v1897_v15, 0.0 }
 0x387   : > { %v2017_v51 = vpack.c.bf16 %v1983_v29, %v1982_v46  ;;  %v5755_v29 = vld [vmem:[%s6673_s4 + $0x2] ss:$0 sm:$0xff] }
 0x388   : > { %v2016_v16 = vpack.c.bf16 %v1981_v49, %v1980_v22  ;;  %v4696_v12 = vpop.f32.mrb[156].mxu1 }
 0x389   : > { %v1918_v30 = vadd.f32 %v4696_v12, %v5649_v60  ;;  %v1909_v33 = vpop.f32.mrb[157].mxu1 }
 0x38a   : > { %v1910_v6 = vadd.f32 %v5649_v60, %v1909_v33  ;;  %v4697_v63 = vpop.f32.mrb[158].mxu1  ;;  %4770 = vmatprep.mubr.bf16.mxu0 %v2016_v16 }
 0x38b   : > { %v1921_v34 = vadd.f32 %v4697_v63, %v5649_v60  ;;  %v1912_v45 = vpop.f32.mrb[159].mxu1  ;;  %4771 = vmatmul.mubr.bf16.gmra.mrb[152].mxu0 %v2017_v51  ;;  %v1986_v52 = vmax.f32 %v1918_v30, 0.0 }
 0x38c   : > { %v1913_v53 = vadd.f32 %v5649_v60, %v1912_v45  ;;  %v1984_v59 = vmax.f32 %v1910_v6, 0.0 }
 0x38d   : > { %v1987_v17 = vmax.f32 %v1921_v34, 0.0 }
 0x38e   : > { %v1985_v61 = vmax.f32 %v1913_v53, 0.0 }
 0x38f   : > { %v2019_v15 = vpack.c.bf16 %v1987_v17, %v1986_v52 }
 0x390   : > { %v2018_v46 = vpack.c.bf16 %v1985_v61, %v1984_v59 }
 0x392   : > { %4774 = vmatprep.mubr.bf16.mxu0 %v2018_v46 }
 0x393   : > { %4775 = vmatmul.mubr.bf16.gmra.mrb[156].mxu0 %v2019_v15 }
 0x396   : > { %v4716_v22 = vpop.f32.mrb[96].mxu0 }
 0x397   : > { %v2136_v49 = vadd.f32 %v4716_v22, %v5755_v29  ;;  %v2127_v16 = vpop.f32.mrb[97].mxu0 }
 0x398   : > { %v2128_v51 = vadd.f32 %v5755_v29, %v2127_v16  ;;  %v4717_v60 = vpop.f32.mrb[98].mxu0 }
 0x399   : > { %v2139_v12 = vadd.f32 %v4717_v60, %v5755_v29  ;;  %v2130_v30 = vpop.f32.mrb[99].mxu0  ;;  %v2384_v6 = vmax.f32 %v2136_v49, 0.0 }
 0x39a   : > { %v2131_v33 = vadd.f32 %v5755_v29, %v2130_v30  ;;  %v2382_v34 = vmax.f32 %v2128_v51, 0.0 }
 0x39b   : > { %v2385_v63 = vmax.f32 %v2139_v12, 0.0 }
 0x39c   : > { %v2383_v45 = vmax.f32 %v2131_v33, 0.0 }
 0x39d   : > { %v2447_v53 = vpack.c.bf16 %v2385_v63, %v2384_v6 }
 0x39e   : > { %v2446_v52 = vpack.c.bf16 %v2383_v45, %v2382_v34 }
 0x3a0   : > { %2619 = vmatmul.mubr.bf16.vlgmr.msra.gmra.mrb[160].mxu1 %v2446_v52 }
 0x3a1   : > { %2628 = vmatprep.mubr.bf16.mxu1 %v6709_v41 }
 0x3a6   : > { %v4720_v17 = vpop.f32.mrb[100].mxu0 }
 0x3a7   : > { %v2152_v59 = vadd.f32 %v4720_v17, %v5755_v29  ;;  %v2143_v61 = vpop.f32.mrb[101].mxu0 }
 0x3a8   : > { %v2144_v15 = vadd.f32 %v5755_v29, %v2143_v61  ;;  %v4721_v46 = vpop.f32.mrb[102].mxu0  ;;  %2629 = vmatmul.mubr.bf16.gmra.mrb[164].mxu1 %v2447_v53 }
 0x3a9   : > { %v2155_v22 = vadd.f32 %v4721_v46, %v5755_v29  ;;  %v2146_v16 = vpop.f32.mrb[103].mxu0  ;;  %2638 = vmatprep.mubr.bf16.mxu1 %v6709_v41  ;;  %v2388_v51 = vmax.f32 %v2152_v59, 0.0 }
 0x3aa   : > { %v2147_v49 = vadd.f32 %v5755_v29, %v2146_v16  ;;  %v2386_v12 = vmax.f32 %v2144_v15, 0.0 }
 0x3ab   : > { %v2389_v60 = vmax.f32 %v2155_v22, 0.0 }
 0x3ac   : > { %v2387_v30 = vmax.f32 %v2147_v49, 0.0 }
 0x3ad   : > { %v2449_v33 = vpack.c.bf16 %v2389_v60, %v2388_v51 }
 0x3ae   : > { %v2448_v6 = vpack.c.bf16 %v2387_v30, %v2386_v12 }
 0x3b0   : > { %2639 = vmatmul.mubr.bf16.gmra.mrb[168].mxu1 %v2448_v6 }
 0x3b1   : > { %2648 = vmatprep.mubr.bf16.mxu1 %v6709_v41 }
 0x3b6   : > { %v4724_v63 = vpop.f32.mrb[104].mxu0 }
 0x3b7   : > { %v2168_v34 = vadd.f32 %v4724_v63, %v5755_v29  ;;  %v2159_v45 = vpop.f32.mrb[105].mxu0 }
 0x3b8   : > { %v2160_v53 = vadd.f32 %v5755_v29, %v2159_v45  ;;  %v4725_v52 = vpop.f32.mrb[106].mxu0  ;;  %2649 = vmatmul.mubr.bf16.gmra.mrb[172].mxu1 %v2449_v33 }
 0x3b9   : > { %v2171_v17 = vadd.f32 %v4725_v52, %v5755_v29  ;;  %v2162_v61 = vpop.f32.mrb[107].mxu0  ;;  %2658 = vmatprep.mubr.bf16.mxu1 %v6709_v41  ;;  %v2392_v15 = vmax.f32 %v2168_v34, 0.0 }
 0x3ba   : > { %v2163_v59 = vadd.f32 %v5755_v29, %v2162_v61  ;;  %v2390_v22 = vmax.f32 %v2160_v53, 0.0 }
 0x3bb   : > { %v2393_v46 = vmax.f32 %v2171_v17, 0.0 }
 0x3bc   : > { %v2391_v16 = vmax.f32 %v2163_v59, 0.0 }
 0x3bd   : > { %v2451_v49 = vpack.c.bf16 %v2393_v46, %v2392_v15 }
 0x3be   : > { %v2450_v51 = vpack.c.bf16 %v2391_v16, %v2390_v22 }
 0x3c0   : > { %2659 = vmatmul.mubr.bf16.gmra.mrb[176].mxu1 %v2450_v51 }
 0x3c1   : > { %2668 = vmatprep.mubr.bf16.mxu1 %v6709_v41 }
 0x3c6   : > { %v4728_v60 = vpop.f32.mrb[108].mxu0 }
 0x3c7   : > { %v2184_v12 = vadd.f32 %v4728_v60, %v5755_v29  ;;  %v2175_v30 = vpop.f32.mrb[109].mxu0 }
 0x3c8   : > { %v2176_v33 = vadd.f32 %v5755_v29, %v2175_v30  ;;  %v4729_v6 = vpop.f32.mrb[110].mxu0  ;;  %2669 = vmatmul.mubr.bf16.gmra.mrb[180].mxu1 %v2451_v49 }
 0x3c9   : > { %v2187_v63 = vadd.f32 %v4729_v6, %v5755_v29  ;;  %v2178_v45 = vpop.f32.mrb[111].mxu0  ;;  %2678 = vmatprep.mubr.bf16.mxu1 %v6709_v41  ;;  %v2396_v53 = vmax.f32 %v2184_v12, 0.0 }
 0x3ca   : > { %v2179_v34 = vadd.f32 %v5755_v29, %v2178_v45  ;;  %v2394_v17 = vmax.f32 %v2176_v33, 0.0 }
 0x3cb   : > { %v2397_v52 = vmax.f32 %v2187_v63, 0.0 }
 0x3cc   : > { %v2395_v61 = vmax.f32 %v2179_v34, 0.0 }
 0x3cd   : > { %v2453_v59 = vpack.c.bf16 %v2397_v52, %v2396_v53  ;;  %v5011_v52 = vld [vmem:[%s6676_s7] sm:$0xff]  }
 0x3ce   : > { %v2452_v15 = vpack.c.bf16 %v2395_v61, %v2394_v17  ;;  %4778 = vmatprep.subr.bf16.mxu0 %v5011_v52  ;;  %v5012_v61 = vld [vmem:[%s6676_s7 + $0x8] sm:$0xff]  }
 0x3cf   : > { %4779 = vmatpush3.bf16.msra.mxu0 %v5011_v52 }
 0x3d0   : > { %2679 = vmatmul.mubr.bf16.gmra.mrb[184].mxu1 %v2452_v15  ;;  %4780 = vmatprep.subr.bf16.mxu0 %v5012_v61 }
 0x3d1   : > { %2688 = vmatprep.mubr.bf16.mxu1 %v6709_v41 }
 0x3d3   : > { %4781 = vmatpush3.bf16.msra.mxu0 %v5012_v61 }
 0x3d6   : > { %v4732_v46 = vpop.f32.mrb[112].mxu0 }
 0x3d7   : > { %v2200_v22 = vadd.f32 %v4732_v46, %v5755_v29  ;;  %v2191_v16 = vpop.f32.mrb[113].mxu0 }
 0x3d8   : > { %v2192_v49 = vadd.f32 %v5755_v29, %v2191_v16  ;;  %v4733_v51 = vpop.f32.mrb[114].mxu0  ;;  %2689 = vmatmul.mubr.bf16.gmra.mrb[188].mxu1 %v2453_v59 }
 0x3d9   : > { %v2203_v60 = vadd.f32 %v4733_v51, %v5755_v29  ;;  %v2194_v30 = vpop.f32.mrb[115].mxu0  ;;  %2698 = vmatprep.mubr.bf16.mxu1 %v6709_v41  ;;  %v2400_v33 = vmax.f32 %v2200_v22, 0.0 }
 0x3da   : > { %v2195_v12 = vadd.f32 %v5755_v29, %v2194_v30  ;;  %v2398_v63 = vmax.f32 %v2192_v49, 0.0 }
 0x3db   : > { %v2401_v6 = vmax.f32 %v2203_v60, 0.0  ;;  %v5013_v60 = vld [vmem:[%s6676_s7 + $0x10] sm:$0xff]  }
 0x3dc   : > { %v2399_v45 = vmax.f32 %v2195_v12, 0.0  ;;  %4782 = vmatprep.subr.bf16.mxu0 %v5013_v60 }
 0x3dd   : > { %v2455_v34 = vpack.c.bf16 %v2401_v6, %v2400_v33  ;;  %4783 = vmatpush3.bf16.msra.mxu0 %v5013_v60 }
 0x3de   : > { %v2454_v53 = vpack.c.bf16 %v2399_v45, %v2398_v63 }
 0x3e0   : > { %2699 = vmatmul.mubr.bf16.gmra.mrb[192].mxu1 %v2454_v53  ;;  %v5015_v53 = vld [vmem:[%s6676_s7 + $0x20] sm:$0xff]  }
 0x3e1   : > { %2708 = vmatprep.mubr.bf16.mxu1 %v6709_v41 }
 0x3e6   : > { %v4736_v17 = vpop.f32.mrb[116].mxu0 }
 0x3e7   : > { %v2216_v59 = vadd.f32 %v4736_v17, %v5755_v29  ;;  %v2207_v15 = vpop.f32.mrb[117].mxu0  ;;  %v5016_v17 = vld [vmem:[%s6676_s7 + $0x28] sm:$0xff]  }
 0x3e8   : > { %v2208_v46 = vadd.f32 %v5755_v29, %v2207_v15  ;;  %v4737_v22 = vpop.f32.mrb[118].mxu0  ;;  %2709 = vmatmul.mubr.bf16.gmra.mrb[196].mxu1 %v2455_v34  ;;  %v5014_v34 = vld [vmem:[%s6676_s7 + $0x18] sm:$0xff]  }
 0x3e9   : > { %v2219_v16 = vadd.f32 %v4737_v22, %v5755_v29  ;;  %v2210_v49 = vpop.f32.mrb[119].mxu0  ;;  %2718 = vmatprep.mubr.bf16.mxu1 %v6709_v41  ;;  %v2404_v30 = vmax.f32 %v2216_v59, 0.0  ;;  %4784 = vmatprep.subr.bf16.mxu0 %v5014_v34 }
 0x3ea   : > { %v2211_v51 = vadd.f32 %v5755_v29, %v2210_v49  ;;  %v2402_v33 = vmax.f32 %v2208_v46, 0.0  ;;  %4785 = vmatpush3.bf16.msra.mxu0 %v5014_v34 }
 0x3eb   : > { %v2405_v12 = vmax.f32 %v2219_v16, 0.0  ;;  %4786 = vmatprep.subr.bf16.mxu0 %v5015_v53 }
 0x3ec   : > { %v2403_v6 = vmax.f32 %v2211_v51, 0.0  ;;  %v5017_v51 = vld [vmem:[%s6676_s7 + $0x30] sm:$0xff]  }
 0x3ed   : > { %v2457_v63 = vpack.c.bf16 %v2405_v12, %v2404_v30 }
 0x3ee   : > { %v2456_v45 = vpack.c.bf16 %v2403_v6, %v2402_v33  ;;  %4787 = vmatpush3.bf16.msra.mxu0 %v5015_v53 }
 0x3ef   : > { %4788 = vmatprep.subr.bf16.mxu0 %v5016_v17 }
 0x3f0   : > { %2719 = vmatmul.mubr.bf16.gmra.mrb[200].mxu1 %v2456_v45  ;;  %v5018_v45 = vld [vmem:[%s6676_s7 + $0x38] sm:$0xff]  }
 0x3f1   : > { %2728 = vmatprep.mubr.bf16.mxu1 %v6709_v41 }
 0x3f2   : > { %4789 = vmatpush3.bf16.msra.mxu0 %v5016_v17 }
 0x3f3   : > { %4790 = vmatprep.subr.bf16.mxu0 %v5017_v51 }
 0x3f6   : > { %v4740_v52 = vpop.f32.mrb[120].mxu0  ;;  %4791 = vmatpush3.bf16.msra.mxu0 %v5017_v51 }
 0x3f7   : > { %v2232_v61 = vadd.f32 %v4740_v52, %v5755_v29  ;;  %v2223_v59 = vpop.f32.mrb[121].mxu0  ;;  %4792 = vmatprep.subr.bf16.mxu0 %v5018_v45 }
 0x3f8   : > { %v2224_v15 = vadd.f32 %v5755_v29, %v2223_v59  ;;  %v4741_v46 = vpop.f32.mrb[122].mxu0  ;;  %2729 = vmatmul.mubr.bf16.gmra.mrb[204].mxu1 %v2457_v63 }
 0x3f9   : > { %v2235_v22 = vadd.f32 %v4741_v46, %v5755_v29  ;;  %v2226_v16 = vpop.f32.mrb[123].mxu0  ;;  %2738 = vmatprep.mubr.bf16.mxu1 %v6709_v41  ;;  %v2408_v60 = vmax.f32 %v2232_v61, 0.0 }
 0x3fa   : > { %v2227_v49 = vadd.f32 %v5755_v29, %v2226_v16  ;;  %v2406_v12 = vmax.f32 %v2224_v15, 0.0  ;;  %4793 = vmatpush3.bf16.msra.mxu0 %v5018_v45 }
 0x3fb   : > { %v2409_v30 = vmax.f32 %v2235_v22, 0.0 }
 0x3fc   : > { %v2407_v33 = vmax.f32 %v2227_v49, 0.0 }
 0x3fd   : > { %v2459_v6 = vpack.c.bf16 %v2409_v30, %v2408_v60 }
 0x3fe   : > { %v2458_v63 = vpack.c.bf16 %v2407_v33, %v2406_v12 }
 0x400   : > { %2739 = vmatmul.mubr.bf16.gmra.mrb[208].mxu1 %v2458_v63 }
 0x401   : > { %2748 = vmatprep.mubr.bf16.mxu1 %v6709_v41 }
 0x406   : > { %v4744_v34 = vpop.f32.mrb[124].mxu0 }
 0x407   : > { %v2248_v53 = vadd.f32 %v4744_v34, %v5755_v29  ;;  %v2239_v52 = vpop.f32.mrb[125].mxu0 }
 0x408   : > { %v2240_v17 = vadd.f32 %v5755_v29, %v2239_v52  ;;  %v4745_v61 = vpop.f32.mrb[126].mxu0  ;;  %2749 = vmatmul.mubr.bf16.gmra.mrb[212].mxu1 %v2459_v6 }
 0x409   : > { %v2251_v59 = vadd.f32 %v4745_v61, %v5755_v29  ;;  %v2242_v15 = vpop.f32.mrb[127].mxu0  ;;  %2758 = vmatprep.mubr.bf16.mxu1 %v6709_v41  ;;  %v2412_v22 = vmax.f32 %v2248_v53, 0.0 }
 0x40a   : > { %v2243_v46 = vadd.f32 %v5755_v29, %v2242_v15  ;;  %v2410_v49 = vmax.f32 %v2240_v17, 0.0 }
 0x40b   : > { %v2413_v16 = vmax.f32 %v2251_v59, 0.0 }
 0x40c   : > { %v2411_v51 = vmax.f32 %v2243_v46, 0.0 }
 0x40d   : > { %v2461_v60 = vpack.c.bf16 %v2413_v16, %v2412_v22 }
 0x40e   : > { %v2460_v30 = vpack.c.bf16 %v2411_v51, %v2410_v49 }
 0x410   : > { %2759 = vmatmul.mubr.bf16.gmra.mrb[216].mxu1 %v2460_v30 }
 0x411   : > { %2768 = vmatprep.mubr.bf16.mxu1 %v6709_v41 }
 0x416   : > { %v4748_v12 = vpop.f32.mrb[128].mxu0 }
 0x417   : > { %v2264_v33 = vadd.f32 %v4748_v12, %v5755_v29  ;;  %v2255_v6 = vpop.f32.mrb[129].mxu0 }
 0x418   : > { %v2256_v63 = vadd.f32 %v5755_v29, %v2255_v6  ;;  %v4749_v45 = vpop.f32.mrb[130].mxu0  ;;  %2769 = vmatmul.mubr.bf16.gmra.mrb[220].mxu1 %v2461_v60 }
 0x419   : > { %v2267_v34 = vadd.f32 %v4749_v45, %v5755_v29  ;;  %v2258_v52 = vpop.f32.mrb[131].mxu0  ;;  %2778 = vmatprep.mubr.bf16.mxu1 %v6709_v41  ;;  %v2416_v17 = vmax.f32 %v2264_v33, 0.0 }
 0x41a   : > { %v2259_v53 = vadd.f32 %v5755_v29, %v2258_v52  ;;  %v2414_v59 = vmax.f32 %v2256_v63, 0.0 }
 0x41b   : > { %v2417_v61 = vmax.f32 %v2267_v34, 0.0 }
 0x41c   : > { %v2415_v15 = vmax.f32 %v2259_v53, 0.0 }
 0x41d   : > { %v2463_v46 = vpack.c.bf16 %v2417_v61, %v2416_v17 }
 0x41e   : > { %v2462_v22 = vpack.c.bf16 %v2415_v15, %v2414_v59 }
 0x420   : > { %2779 = vmatmul.mubr.bf16.gmra.mrb[224].mxu1 %v2462_v22 }
 0x421   : > { %2788 = vmatprep.mubr.bf16.mxu1 %v6709_v41 }
 0x426   : > { %v4752_v16 = vpop.f32.mrb[132].mxu0 }
 0x427   : > { %v2280_v49 = vadd.f32 %v4752_v16, %v5755_v29  ;;  %v2271_v51 = vpop.f32.mrb[133].mxu0 }
 0x428   : > { %v2272_v60 = vadd.f32 %v5755_v29, %v2271_v51  ;;  %v4753_v30 = vpop.f32.mrb[134].mxu0  ;;  %2789 = vmatmul.mubr.bf16.gmra.mrb[228].mxu1 %v2463_v46 }
 0x429   : > { %v2283_v12 = vadd.f32 %v4753_v30, %v5755_v29  ;;  %v2274_v6 = vpop.f32.mrb[135].mxu0  ;;  %2798 = vmatprep.mubr.bf16.mxu1 %v6709_v41  ;;  %v2420_v63 = vmax.f32 %v2280_v49, 0.0 }
 0x42a   : > { %v2275_v33 = vadd.f32 %v5755_v29, %v2274_v6  ;;  %v2418_v34 = vmax.f32 %v2272_v60, 0.0 }
 0x42b   : > { %v2421_v45 = vmax.f32 %v2283_v12, 0.0 }
 0x42c   : > { %v2419_v52 = vmax.f32 %v2275_v33, 0.0 }
 0x42d   : > { %v2465_v53 = vpack.c.bf16 %v2421_v45, %v2420_v63 }
 0x42e   : > { %v2464_v17 = vpack.c.bf16 %v2419_v52, %v2418_v34 }
 0x430   : > { %2799 = vmatmul.mubr.bf16.gmra.mrb[232].mxu1 %v2464_v17 }
 0x431   : > { %2808 = vmatprep.mubr.bf16.mxu1 %v6709_v41 }
 0x436   : > { %v4756_v61 = vpop.f32.mrb[136].mxu0 }
 0x437   : > { %v2296_v59 = vadd.f32 %v4756_v61, %v5755_v29  ;;  %v2287_v15 = vpop.f32.mrb[137].mxu0 }
 0x438   : > { %v2288_v46 = vadd.f32 %v5755_v29, %v2287_v15  ;;  %v4757_v22 = vpop.f32.mrb[138].mxu0  ;;  %2809 = vmatmul.mubr.bf16.gmra.mrb[236].mxu1 %v2465_v53 }
 0x439   : > { %v2299_v16 = vadd.f32 %v4757_v22, %v5755_v29  ;;  %v2290_v51 = vpop.f32.mrb[139].mxu0  ;;  %2818 = vmatprep.mubr.bf16.mxu1 %v6709_v41  ;;  %v2424_v60 = vmax.f32 %v2296_v59, 0.0 }
 0x43a   : > { %v2291_v49 = vadd.f32 %v5755_v29, %v2290_v51  ;;  %v2422_v12 = vmax.f32 %v2288_v46, 0.0 }
 0x43b   : > { %v2425_v30 = vmax.f32 %v2299_v16, 0.0 }
 0x43c   : > { %v2423_v6 = vmax.f32 %v2291_v49, 0.0 }
 0x43d   : > { %v2467_v33 = vpack.c.bf16 %v2425_v30, %v2424_v60 }
 0x43e   : > { %v2466_v63 = vpack.c.bf16 %v2423_v6, %v2422_v12 }
 0x440   : > { %2819 = vmatmul.mubr.bf16.gmra.mrb[240].mxu1 %v2466_v63 }
 0x441   : > { %2828 = vmatprep.mubr.bf16.mxu1 %v6709_v41 }
 0x446   : > { %v4760_v45 = vpop.f32.mrb[140].mxu0 }
 0x447   : > { %v2312_v34 = vadd.f32 %v4760_v45, %v5755_v29  ;;  %v2303_v52 = vpop.f32.mrb[141].mxu0 }
 0x448   : > { %v2304_v53 = vadd.f32 %v5755_v29, %v2303_v52  ;;  %v4761_v17 = vpop.f32.mrb[142].mxu0  ;;  %2829 = vmatmul.mubr.bf16.gmra.mrb[244].mxu1 %v2467_v33 }
 0x449   : > { %v2315_v61 = vadd.f32 %v4761_v17, %v5755_v29  ;;  %v2306_v15 = vpop.f32.mrb[143].mxu0  ;;  %2838 = vmatprep.mubr.bf16.mxu1 %v6709_v41  ;;  %v2428_v46 = vmax.f32 %v2312_v34, 0.0 }
 0x44a   : > { %v2307_v59 = vadd.f32 %v5755_v29, %v2306_v15  ;;  %v2426_v16 = vmax.f32 %v2304_v53, 0.0 }
 0x44b   : > { %v2429_v22 = vmax.f32 %v2315_v61, 0.0 }
 0x44c   : > { %v2427_v51 = vmax.f32 %v2307_v59, 0.0 }
 0x44d   : > { %v2469_v49 = vpack.c.bf16 %v2429_v22, %v2428_v46 }
 0x44e   : > { %v2468_v60 = vpack.c.bf16 %v2427_v51, %v2426_v16  ;;  %v4764_v30 = vpop.f32.mrb[144].mxu0 }
 0x44f   : > { %v2328_v12 = vadd.f32 %v4764_v30, %v5755_v29  ;;  %v2319_v6 = vpop.f32.mrb[145].mxu0 }
 0x450   : > { %v2320_v63 = vadd.f32 %v5755_v29, %v2319_v6  ;;  %v4765_v33 = vpop.f32.mrb[146].mxu0  ;;  %2839 = vmatmul.mubr.bf16.gmra.mrb[248].mxu1 %v2468_v60 }
 0x451   : > { %v2331_v45 = vadd.f32 %v4765_v33, %v5755_v29  ;;  %v2322_v52 = vpop.f32.mrb[147].mxu0  ;;  %2848 = vmatprep.mubr.bf16.mxu1 %v6709_v41  ;;  %v2432_v17 = vmax.f32 %v2328_v12, 0.0 }
 0x452   : > { %v2323_v34 = vadd.f32 %v5755_v29, %v2322_v52  ;;  %v2430_v61 = vmax.f32 %v2320_v63, 0.0 }
 0x453   : > { %v2433_v53 = vmax.f32 %v2331_v45, 0.0 }
 0x454   : > { %v2431_v15 = vmax.f32 %v2323_v34, 0.0 }
 0x455   : > { %v2471_v59 = vpack.c.bf16 %v2433_v53, %v2432_v17 }
 0x456   : > { %v2470_v46 = vpack.c.bf16 %v2431_v15, %v2430_v61  ;;  %v4768_v22 = vpop.f32.mrb[148].mxu0 }
 0x457   : > { %v2344_v16 = vadd.f32 %v4768_v22, %v5755_v29  ;;  %v2335_v51 = vpop.f32.mrb[149].mxu0 }
 0x458   : > { %v2336_v30 = vadd.f32 %v5755_v29, %v2335_v51  ;;  %v4769_v60 = vpop.f32.mrb[150].mxu0  ;;  %2849 = vmatmul.mubr.bf16.gmra.mrb[252].mxu1 %v2469_v49 }
 0x459   : > { %v2347_v6 = vadd.f32 %v4769_v60, %v5755_v29  ;;  %v2338_v33 = vpop.f32.mrb[151].mxu0  ;;  %2858 = vmatprep.mubr.bf16.mxu1 %v6709_v41  ;;  %v2436_v45 = vmax.f32 %v2344_v16, 0.0 }
 0x45a   : > { %v2339_v12 = vadd.f32 %v5755_v29, %v2338_v33  ;;  %v2434_v52 = vmax.f32 %v2336_v30, 0.0 }
 0x45b   : > { %v2437_v63 = vmax.f32 %v2347_v6, 0.0 }
 0x45c   : > { %v2435_v34 = vmax.f32 %v2339_v12, 0.0 }
 0x45d   : > { %v2473_v17 = vpack.c.bf16 %v2437_v63, %v2436_v45 }
 0x45e   : > { %v2472_v53 = vpack.c.bf16 %v2435_v34, %v2434_v52  ;;  %v4772_v61 = vpop.f32.mrb[152].mxu0 }
 0x45f   : > { %v2360_v15 = vadd.f32 %v4772_v61, %v5755_v29  ;;  %v2351_v22 = vpop.f32.mrb[153].mxu0 }
 0x460   : > { %v2352_v51 = vadd.f32 %v5755_v29, %v2351_v22  ;;  %v4773_v49 = vpop.f32.mrb[154].mxu0  ;;  %2859 = vmatmul.mubr.bf16.gmra.mrb[0].mxu1 %v2470_v46 }
 0x461   : > { %v2363_v60 = vadd.f32 %v4773_v49, %v5755_v29  ;;  %v2354_v54 = vpop.f32.mrb[155].mxu0  ;;  %2868 = vmatprep.mubr.bf16.mxu1 %v6709_v41  ;;  %v2440_v6 = vmax.f32 %v2360_v15, 0.0 }
 0x462   : > { %v2355_v16 = vadd.f32 %v5755_v29, %v2354_v54  ;;  %v2438_v33 = vmax.f32 %v2352_v51, 0.0 }
 0x463   : > { %v2441_v30 = vmax.f32 %v2363_v60, 0.0 }
 0x464   : > { %v2439_v12 = vmax.f32 %v2355_v16, 0.0 }
 0x465   : > { %v2475_v45 = vpack.c.bf16 %v2441_v30, %v2440_v6  ;;  %v2494_v30 = vld [vmem:[%s6675_s6] sm:$0x3] }
 0x466   : > { %v2474_v63 = vpack.c.bf16 %v2439_v12, %v2438_v33  ;;  %v4776_v52 = vpop.f32.mrb[156].mxu0 }
 0x467   : > { %v2376_v34 = vadd.f32 %v4776_v52, %v5755_v29  ;;  %v2367_v61 = vpop.f32.mrb[157].mxu0 }
 0x468   : > { %v2368_v22 = vadd.f32 %v5755_v29, %v2367_v61  ;;  %v4777_v46 = vpop.f32.mrb[158].mxu0  ;;  %2869 = vmatmul.mubr.bf16.gmra.mrb[4].mxu1 %v2471_v59  ;;  %v6710_v59 = vsub.s32 0, %v5294_v56 }
 0x469   : > { %v2379_v49 = vadd.f32 %v4777_v46, %v5755_v29  ;;  %v2370_v24 = vpop.f32.mrb[159].mxu0  ;;  %2878 = vmatprep.mubr.bf16.mxu1 %v6709_v41  ;;  %v2444_v15 = vmax.f32 %v2376_v34, 0.0 }
 0x46a   : > { %v2371_v54 = vadd.f32 %v5755_v29, %v2370_v24  ;;  %v2442_v60 = vmax.f32 %v2368_v22, 0.0  ;;  %v5876_v12 = vrot.slane %v2494_v30, %v6710_v59 }
 0x46b   : > { %v2445_v51 = vmax.f32 %v2379_v49, 0.0 }
 0x46c   : > { %v2443_v16 = vmax.f32 %v2371_v54, 0.0 }
 0x46d   : > { %v2477_v6 = vpack.c.bf16 %v2445_v51, %v2444_v15 }
 0x46e   : > { %v2476_v33 = vpack.c.bf16 %v2443_v16, %v2442_v60 }
 0x470   : > { %2879 = vmatmul.mubr.bf16.gmra.mrb[8].mxu1 %v2472_v53 }
 0x471   : > { %2888 = vmatprep.mubr.bf16.mxu1 %v6709_v41 }
 0x473   : > { %v2620_v52 = vpop.f32.mrb[160].mxu1 }
 0x474   : > { %v2621_v24 = vadd.f32 %v2620_v52, %v5876_v12  ;;  %v5880_v29 = vpop.f32.mrb[161].mxu1 }
 0x475   : > { %v2624_v34 = vpop.f32.mrb[162].mxu1 }
 0x476   : > { %v2625_v61 = vadd.f32 %v2624_v34, %v5876_v12  ;;  %v5883_v22 = vpop.f32.mrb[163].mxu1  ;;  %v2939_v46 = vmax.f32 %v2621_v24, 0.0 }
 0x477   : > { %6711 = vst [vmem:[#allocation26_spill] sm:$0xff] %v5883_v22 }
 0x478   : > { %v2940_v49 = vmax.f32 %v2625_v61, 0.0  ;;  %2889 = vmatmul.mubr.bf16.gmra.mrb[12].mxu1 %v2473_v17 }
 0x479   : > { %2898 = vmatprep.mubr.bf16.mxu1 %v6709_v41 }
 0x47a   : > { %v3003_v53 = vpack.c.bf16 %v2940_v49, %v2939_v46 }
 0x47b   : > { %v2630_v54 = vpop.f32.mrb[164].mxu1 }
 0x47c   : > { %v2631_v15 = vadd.f32 %v2630_v54, %v5876_v12  ;;  %v5887_v51 = vpop.f32.mrb[165].mxu1  ;;  %4794 = vmatprep.mubr.bf16.mxu0 %v3003_v53 }
 0x47d   : > { %v2634_v60 = vpop.f32.mrb[166].mxu1 }
 0x47e   : > { %v2635_v16 = vadd.f32 %v2634_v60, %v5876_v12  ;;  %v5890_v30 = vpop.f32.mrb[167].mxu1  ;;  %v2941_v59 = vmax.f32 %v2631_v15, 0.0 }
 0x480   : > { %v2942_v52 = vmax.f32 %v2635_v16, 0.0  ;;  %2899 = vmatmul.mubr.bf16.gmra.mrb[16].mxu1 %v2474_v63 }
 0x481   : > { %2908 = vmatprep.mubr.bf16.mxu1 %v6709_v41 }
 0x482   : > { %v3004_v17 = vpack.c.bf16 %v2942_v52, %v2941_v59 }
 0x483   : > { %v2640_v24 = vpop.f32.mrb[168].mxu1 }
 0x484   : > { %v2641_v34 = vadd.f32 %v2640_v24, %v5876_v12  ;;  %v5894_v61 = vpop.f32.mrb[169].mxu1  ;;  %4795 = vmatmul.mubr.bf16.vlgmr.msra.gmra.mrb[160].mxu0 %v3004_v17 }
 0x485   : > { %6712 = vst [vmem:[#allocation27_spill] sm:$0xff] %v5894_v61  ;;  %v2644_v46 = vpop.f32.mrb[170].mxu1 }
 0x486   : > { %v2645_v49 = vadd.f32 %v2644_v46, %v5876_v12  ;;  %v5897_v53 = vpop.f32.mrb[171].mxu1  ;;  %v2943_v54 = vmax.f32 %v2641_v34, 0.0 }
 0x487   : > { %6713 = vst [vmem:[#allocation28_spill] sm:$0xff] %v5897_v53 }
 0x488   : > { %v2944_v60 = vmax.f32 %v2645_v49, 0.0  ;;  %2909 = vmatmul.mubr.bf16.gmra.mrb[20].mxu1 %v2475_v45 }
 0x489   : > { %2918 = vmatprep.mubr.bf16.mxu1 %v6709_v41 }
 0x48a   : > { %v3005_v63 = vpack.c.bf16 %v2944_v60, %v2943_v54 }
 0x48b   : > { %v2650_v15 = vpop.f32.mrb[172].mxu1 }
 0x48c   : > { %v2651_v16 = vadd.f32 %v2650_v15, %v5876_v12  ;;  %v5901_v59 = vpop.f32.mrb[173].mxu1  ;;  %4798 = vmatprep.mubr.bf16.mxu0 %v3005_v63 }
 0x48d   : > { %6714 = vst [vmem:[#allocation29_spill] sm:$0xff] %v5901_v59  ;;  %v2654_v52 = vpop.f32.mrb[174].mxu1 }
 0x48e   : > { %v2655_v17 = vadd.f32 %v2654_v52, %v5876_v12  ;;  %v5904_v24 = vpop.f32.mrb[175].mxu1  ;;  %v2945_v46 = vmax.f32 %v2651_v16, 0.0 }
 0x48f   : > { %6715 = vst [vmem:[#allocation30_spill] sm:$0xff] %v5904_v24 }
 0x490   : > { %v2946_v61 = vmax.f32 %v2655_v17, 0.0  ;;  %2919 = vmatmul.mubr.bf16.gmra.mrb[24].mxu1 %v2476_v33 }
 0x491   : > { %2928 = vmatprep.mubr.bf16.mxu1 %v6709_v41 }
 0x492   : > { %v3006_v45 = vpack.c.bf16 %v2946_v61, %v2945_v46 }
 0x493   : > { %v2660_v34 = vpop.f32.mrb[176].mxu1 }
 0x494   : > { %v2661_v49 = vadd.f32 %v2660_v34, %v5876_v12  ;;  %v5908_v54 = vpop.f32.mrb[177].mxu1  ;;  %4799 = vmatmul.mubr.bf16.gmra.mrb[164].mxu0 %v3006_v45 }
 0x495   : > { %6716 = vst [vmem:[#allocation31_spill] sm:$0xff] %v5908_v54  ;;  %v2664_v60 = vpop.f32.mrb[178].mxu1 }
 0x496   : > { %v2665_v63 = vadd.f32 %v2664_v60, %v5876_v12  ;;  %v5911_v15 = vpop.f32.mrb[179].mxu1  ;;  %v2947_v52 = vmax.f32 %v2661_v49, 0.0 }
 0x497   : > { %6717 = vst [vmem:[#allocation32_spill] sm:$0xff] %v5911_v15 }
 0x498   : > { %v2948_v53 = vmax.f32 %v2665_v63, 0.0  ;;  %2929 = vmatmul.mubr.bf16.gmra.mrb[28].mxu1 %v2477_v6 }
 0x49a   : > { %v3007_v16 = vpack.c.bf16 %v2948_v53, %v2947_v52 }
 0x49b   : > { %v2670_v17 = vpop.f32.mrb[180].mxu1 }
 0x49c   : > { %v2671_v33 = vadd.f32 %v2670_v17, %v5876_v12  ;;  %v5914_v41 = vpop.f32.mrb[181].mxu1  ;;  %4802 = vmatprep.mubr.bf16.mxu0 %v3007_v16 }
 0x49d   : > { %6718 = vst [vmem:[#allocation33_spill] sm:$0xff] %v5914_v41  ;;  %v2674_v61 = vpop.f32.mrb[182].mxu1 }
 0x49e   : > { %v2675_v46 = vadd.f32 %v2674_v61, %v5876_v12  ;;  %v5917_v34 = vpop.f32.mrb[183].mxu1  ;;  %v2949_v45 = vmax.f32 %v2671_v33, 0.0 }
 0x49f   : > { %6719 = vst [vmem:[#allocation34_spill] sm:$0xff] %v5917_v34 }
 0x4a0   : > { %v2950_v54 = vmax.f32 %v2675_v46, 0.0 }
 0x4a2   : > { %v3008_v60 = vpack.c.bf16 %v2950_v54, %v2949_v45 }
 0x4a3   : > { %v2680_v24 = vpop.f32.mrb[184].mxu1 }
 0x4a4   : > { %v2681_v49 = vadd.f32 %v2680_v24, %v5876_v12  ;;  %v5920_v63 = vpop.f32.mrb[185].mxu1  ;;  %4803 = vmatmul.mubr.bf16.gmra.mrb[168].mxu0 %v3008_v60 }
 0x4a5   : > { %6720 = vst [vmem:[#allocation35_spill] sm:$0xff] %v5920_v63  ;;  %v2684_v6 = vpop.f32.mrb[186].mxu1 }
 0x4a6   : > { %v2685_v53 = vadd.f32 %v2684_v6, %v5876_v12  ;;  %v5923_v52 = vpop.f32.mrb[187].mxu1  ;;  %v2951_v16 = vmax.f32 %v2681_v49, 0.0 }
 0x4a7   : > { %6721 = vst [vmem:[#allocation36_spill] sm:$0xff] %v5923_v52 }
 0x4a8   : > { %v2952_v17 = vmax.f32 %v2685_v53, 0.0 }
 0x4aa   : > { %v3009_v15 = vpack.c.bf16 %v2952_v17, %v2951_v16 }
 0x4ab   : > { %v2690_v61 = vpop.f32.mrb[188].mxu1 }
 0x4ac   : > { %v2691_v34 = vadd.f32 %v2690_v61, %v5876_v12  ;;  %v5926_v33 = vpop.f32.mrb[189].mxu1  ;;  %4806 = vmatprep.mubr.bf16.mxu0 %v3009_v15 }
 0x4ad   : > { %6722 = vst [vmem:[#allocation37_spill] sm:$0xff] %v5926_v33  ;;  %v2694_v54 = vpop.f32.mrb[190].mxu1 }
 0x4ae   : > { %v2695_v24 = vadd.f32 %v2694_v54, %v5876_v12  ;;  %v5929_v46 = vpop.f32.mrb[191].mxu1  ;;  %v2953_v45 = vmax.f32 %v2691_v34, 0.0 }
 0x4af   : > { %6723 = vst [vmem:[#allocation38_spill] sm:$0xff] %v5929_v46 }
 0x4b0   : > { %v2954_v60 = vmax.f32 %v2695_v24, 0.0 }
 0x4b2   : > { %v3010_v63 = vpack.c.bf16 %v2954_v60, %v2953_v45 }
 0x4b3   : > { %v2700_v6 = vpop.f32.mrb[192].mxu1 }
 0x4b4   : > { %v2701_v52 = vadd.f32 %v2700_v6, %v5876_v12  ;;  %v5932_v49 = vpop.f32.mrb[193].mxu1  ;;  %4807 = vmatmul.mubr.bf16.gmra.mrb[172].mxu0 %v3010_v63 }
 0x4b5   : > { %6724 = vst [vmem:[#allocation39_spill] sm:$0xff] %v5932_v49  ;;  %v2704_v53 = vpop.f32.mrb[194].mxu1 }
 0x4b6   : > { %v2705_v16 = vadd.f32 %v2704_v53, %v5876_v12  ;;  %v5935_v17 = vpop.f32.mrb[195].mxu1  ;;  %v2955_v15 = vmax.f32 %v2701_v52, 0.0 }
 0x4b7   : > { %6725 = vst [vmem:[#allocation40_spill] sm:$0xff] %v5935_v17 }
 0x4b8   : > { %v2956_v61 = vmax.f32 %v2705_v16, 0.0 }
 0x4ba   : > { %v3011_v33 = vpack.c.bf16 %v2956_v61, %v2955_v15 }
 0x4bb   : > { %v2710_v54 = vpop.f32.mrb[196].mxu1 }
 0x4bc   : > { %v2711_v46 = vadd.f32 %v2710_v54, %v5876_v12  ;;  %v5938_v34 = vpop.f32.mrb[197].mxu1  ;;  %4810 = vmatprep.mubr.bf16.mxu0 %v3011_v33 }
 0x4bd   : > { %6726 = vst [vmem:[#allocation41_spill] sm:$0xff] %v5938_v34  ;;  %v2714_v24 = vpop.f32.mrb[198].mxu1 }
 0x4be   : > { %v2715_v45 = vadd.f32 %v2714_v24, %v5876_v12  ;;  %v5941_v60 = vpop.f32.mrb[199].mxu1  ;;  %v2957_v63 = vmax.f32 %v2711_v46, 0.0 }
 0x4bf   : > { %6727 = vst [vmem:[#allocation42_spill] sm:$0xff] %v5941_v60 }
 0x4c0   : > { %v2958_v6 = vmax.f32 %v2715_v45, 0.0 }
 0x4c2   : > { %v3012_v49 = vpack.c.bf16 %v2958_v6, %v2957_v63 }
 0x4c3   : > { %v2720_v53 = vpop.f32.mrb[200].mxu1 }
 0x4c4   : > { %v2721_v17 = vadd.f32 %v2720_v53, %v5876_v12  ;;  %v5944_v52 = vpop.f32.mrb[201].mxu1  ;;  %4811 = vmatmul.mubr.bf16.gmra.mrb[176].mxu0 %v3012_v49 }
 0x4c5   : > { %6728 = vst [vmem:[#allocation43_spill] sm:$0xff] %v5944_v52  ;;  %v2724_v16 = vpop.f32.mrb[202].mxu1 }
 0x4c6   : > { %v2725_v15 = vadd.f32 %v2724_v16, %v5876_v12  ;;  %v5947_v61 = vpop.f32.mrb[203].mxu1  ;;  %v2959_v33 = vmax.f32 %v2721_v17, 0.0 }
 0x4c7   : > { %6729 = vst [vmem:[#allocation44_spill] sm:$0xff] %v5947_v61 }
 0x4c8   : > { %v2960_v54 = vmax.f32 %v2725_v15, 0.0 }
 0x4ca   : > { %v3013_v34 = vpack.c.bf16 %v2960_v54, %v2959_v33 }
 0x4cb   : > { %v2730_v24 = vpop.f32.mrb[204].mxu1 }
 0x4cc   : > { %v2731_v60 = vadd.f32 %v2730_v24, %v5876_v12  ;;  %v5950_v46 = vpop.f32.mrb[205].mxu1  ;;  %4814 = vmatprep.mubr.bf16.mxu0 %v3013_v34 }
 0x4cd   : > { %6730 = vst [vmem:[#allocation45_spill] sm:$0xff] %v5950_v46  ;;  %v2734_v45 = vpop.f32.mrb[206].mxu1 }
 0x4ce   : > { %v2735_v63 = vadd.f32 %v2734_v45, %v5876_v12  ;;  %v5953_v6 = vpop.f32.mrb[207].mxu1  ;;  %v2961_v49 = vmax.f32 %v2731_v60, 0.0 }
 0x4cf   : > { %6731 = vst [vmem:[#allocation46_spill] sm:$0xff] %v5953_v6 }
 0x4d0   : > { %v2962_v53 = vmax.f32 %v2735_v63, 0.0 }
 0x4d2   : > { %v3014_v52 = vpack.c.bf16 %v2962_v53, %v2961_v49 }
 0x4d3   : > { %v2740_v16 = vpop.f32.mrb[208].mxu1 }
 0x4d4   : > { %v2741_v61 = vadd.f32 %v2740_v16, %v5876_v12  ;;  %v5956_v17 = vpop.f32.mrb[209].mxu1  ;;  %4815 = vmatmul.mubr.bf16.gmra.mrb[180].mxu0 %v3014_v52 }
 0x4d5   : > { %6732 = vst [vmem:[#allocation47_spill] sm:$0xff] %v5956_v17  ;;  %v2744_v15 = vpop.f32.mrb[210].mxu1 }
 0x4d6   : > { %v2745_v33 = vadd.f32 %v2744_v15, %v5876_v12  ;;  %v5959_v54 = vpop.f32.mrb[211].mxu1  ;;  %v2963_v34 = vmax.f32 %v2741_v61, 0.0  ;;  %v5019_v15 = vld [vmem:[%s6678_s9] sm:$0xff]  }
 0x4d7   : > { %6733 = vst [vmem:[#allocation48_spill] sm:$0xff] %v5959_v54  ;;  %4858 = vmatprep.subr.bf16.mxu0 %v5019_v15 }
 0x4d8   : > { %v2964_v24 = vmax.f32 %v2745_v33, 0.0  ;;  %4859 = vmatpush3.bf16.msra.mxu0 %v5019_v15  ;;  %v5020_v15 = vld [vmem:[%s6678_s9 + $0x8] sm:$0xff]  }
 0x4d9   : > { %4860 = vmatprep.subr.bf16.mxu0 %v5020_v15 }
 0x4da   : > { %v3015_v46 = vpack.c.bf16 %v2964_v24, %v2963_v34 }
 0x4db   : > { %v2750_v45 = vpop.f32.mrb[212].mxu1 }
 0x4dc   : > { %v2751_v6 = vadd.f32 %v2750_v45, %v5876_v12  ;;  %v5962_v60 = vpop.f32.mrb[213].mxu1  ;;  %4818 = vmatprep.mubr.bf16.mxu0 %v3015_v46  ;;  %4861 = vmatpush3.bf16.msra.mxu0 %v5020_v15 }
 0x4dd   : > { %6734 = vst [vmem:[#allocation49_spill] sm:$0xff] %v5962_v60  ;;  %v2754_v63 = vpop.f32.mrb[214].mxu1 }
 0x4de   : > { %v2755_v49 = vadd.f32 %v2754_v63, %v5876_v12  ;;  %v5965_v53 = vpop.f32.mrb[215].mxu1  ;;  %v2965_v52 = vmax.f32 %v2751_v6, 0.0 }
 0x4df   : > { %6735 = vst [vmem:[#allocation50_spill] sm:$0xff] %v5965_v53 }
 0x4e0   : > { %v2966_v16 = vmax.f32 %v2755_v49, 0.0 }
 0x4e2   : > { %v3016_v61 = vpack.c.bf16 %v2966_v16, %v2965_v52 }
 0x4e3   : > { %v2760_v33 = vpop.f32.mrb[216].mxu1 }
 0x4e4   : > { %v2761_v34 = vadd.f32 %v2760_v33, %v5876_v12  ;;  %v5971_v24 = vpop.f32.mrb[217].mxu1  ;;  %4819 = vmatmul.mubr.bf16.gmra.mrb[184].mxu0 %v3016_v61 }
 0x4e5   : > { %6736 = vst [vmem:[#allocation51_spill] sm:$0xff] %v5971_v24  ;;  %v2764_v46 = vpop.f32.mrb[218].mxu1 }
 0x4e6   : > { %v2765_v45 = vadd.f32 %v2764_v46, %v5876_v12  ;;  %v5974_v63 = vpop.f32.mrb[219].mxu1  ;;  %v2967_v6 = vmax.f32 %v2761_v34, 0.0 }
 0x4e7   : > { %6737 = vst [vmem:[#allocation52_spill] sm:$0xff] %v5974_v63 }
 0x4e8   : > { %v2968_v49 = vmax.f32 %v2765_v45, 0.0 }
 0x4ea   : > { %v3017_v54 = vpack.c.bf16 %v2968_v49, %v2967_v6 }
 0x4eb   : > { %v2770_v53 = vpop.f32.mrb[220].mxu1 }
 0x4ec   : > { %v2771_v17 = vadd.f32 %v2770_v53, %v5876_v12  ;;  %v5977_v52 = vpop.f32.mrb[221].mxu1  ;;  %4822 = vmatprep.mubr.bf16.mxu0 %v3017_v54  ;;  %v5021_v53 = vld [vmem:[%s6678_s9 + $0x10] sm:$0xff]  }
 0x4ed   : > { %6738 = vst [vmem:[#allocation53_spill] sm:$0xff] %v5977_v52  ;;  %v2774_v16 = vpop.f32.mrb[222].mxu1  ;;  %4862 = vmatprep.subr.bf16.mxu0 %v5021_v53 }
 0x4ee   : > { %v2775_v33 = vadd.f32 %v2774_v16, %v5876_v12  ;;  %v5980_v24 = vpop.f32.mrb[223].mxu1  ;;  %v2969_v61 = vmax.f32 %v2771_v17, 0.0  ;;  %4863 = vmatpush3.bf16.msra.mxu0 %v5021_v53 }
 0x4ef   : > { %6739 = vst [vmem:[#allocation54_spill] sm:$0xff] %v5980_v24 }
 0x4f0   : > { %v2970_v46 = vmax.f32 %v2775_v33, 0.0  ;;  %v5022_v33 = vld [vmem:[%s6678_s9 + $0x18] sm:$0xff]  }
 0x4f1   : > { %4864 = vmatprep.subr.bf16.mxu0 %v5022_v33 }
 0x4f2   : > { %v3018_v34 = vpack.c.bf16 %v2970_v46, %v2969_v61  ;;  %4865 = vmatpush3.bf16.msra.mxu0 %v5022_v33 }
 0x4f3   : > { %v2780_v45 = vpop.f32.mrb[224].mxu1 }
 0x4f4   : > { %v2781_v54 = vadd.f32 %v2780_v45, %v5876_v12  ;;  %v5989_v6 = vpop.f32.mrb[225].mxu1  ;;  %4823 = vmatmul.mubr.bf16.gmra.mrb[188].mxu0 %v3018_v34 }
 0x4f5   : > { %6740 = vst [vmem:[#allocation55_spill] sm:$0xff] %v5989_v6  ;;  %v2784_v49 = vpop.f32.mrb[226].mxu1 }
 0x4f6   : > { %v2785_v16 = vadd.f32 %v2784_v49, %v5876_v12  ;;  %v5992_v17 = vpop.f32.mrb[227].mxu1  ;;  %v2971_v15 = vmax.f32 %v2781_v54, 0.0 }
 0x4f7   : > { %6741 = vst [vmem:[#allocation56_spill] sm:$0xff] %v5992_v17 }
 0x4f8   : > { %v2972_v61 = vmax.f32 %v2785_v16, 0.0 }
 0x4fa   : > { %v3019_v46 = vpack.c.bf16 %v2972_v61, %v2971_v15 }
 0x4fb   : > { %v2790_v45 = vpop.f32.mrb[228].mxu1 }
 0x4fc   : > { %v2791_v6 = vadd.f32 %v2790_v45, %v5876_v12  ;;  %v5998_v34 = vpop.f32.mrb[229].mxu1  ;;  %4826 = vmatprep.mubr.bf16.mxu0 %v3019_v46 }
 0x4fd   : > { %6742 = vst [vmem:[#allocation57_spill] sm:$0xff] %v5998_v34  ;;  %v2794_v53 = vpop.f32.mrb[230].mxu1 }
 0x4fe   : > { %v2795_v49 = vadd.f32 %v2794_v53, %v5876_v12  ;;  %v6001_v63 = vpop.f32.mrb[231].mxu1  ;;  %v2973_v17 = vmax.f32 %v2791_v6, 0.0 }
 0x4ff   : > { %6743 = vst [vmem:[#allocation58_spill] sm:$0xff] %v6001_v63 }
 0x500   : > { %v2974_v24 = vmax.f32 %v2795_v49, 0.0 }
 0x502   : > { %v3020_v52 = vpack.c.bf16 %v2974_v24, %v2973_v17 }
 0x503   : > { %v2800_v60 = vpop.f32.mrb[232].mxu1 }
 0x504   : > { %v2801_v54 = vadd.f32 %v2800_v60, %v5876_v12  ;;  %v6004_v16 = vpop.f32.mrb[233].mxu1  ;;  %4827 = vmatmul.mubr.bf16.gmra.mrb[192].mxu0 %v3020_v52 }
 0x505   : > { %6744 = vst [vmem:[#allocation59_spill] sm:$0xff] %v6004_v16  ;;  %v2804_v33 = vpop.f32.mrb[234].mxu1 }
 0x506   : > { %v2805_v15 = vadd.f32 %v2804_v33, %v5876_v12  ;;  %v6007_v61 = vpop.f32.mrb[235].mxu1  ;;  %v2975_v46 = vmax.f32 %v2801_v54, 0.0 }
 0x507   : > { %6745 = vst [vmem:[#allocation60_spill] sm:$0xff] %v6007_v61 }
 0x508   : > { %v2976_v45 = vmax.f32 %v2805_v15, 0.0 }
 0x50a   : > { %v3021_v34 = vpack.c.bf16 %v2976_v45, %v2975_v46 }
 0x50b   : > { %v2810_v53 = vpop.f32.mrb[236].mxu1 }
 0x50c   : > { %v2811_v63 = vadd.f32 %v2810_v53, %v5876_v12  ;;  %v6010_v6 = vpop.f32.mrb[237].mxu1  ;;  %4830 = vmatprep.mubr.bf16.mxu0 %v3021_v34 }
 0x50d   : > { %6746 = vst [vmem:[#allocation61_spill] sm:$0xff] %v6010_v6  ;;  %v2814_v24 = vpop.f32.mrb[238].mxu1 }
 0x50e   : > { %v2815_v60 = vadd.f32 %v2814_v24, %v5876_v12  ;;  %v6013_v17 = vpop.f32.mrb[239].mxu1  ;;  %v2977_v52 = vmax.f32 %v2811_v63, 0.0 }
 0x50f   : > { %6747 = vst [vmem:[#allocation62_spill] sm:$0xff] %v6013_v17 }
 0x510   : > { %v2978_v49 = vmax.f32 %v2815_v60, 0.0 }
 0x512   : > { %v3022_v16 = vpack.c.bf16 %v2978_v49, %v2977_v52 }
 0x513   : > { %v2820_v33 = vpop.f32.mrb[240].mxu1 }
 0x514   : > { %v2821_v61 = vadd.f32 %v2820_v33, %v5876_v12  ;;  %v6016_v54 = vpop.f32.mrb[241].mxu1  ;;  %4831 = vmatmul.mubr.bf16.gmra.mrb[196].mxu0 %v3022_v16 }
 0x515   : > { %6748 = vst [vmem:[#allocation63_spill] sm:$0xff] %v6016_v54  ;;  %v2824_v15 = vpop.f32.mrb[242].mxu1 }
 0x516   : > { %v2825_v46 = vadd.f32 %v2824_v15, %v5876_v12  ;;  %v6019_v45 = vpop.f32.mrb[243].mxu1  ;;  %v2979_v34 = vmax.f32 %v2821_v61, 0.0 }
 0x517   : > { %6749 = vst [vmem:[#allocation64_spill] sm:$0xff] %v6019_v45 }
 0x518   : > { %v2980_v53 = vmax.f32 %v2825_v46, 0.0 }
 0x51a   : > { %v3023_v6 = vpack.c.bf16 %v2980_v53, %v2979_v34 }
 0x51b   : > { %v2830_v24 = vpop.f32.mrb[244].mxu1 }
 0x51c   : > { %v2831_v17 = vadd.f32 %v2830_v24, %v5876_v12  ;;  %v6022_v63 = vpop.f32.mrb[245].mxu1  ;;  %4834 = vmatprep.mubr.bf16.mxu0 %v3023_v6 }
 0x51d   : > { %6750 = vst [vmem:[#allocation65_spill] sm:$0xff] %v6022_v63  ;;  %v2834_v60 = vpop.f32.mrb[246].mxu1 }
 0x51e   : > { %v2835_v52 = vadd.f32 %v2834_v60, %v5876_v12  ;;  %v6025_v49 = vpop.f32.mrb[247].mxu1  ;;  %v2981_v16 = vmax.f32 %v2831_v17, 0.0 }
 0x51f   : > { %6751 = vst [vmem:[#allocation66_spill] sm:$0xff] %v6025_v49 }
 0x520   : > { %v2982_v33 = vmax.f32 %v2835_v52, 0.0 }
 0x522   : > { %v3024_v54 = vpack.c.bf16 %v2982_v33, %v2981_v16 }
 0x523   : > { %v2840_v15 = vpop.f32.mrb[248].mxu1 }
 0x524   : > { %v2841_v45 = vadd.f32 %v2840_v15, %v5876_v12  ;;  %v6028_v61 = vpop.f32.mrb[249].mxu1  ;;  %4835 = vmatmul.mubr.bf16.gmra.mrb[200].mxu0 %v3024_v54 }
 0x525   : > { %6752 = vst [vmem:[#allocation67_spill] sm:$0xff] %v6028_v61  ;;  %v2844_v46 = vpop.f32.mrb[250].mxu1 }
 0x526   : > { %v2845_v34 = vadd.f32 %v2844_v46, %v5876_v12  ;;  %v6031_v53 = vpop.f32.mrb[251].mxu1  ;;  %v2983_v6 = vmax.f32 %v2841_v45, 0.0 }
 0x527   : > { %6753 = vst [vmem:[#allocation68_spill] sm:$0xff] %v6031_v53 }
 0x528   : > { %v2984_v24 = vmax.f32 %v2845_v34, 0.0 }
 0x52a   : > { %v3025_v63 = vpack.c.bf16 %v2984_v24, %v2983_v6 }
 0x52b   : > { %v2850_v60 = vpop.f32.mrb[252].mxu1 }
 0x52c   : > { %v2851_v49 = vadd.f32 %v2850_v60, %v5876_v12  ;;  %v6034_v17 = vpop.f32.mrb[253].mxu1  ;;  %4838 = vmatprep.mubr.bf16.mxu0 %v3025_v63 }
 0x52d   : > { %6754 = vst [vmem:[#allocation69_spill] sm:$0xff] %v6034_v17  ;;  %v2854_v52 = vpop.f32.mrb[254].mxu1 }
 0x52e   : > { %v2855_v16 = vadd.f32 %v2854_v52, %v5876_v12  ;;  %v6037_v33 = vpop.f32.mrb[255].mxu1  ;;  %v2985_v54 = vmax.f32 %v2851_v49, 0.0 }
 0x52f   : > { %6755 = vst [vmem:[#allocation70_spill] sm:$0xff] %v6037_v33 }
 0x530   : > { %v2986_v15 = vmax.f32 %v2855_v16, 0.0 }
 0x532   : > { %v3026_v61 = vpack.c.bf16 %v2986_v15, %v2985_v54 }
 0x533   : > { %v2860_v46 = vpop.f32.mrb[0].mxu1 }
 0x534   : > { %v2861_v53 = vadd.f32 %v2860_v46, %v5876_v12  ;;  %v6040_v45 = vpop.f32.mrb[1].mxu1  ;;  %4839 = vmatmul.mubr.bf16.gmra.mrb[204].mxu0 %v3026_v61 }
 0x535   : > { %6756 = vst [vmem:[#allocation71_spill] sm:$0xff] %v6040_v45  ;;  %v2864_v34 = vpop.f32.mrb[2].mxu1 }
 0x536   : > { %v2865_v6 = vadd.f32 %v2864_v34, %v5876_v12  ;;  %v6043_v24 = vpop.f32.mrb[3].mxu1  ;;  %v2987_v63 = vmax.f32 %v2861_v53, 0.0 }
 0x537   : > { %6757 = vst [vmem:[#allocation72_spill] sm:$0xff] %v6043_v24 }
 0x538   : > { %v2988_v60 = vmax.f32 %v2865_v6, 0.0 }
 0x53a   : > { %v3027_v17 = vpack.c.bf16 %v2988_v60, %v2987_v63 }
 0x53b   : > { %v2870_v52 = vpop.f32.mrb[4].mxu1 }
 0x53c   : > { %v2871_v33 = vadd.f32 %v2870_v52, %v5876_v12  ;;  %v6046_v49 = vpop.f32.mrb[5].mxu1  ;;  %4842 = vmatprep.mubr.bf16.mxu0 %v3027_v17 }
 0x53d   : > { %6758 = vst [vmem:[#allocation73_spill] sm:$0xff] %v6046_v49  ;;  %v2874_v16 = vpop.f32.mrb[6].mxu1 }
 0x53e   : > { %v2875_v54 = vadd.f32 %v2874_v16, %v5876_v12  ;;  %v6049_v15 = vpop.f32.mrb[7].mxu1  ;;  %v2989_v61 = vmax.f32 %v2871_v33, 0.0 }
 0x53f   : > { %6759 = vst [vmem:[#allocation74_spill] sm:$0xff] %v6049_v15 }
 0x540   : > { %v2990_v46 = vmax.f32 %v2875_v54, 0.0 }
 0x542   : > { %v3028_v45 = vpack.c.bf16 %v2990_v46, %v2989_v61 }
 0x543   : > { %v2880_v34 = vpop.f32.mrb[8].mxu1 }
 0x544   : > { %v2881_v24 = vadd.f32 %v2880_v34, %v5876_v12  ;;  %v6052_v53 = vpop.f32.mrb[9].mxu1  ;;  %4843 = vmatmul.mubr.bf16.gmra.mrb[208].mxu0 %v3028_v45  ;;  %v6684_v45 = vsub.s32 1, %v5294_v56 }
 0x545   : > { %6760 = vst [vmem:[#allocation75_spill] sm:$0xff] %v6052_v53  ;;  %v2884_v6 = vpop.f32.mrb[10].mxu1 }
 0x546   : > { %v2885_v63 = vadd.f32 %v2884_v6, %v5876_v12  ;;  %v6055_v60 = vpop.f32.mrb[11].mxu1  ;;  %v2991_v17 = vmax.f32 %v2881_v24, 0.0  ;;  %v5023_v24 = vld [vmem:[%s6671_s2] sm:$0x3] }
 0x547   : > { %6761 = vst [vmem:[#allocation76_spill] sm:$0xff] %v6055_v60 }
 0x548   : > { %v2992_v52 = vmax.f32 %v2885_v63, 0.0  ;;  %v6069_v63 = vrot.slane %v5023_v24, %v6684_v45 }
 0x54a   : > { %v3029_v49 = vpack.c.bf16 %v2992_v52, %v2991_v17  ;;  %v694_v24 = vadd.f32 %v5305_v62, %v6069_v63 }
 0x54b   : > { %v2890_v16 = vpop.f32.mrb[12].mxu1 }
 0x54c   : > { %v2891_v15 = vadd.f32 %v2890_v16, %v5876_v12  ;;  %v6058_v33 = vpop.f32.mrb[13].mxu1  ;;  %4846 = vmatprep.mubr.bf16.mxu0 %v3029_v49 }
 0x54d   : > { %6762 = vst [vmem:[#allocation77_spill] sm:$0xff] %v6058_v33  ;;  %v2894_v54 = vpop.f32.mrb[14].mxu1 }
 0x54e   : > { %v2895_v61 = vadd.f32 %v2894_v54, %v5876_v12  ;;  %v6061_v46 = vpop.f32.mrb[15].mxu1  ;;  %v2993_v34 = vmax.f32 %v2891_v15, 0.0 }
 0x54f   : > { %6763 = vst [vmem:[#allocation78_spill] sm:$0xff] %v6061_v46 }
 0x550   : > { %v2994_v6 = vmax.f32 %v2895_v61, 0.0  ;;  %v704_v61 = vadd.f32 %v5311_v8, %v6069_v63  ;;  %v698_v8 = vadd.f32 %v5308_v1, %v6069_v63 }
 0x552   : > { %v3030_v53 = vpack.c.bf16 %v2994_v6, %v2993_v34  ;;  %v6082_v6 = vld [vmem:[%s6677_s8] ss:$0 sm:$0xff] }
 0x553   : > { %v2900_v17 = vpop.f32.mrb[16].mxu1 }
 0x554   : > { %v2901_v49 = vadd.f32 %v2900_v17, %v5876_v12  ;;  %v6072_v52 = vpop.f32.mrb[17].mxu1  ;;  %4847 = vmatmul.mubr.bf16.gmra.mrb[212].mxu0 %v3030_v53 }
 0x555   : > { %6764 = vst [vmem:[#allocation79_spill] sm:$0xff] %v6072_v52  ;;  %v2904_v16 = vpop.f32.mrb[18].mxu1 }
 0x556   : > { %v2905_v54 = vadd.f32 %v2904_v16, %v5876_v12  ;;  %v6075_v15 = vpop.f32.mrb[19].mxu1  ;;  %v2995_v17 = vmax.f32 %v2901_v49, 0.0  ;;  %v708_v16 = vadd.f32 %v5314_v11, %v6069_v63 }
 0x557   : > { %6765 = vst [vmem:[#allocation80_spill] sm:$0xff] %v6075_v15  ;;  %v4796_v34 = vpop.f32.mrb[160].mxu0 }
 0x558   : > { %v2996_v45 = vmax.f32 %v2905_v54, 0.0  ;;  %v3142_v53 = vadd.f32 %v4796_v34, %v704_v61  ;;  %v3133_v52 = vpop.f32.mrb[161].mxu0 }
 0x559   : > { %v3134_v15 = vadd.f32 %v3133_v52, %v694_v24  ;;  %v4797_v60 = vpop.f32.mrb[162].mxu0 }
 0x55a   : > { %v3031_v46 = vpack.c.bf16 %v2996_v45, %v2995_v17  ;;  %v3397_v33 = vadd.f32 %v6082_v6, %v3142_v53  ;;  %v3145_v41 = vadd.f32 %v4797_v60, %v708_v16  ;;  %v3136_v59 = vpop.f32.mrb[163].mxu0 }
 0x55b   : > { %v3395_v22 = vadd.f32 %v6082_v6, %v3134_v15  ;;  %v3137_v62 = vadd.f32 %v3136_v59, %v698_v8  ;;  %v2910_v49 = vpop.f32.mrb[20].mxu1 }
 0x55c   : > { %v3398_v54 = vadd.f32 %v6082_v6, %v3145_v41  ;;  %v2911_v61 = vadd.f32 %v2910_v49, %v5876_v12  ;;  %v6094_v34 = vpop.f32.mrb[21].mxu1  ;;  %4850 = vmatprep.mubr.bf16.mxu0 %v3031_v46  ;;  %v3461_v1 = vmax.f32 %v3397_v33, 0.0 }
 0x55d   : > { %6766 = vst [vmem:[#allocation81_spill] sm:$0xff] %v6094_v34  ;;  %v3396_v11 = vadd.f32 %v6082_v6, %v3137_v62  ;;  %v2914_v52 = vpop.f32.mrb[22].mxu1  ;;  %v3459_v17 = vmax.f32 %v3395_v22, 0.0  ;;  %v724_v22 = vadd.f32 %v5329_v28, %v6069_v63 }
 0x55e   : > { %v3462_v45 = vmax.f32 %v3398_v54, 0.0  ;;  %v2915_v24 = vadd.f32 %v2914_v52, %v5876_v12  ;;  %v6098_v60 = vpop.f32.mrb[23].mxu1  ;;  %v2997_v53 = vmax.f32 %v2911_v61, 0.0  ;;  %v714_v61 = vadd.f32 %v5320_v18, %v6069_v63 }
 0x55f   : > { %v3460_v15 = vmax.f32 %v3396_v11, 0.0 }
 0x560   : > { %v6100_v59 = vpack.c.bf16 %v3462_v45, %v3461_v1  ;;  %v2998_v41 = vmax.f32 %v2915_v24, 0.0 }
 0x561   : > { %v3523_v16 = vpack.c.bf16 %v3460_v15, %v3459_v17  ;;  %v728_v17 = vadd.f32 %v5332_v31, %v6069_v63 }
 0x562   : > { %v3032_v8 = vpack.c.bf16 %v2998_v41, %v2997_v53  ;;  %v718_v41 = vadd.f32 %v5323_v21, %v6069_v63 }
 0x563   : > { %v2920_v49 = vpop.f32.mrb[24].mxu1 }
 0x564   : > { %v2921_v46 = vadd.f32 %v2920_v49, %v5876_v12  ;;  %v6103_v34 = vpop.f32.mrb[25].mxu1  ;;  %4851 = vmatmul.mubr.bf16.gmra.mrb[216].mxu0 %v3032_v8 }
 0x565   : > { %v2924_v33 = vpop.f32.mrb[26].mxu1 }
 0x566   : > { %v2925_v62 = vadd.f32 %v2924_v33, %v5876_v12  ;;  %v6106_v54 = vpop.f32.mrb[27].mxu1  ;;  %v2999_v52 = vmax.f32 %v2921_v46, 0.0 }
 0x567   : > { %6767 = vst [vmem:[#allocation82_spill] sm:$0xff] %v6106_v54  ;;  %v4800_v11 = vpop.f32.mrb[164].mxu0 }
 0x568   : > { %v3000_v1 = vmax.f32 %v2925_v62, 0.0  ;;  %v3158_v45 = vadd.f32 %v4800_v11, %v724_v22  ;;  %v3149_v24 = vpop.f32.mrb[165].mxu0 }
 0x569   : > { %v3150_v15 = vadd.f32 %v3149_v24, %v714_v61  ;;  %v4801_v53 = vpop.f32.mrb[166].mxu0 }
 0x56a   : > { %v3033_v8 = vpack.c.bf16 %v3000_v1, %v2999_v52  ;;  %v3401_v49 = vadd.f32 %v6082_v6, %v3158_v45  ;;  %v3161_v28 = vadd.f32 %v4801_v53, %v728_v17  ;;  %v3152_v33 = vpop.f32.mrb[167].mxu0 }
 0x56b   : > { %v3399_v54 = vadd.f32 %v6082_v6, %v3150_v15  ;;  %v3153_v18 = vadd.f32 %v3152_v33, %v718_v41  ;;  %v2930_v46 = vpop.f32.mrb[28].mxu1 }
 0x56c   : > { %v3402_v62 = vadd.f32 %v6082_v6, %v3161_v28  ;;  %v2931_v22 = vadd.f32 %v2930_v46, %v5876_v12  ;;  %v6120_v11 = vpop.f32.mrb[29].mxu1  ;;  %4854 = vmatprep.mubr.bf16.mxu0 %v3033_v8  ;;  %v3465_v21 = vmax.f32 %v3401_v49, 0.0  ;;  %v744_v8 = vadd.f32 %v5350_v55, %v6069_v63 }
 0x56d   : > { %v3400_v31 = vadd.f32 %v6082_v6, %v3153_v18  ;;  %v2934_v61 = vpop.f32.mrb[30].mxu1  ;;  %v3463_v24 = vmax.f32 %v3399_v54, 0.0  ;;  %v748_v54 = vadd.f32 %v5357_v3, %v6069_v63 }
 0x56e   : > { %v3466_v52 = vmax.f32 %v3402_v62, 0.0  ;;  %v2935_v1 = vadd.f32 %v2934_v61, %v5876_v12  ;;  %v6124_v45 = vpop.f32.mrb[31].mxu1  ;;  %v3001_v53 = vmax.f32 %v2931_v22, 0.0  ;;  %v734_v12 = vadd.f32 %v5338_v38, %v6069_v63 }
 0x56f   : > { %v3464_v17 = vmax.f32 %v3400_v31, 0.0  ;;  %v738_v31 = vadd.f32 %v5343_v43, %v6069_v63 }
 0x570   : > { %v3526_v15 = vpack.c.bf16 %v3466_v52, %v3465_v21  ;;  %v3002_v41 = vmax.f32 %v2935_v1, 0.0 }
 0x571   : > { %v3525_v28 = vpack.c.bf16 %v3464_v17, %v3463_v24 }
 0x572   : > { %v3034_v33 = vpack.c.bf16 %v3002_v41, %v3001_v53 }
 0x574   : > { %4855 = vmatmul.mubr.bf16.gmra.mrb[220].mxu0 %v3034_v33  ;;  %v764_v33 = vadd.f32 %v5381_v42, %v6069_v63 }
 0x575   : > { %4866 = vmatprep.mubr.msk.bf16.mxu0 %vm3594_vm2, %v3523_v16 }
 0x577   : > { %v4804_v49 = vpop.f32.mrb[168].mxu0 }
 0x578   : > { %v3174_v18 = vadd.f32 %v4804_v49, %v744_v8  ;;  %v3165_v46 = vpop.f32.mrb[169].mxu0 }
 0x579   : > { %v3166_v62 = vadd.f32 %v3165_v46, %v734_v12  ;;  %v4805_v22 = vpop.f32.mrb[170].mxu0 }
 0x57a   : > { %v3405_v61 = vadd.f32 %v6082_v6, %v3174_v18  ;;  %v3177_v16 = vadd.f32 %v4805_v22, %v748_v54  ;;  %v3168_v21 = vpop.f32.mrb[171].mxu0  ;;  %v758_v54 = vadd.f32 %v5374_v26, %v6069_v63  ;;  %v784_v26 = vadd.f32 %v5412_v44, %v6069_v63 }
 0x57b   : > { %v3403_v55 = vadd.f32 %v6082_v6, %v3166_v62  ;;  %v3169_v52 = vadd.f32 %v3168_v21, %v738_v31 }
 0x57c   : > { %v3406_v1 = vadd.f32 %v6082_v6, %v3177_v16  ;;  %4867 = vmatmul.mubr.msk.bf16.vlgmr.msra.gmra.mrb[224].mxu0 %vm3594_vm2, %v6100_v59  ;;  %v3469_v3 = vmax.f32 %v3405_v61, 0.0  ;;  %v754_v59 = vadd.f32 %v5367_v19, %v6069_v63 }
 0x57d   : > { %v3404_v38 = vadd.f32 %v6082_v6, %v3169_v52  ;;  %4870 = vmatprep.mubr.msk.bf16.mxu0 %vm3594_vm2, %v3525_v28  ;;  %v3467_v17 = vmax.f32 %v3403_v55, 0.0  ;;  %v768_v28 = vadd.f32 %v5388_v50, %v6069_v63 }
 0x57e   : > { %v3470_v24 = vmax.f32 %v3406_v1, 0.0 }
 0x57f   : > { %v3468_v43 = vmax.f32 %v3404_v38, 0.0  ;;  %v774_v38 = vadd.f32 %v5398_v13, %v6069_v63 }
 0x580   : > { %v3528_v53 = vpack.c.bf16 %v3470_v24, %v3469_v3  ;;  %v788_v24 = vadd.f32 %v5423_v0, %v6069_v63 }
 0x581   : > { %v3527_v41 = vpack.c.bf16 %v3468_v43, %v3467_v17 }
 0x584   : > { %4871 = vmatmul.mubr.msk.bf16.gmra.mrb[228].mxu0 %vm3594_vm2, %v3526_v15 }
 0x585   : > { %4874 = vmatprep.mubr.msk.bf16.mxu0 %vm3594_vm2, %v3527_v41 }
 0x587   : > { %v4808_v8 = vpop.f32.mrb[172].mxu0 }
 0x588   : > { %v3190_v49 = vadd.f32 %v4808_v8, %v764_v33  ;;  %v3181_v12 = vpop.f32.mrb[173].mxu0 }
 0x589   : > { %v3182_v18 = vadd.f32 %v3181_v12, %v754_v59  ;;  %v4809_v46 = vpop.f32.mrb[174].mxu0 }
 0x58a   : > { %v3409_v15 = vadd.f32 %v6082_v6, %v3190_v49  ;;  %v3193_v62 = vadd.f32 %v4809_v46, %v768_v28  ;;  %v3184_v22 = vpop.f32.mrb[175].mxu0 }
 0x58b   : > { %v3407_v42 = vadd.f32 %v6082_v6, %v3182_v18  ;;  %v3185_v31 = vadd.f32 %v3184_v22, %v758_v54  ;;  %v794_v22 = vadd.f32 %v5429_v27, %v6069_v63 }
 0x58c   : > { %v3410_v61 = vadd.f32 %v6082_v6, %v3193_v62  ;;  %4875 = vmatmul.mubr.msk.bf16.gmra.mrb[232].mxu0 %vm3594_vm2, %v3528_v53  ;;  %v3473_v16 = vmax.f32 %v3409_v15, 0.0  ;;  %v778_v53 = vadd.f32 %v5406_v25, %v6069_v63  ;;  %v804_v25 = vadd.f32 %v5443_v10, %v6069_v63 }
 0x58d   : > { %v3408_v19 = vadd.f32 %v6082_v6, %v3185_v31  ;;  %v3471_v21 = vmax.f32 %v3407_v42, 0.0  ;;  %v808_v31 = vadd.f32 %v5451_v35, %v6069_v63 }
 0x58e   : > { %v3474_v50 = vmax.f32 %v3410_v61, 0.0 }
 0x58f   : > { %v3472_v55 = vmax.f32 %v3408_v19, 0.0 }
 0x590   : > { %v3530_v52 = vpack.c.bf16 %v3474_v50, %v3473_v16  ;;  %v798_v16 = vadd.f32 %v5437_v39, %v6069_v63  ;;  %v824_v39 = vadd.f32 %v5468_v40, %v6069_v63 }
 0x591   : > { %v3529_v1 = vpack.c.bf16 %v3472_v55, %v3471_v21 }
 0x593   : > { %4878 = vmatprep.mubr.msk.bf16.mxu0 %vm3594_vm2, %v3529_v1 }
 0x594   : > { %4879 = vmatmul.mubr.msk.bf16.gmra.mrb[236].mxu0 %vm3594_vm2, %v3530_v52 }
 0x597   : > { %v4812_v3 = vpop.f32.mrb[176].mxu0 }
 0x598   : > { %v3206_v17 = vadd.f32 %v4812_v3, %v784_v26  ;;  %v3197_v43 = vpop.f32.mrb[177].mxu0 }
 0x599   : > { %v3198_v41 = vadd.f32 %v3197_v43, %v774_v38  ;;  %v4813_v33 = vpop.f32.mrb[178].mxu0 }
 0x59a   : > { %v3413_v8 = vadd.f32 %v6082_v6, %v3206_v17  ;;  %v3209_v59 = vadd.f32 %v4813_v33, %v788_v24  ;;  %v3200_v49 = vpop.f32.mrb[179].mxu0 }
 0x59b   : > { %v3411_v44 = vadd.f32 %v6082_v6, %v3198_v41  ;;  %v3201_v12 = vadd.f32 %v3200_v49, %v778_v53  ;;  %v814_v41 = vadd.f32 %v5460_v2, %v6069_v63 }
 0x59c   : > { %v3414_v13 = vadd.f32 %v6082_v6, %v3209_v59  ;;  %v3477_v18 = vmax.f32 %v3413_v8, 0.0  ;;  %v828_v8 = vadd.f32 %v5471_v58, %v6069_v63 }
 0x59d   : > { %v3412_v28 = vadd.f32 %v6082_v6, %v3201_v12  ;;  %v3475_v46 = vmax.f32 %v3411_v44, 0.0  ;;  %v818_v44 = vadd.f32 %v5465_v23, %v6069_v63  ;;  %v844_v23 = vadd.f32 %v5480_v20, %v6069_v63 }
 0x59e   : > { %v3478_v0 = vmax.f32 %v3414_v13, 0.0 }
 0x59f   : > { %v3476_v54 = vmax.f32 %v3412_v28, 0.0 }
 0x5a0   : > { %v3532_v15 = vpack.c.bf16 %v3478_v0, %v3477_v18 }
 0x5a1   : > { %v3531_v62 = vpack.c.bf16 %v3476_v54, %v3475_v46 }
 0x5a3   : > { %4882 = vmatprep.mubr.msk.bf16.mxu0 %vm3594_vm2, %v3531_v62 }
 0x5a4   : > { %4883 = vmatmul.mubr.msk.bf16.gmra.mrb[240].mxu0 %vm3594_vm2, %v3532_v15 }
 0x5a7   : > { %v4816_v42 = vpop.f32.mrb[180].mxu0 }
 0x5a8   : > { %v3222_v61 = vadd.f32 %v4816_v42, %v804_v25  ;;  %v3213_v19 = vpop.f32.mrb[181].mxu0 }
 0x5a9   : > { %v3214_v50 = vadd.f32 %v3213_v19, %v794_v22  ;;  %v4817_v21 = vpop.f32.mrb[182].mxu0  ;;  %v848_v19 = vadd.f32 %v5483_v4, %v6069_v63 }
 0x5aa   : > { %v3417_v55 = vadd.f32 %v6082_v6, %v3222_v61  ;;  %v3225_v52 = vadd.f32 %v4817_v21, %v808_v31  ;;  %v3216_v1 = vpop.f32.mrb[183].mxu0  ;;  %v834_v31 = vadd.f32 %v5474_v14, %v6069_v63  ;;  %v838_v21 = vadd.f32 %v5477_v32, %v6069_v63 }
 0x5ab   : > { %v3415_v10 = vadd.f32 %v6082_v6, %v3214_v50  ;;  %v3217_v26 = vadd.f32 %v3216_v1, %v798_v16  ;;  %v864_v32 = vadd.f32 %v5492_v5, %v6069_v63 }
 0x5ac   : > { %v3418_v27 = vadd.f32 %v6082_v6, %v3225_v52  ;;  %v3481_v3 = vmax.f32 %v3417_v55, 0.0 }
 0x5ad   : > { %v3416_v38 = vadd.f32 %v6082_v6, %v3217_v26  ;;  %v3479_v24 = vmax.f32 %v3415_v10, 0.0 }
 0x5ae   : > { %v3482_v35 = vmax.f32 %v3418_v27, 0.0 }
 0x5af   : > { %v3480_v17 = vmax.f32 %v3416_v38, 0.0 }
 0x5b0   : > { %v3534_v43 = vpack.c.bf16 %v3482_v35, %v3481_v3 }
 0x5b1   : > { %v3533_v53 = vpack.c.bf16 %v3480_v17, %v3479_v24 }
 0x5b3   : > { %4886 = vmatprep.mubr.msk.bf16.mxu0 %vm3594_vm2, %v3533_v53  ;;  %v854_v53 = vadd.f32 %v5486_v36, %v6069_v63 }
 0x5b4   : > { %4887 = vmatmul.mubr.msk.bf16.gmra.mrb[244].mxu0 %vm3594_vm2, %v3534_v43 }
 0x5b7   : > { %v4820_v33 = vpop.f32.mrb[184].mxu0 }
 0x5b8   : > { %v3238_v59 = vadd.f32 %v4820_v33, %v824_v39  ;;  %v3229_v49 = vpop.f32.mrb[185].mxu0 }
 0x5b9   : > { %v3230_v12 = vadd.f32 %v3229_v49, %v814_v41  ;;  %v4821_v13 = vpop.f32.mrb[186].mxu0  ;;  %v868_v41 = vadd.f32 %v5495_v47, %v6069_v63 }
 0x5ba   : > { %v3421_v28 = vadd.f32 %v6082_v6, %v3238_v59  ;;  %v3241_v18 = vadd.f32 %v4821_v13, %v828_v8  ;;  %v3232_v0 = vpop.f32.mrb[187].mxu0  ;;  %v858_v59 = vadd.f32 %v5489_v37, %v6069_v63  ;;  %v884_v37 = vadd.f32 %v5507_v7, %v6069_v63 }
 0x5bb   : > { %v3419_v40 = vadd.f32 %v6082_v6, %v3230_v12  ;;  %v3233_v46 = vadd.f32 %v3232_v0, %v818_v44 }
 0x5bc   : > { %v3422_v2 = vadd.f32 %v6082_v6, %v3241_v18  ;;  %v3485_v15 = vmax.f32 %v3421_v28, 0.0 }
 0x5bd   : > { %v3420_v54 = vadd.f32 %v6082_v6, %v3233_v46  ;;  %v3483_v62 = vmax.f32 %v3419_v40, 0.0 }
 0x5be   : > { %v3486_v58 = vmax.f32 %v3422_v2, 0.0 }
 0x5bf   : > { %v3484_v25 = vmax.f32 %v3420_v54, 0.0 }
 0x5c0   : > { %v3536_v22 = vpack.c.bf16 %v3486_v58, %v3485_v15  ;;  %v874_v58 = vadd.f32 %v5501_v57, %v6069_v63 }
 0x5c1   : > { %v3535_v42 = vpack.c.bf16 %v3484_v25, %v3483_v62  ;;  %v6768_v25 = vld [vmem:[#allocation19_spill] sm:$0xff] }
 0x5c3   : > { %4890 = vmatprep.mubr.msk.bf16.mxu0 %vm3594_vm2, %v3535_v42 }
 0x5c4   : > { %4891 = vmatmul.mubr.msk.bf16.gmra.mrb[248].mxu0 %vm3594_vm2, %v3536_v22  ;;  %v888_v22 = vadd.f32 %v6768_v25, %v6069_v63 }
 0x5c7   : > { %v4824_v61 = vpop.f32.mrb[188].mxu0 }
 0x5c8   : > { %v3254_v16 = vadd.f32 %v4824_v61, %v844_v23  ;;  %v3245_v50 = vpop.f32.mrb[189].mxu0 }
 0x5c9   : > { %v3246_v55 = vadd.f32 %v3245_v50, %v834_v31  ;;  %v4825_v52 = vpop.f32.mrb[190].mxu0  ;;  %v6769_v31 = vld [vmem:[#allocation18_spill] sm:$0xff] }
 0x5ca   : > { %v3425_v1 = vadd.f32 %v6082_v6, %v3254_v16  ;;  %v3257_v10 = vadd.f32 %v4825_v52, %v848_v19  ;;  %v3248_v26 = vpop.f32.mrb[191].mxu0  ;;  %v878_v61 = vadd.f32 %v6769_v31, %v6069_v63 }
 0x5cb   : > { %v3423_v20 = vadd.f32 %v6082_v6, %v3246_v55  ;;  %v3249_v27 = vadd.f32 %v3248_v26, %v838_v21 }
 0x5cc   : > { %v3426_v14 = vadd.f32 %v6082_v6, %v3257_v10  ;;  %v3489_v3 = vmax.f32 %v3425_v1, 0.0 }
 0x5cd   : > { %v3424_v38 = vadd.f32 %v6082_v6, %v3249_v27  ;;  %v3487_v35 = vmax.f32 %v3423_v20, 0.0 }
 0x5ce   : > { %v3490_v4 = vmax.f32 %v3426_v14, 0.0 }
 0x5cf   : > { %v3488_v24 = vmax.f32 %v3424_v38, 0.0 }
 0x5d0   : > { %v3538_v17 = vpack.c.bf16 %v3490_v4, %v3489_v3  ;;  %v6770_v3 = vld [vmem:[#allocation22_spill] sm:$0xff] }
 0x5d1   : > { %v3537_v43 = vpack.c.bf16 %v3488_v24, %v3487_v35  ;;  %v904_v4 = vadd.f32 %v6770_v3, %v6069_v63  ;;  %v6771_v35 = vld [vmem:[#allocation20_spill] sm:$0xff] }
 0x5d2   : > { %v894_v24 = vadd.f32 %v6771_v35, %v6069_v63 }
 0x5d3   : > { %4894 = vmatprep.mubr.msk.bf16.mxu0 %vm3594_vm2, %v3537_v43  ;;  %v6772_v43 = vld [vmem:[#allocation23_spill] sm:$0xff] }
 0x5d4   : > { %4895 = vmatmul.mubr.msk.bf16.gmra.mrb[252].mxu0 %vm3594_vm2, %v3538_v17 }
 0x5d7   : > { %v4828_v39 = vpop.f32.mrb[192].mxu0 }
 0x5d8   : > { %v3270_v33 = vadd.f32 %v4828_v39, %v864_v32  ;;  %v3261_v8 = vpop.f32.mrb[193].mxu0  ;;  %v908_v32 = vadd.f32 %v6772_v43, %v6069_v63 }
 0x5d9   : > { %v3262_v49 = vadd.f32 %v3261_v8, %v854_v53  ;;  %v4829_v44 = vpop.f32.mrb[194].mxu0 }
 0x5da   : > { %v3429_v12 = vadd.f32 %v6082_v6, %v3270_v33  ;;  %v3273_v13 = vadd.f32 %v4829_v44, %v868_v41  ;;  %v3264_v28 = vpop.f32.mrb[195].mxu0  ;;  %v6773_v41 = vld [vmem:[#allocation21_spill] sm:$0xff] }
 0x5db   : > { %v3427_v5 = vadd.f32 %v6082_v6, %v3262_v49  ;;  %v3265_v18 = vadd.f32 %v3264_v28, %v858_v59  ;;  %v898_v33 = vadd.f32 %v6773_v41, %v6069_v63 }
 0x5dc   : > { %v3430_v36 = vadd.f32 %v6082_v6, %v3273_v13  ;;  %v3493_v40 = vmax.f32 %v3429_v12, 0.0 }
 0x5dd   : > { %v3428_v0 = vadd.f32 %v6082_v6, %v3265_v18  ;;  %v3491_v46 = vmax.f32 %v3427_v5, 0.0 }
 0x5de   : > { %v3494_v47 = vmax.f32 %v3430_v36, 0.0 }
 0x5df   : > { %v3492_v2 = vmax.f32 %v3428_v0, 0.0 }
 0x5e0   : > { %v3540_v54 = vpack.c.bf16 %v3494_v47, %v3493_v40 }
 0x5e1   : > { %v3539_v15 = vpack.c.bf16 %v3492_v2, %v3491_v46 }
 0x5e3   : > { %4898 = vmatprep.mubr.msk.bf16.mxu0 %vm3594_vm2, %v3539_v15  ;;  %v914_v15 = vadd.f32 %v5528_v48, %v6069_v63 }
 0x5e4   : > { %4899 = vmatmul.mubr.msk.bf16.gmra.mrb[0].mxu0 %vm3594_vm2, %v3540_v54  ;;  %v924_v54 = vadd.f32 %v5534_v9, %v6069_v63 }
 0x5e7   : > { %v4832_v62 = vpop.f32.mrb[196].mxu0 }
 0x5e8   : > { %v3286_v42 = vadd.f32 %v4832_v62, %v884_v37  ;;  %v3277_v23 = vpop.f32.mrb[197].mxu0 }
 0x5e9   : > { %v3278_v19 = vadd.f32 %v3277_v23, %v874_v58  ;;  %v4833_v16 = vpop.f32.mrb[198].mxu0  ;;  %v6774_v58 = vld [vmem:[#allocation25_spill] sm:$0xff] }
 0x5ea   : > { %v3433_v50 = vadd.f32 %v6082_v6, %v3286_v42  ;;  %v3289_v21 = vadd.f32 %v4833_v16, %v888_v22  ;;  %v3280_v55 = vpop.f32.mrb[199].mxu0  ;;  %v928_v62 = vadd.f32 %v6774_v58, %v6069_v63  ;;  %v6775_v42 = vld [vmem:[#allocation24_spill] sm:$0xff]  ;;  %v6782_v58 = vld [vmem:[#allocation9_spill] sm:$0xff] }
 0x5eb   : > { %v3431_v7 = vadd.f32 %v6082_v6, %v3278_v19  ;;  %v3281_v52 = vadd.f32 %v3280_v55, %v878_v61  ;;  %v918_v23 = vadd.f32 %v6775_v42, %v6069_v63  ;;  %v6783_v42 = vld [vmem:[#allocation7_spill] sm:$0xff] }
 0x5ec   : > { %v3434_v57 = vadd.f32 %v6082_v6, %v3289_v21  ;;  %v3497_v10 = vmax.f32 %v3433_v50, 0.0 }
 0x5ed   : > { %v3432_v1 = vadd.f32 %v6082_v6, %v3281_v52  ;;  %v3495_v20 = vmax.f32 %v3431_v7, 0.0 }
 0x5ee   : > { %v3498_v26 = vmax.f32 %v3434_v57, 0.0 }
 0x5ef   : > { %v3496_v27 = vmax.f32 %v3432_v1, 0.0 }
 0x5f0   : > { %v3542_v14 = vpack.c.bf16 %v3498_v26, %v3497_v10 }
 0x5f1   : > { %v3541_v38 = vpack.c.bf16 %v3496_v27, %v3495_v20  ;;  %v6776_v20 = vld [vmem:[#allocation4_spill] sm:$0xff] }
 0x5f2   : > { %v944_v27 = vadd.f32 %v6776_v20, %v6069_v63 }
 0x5f3   : > { %4902 = vmatprep.mubr.msk.bf16.mxu0 %vm3594_vm2, %v3541_v38  ;;  %v6777_v38 = vld [vmem:[#allocation2_spill] sm:$0xff] }
 0x5f4   : > { %4903 = vmatmul.mubr.msk.bf16.gmra.mrb[4].mxu0 %vm3594_vm2, %v3542_v14  ;;  %v934_v3 = vadd.f32 %v6777_v38, %v6069_v63 }
 0x5f7   : > { %v4836_v17 = vpop.f32.mrb[200].mxu0 }
 0x5f8   : > { %v3302_v53 = vadd.f32 %v4836_v17, %v904_v4  ;;  %v3293_v39 = vpop.f32.mrb[201].mxu0 }
 0x5f9   : > { %v3294_v8 = vadd.f32 %v3293_v39, %v894_v24  ;;  %v4837_v59 = vpop.f32.mrb[202].mxu0  ;;  %v6778_v24 = vld [vmem:[#allocation5_spill] sm:$0xff] }
 0x5fa   : > { %v3437_v49 = vadd.f32 %v6082_v6, %v3302_v53  ;;  %v3305_v44 = vadd.f32 %v4837_v59, %v908_v32  ;;  %v3296_v12 = vpop.f32.mrb[203].mxu0  ;;  %v948_v17 = vadd.f32 %v6778_v24, %v6069_v63  ;;  %v6779_v53 = vld [vmem:[#allocation3_spill] sm:$0xff] }
 0x5fb   : > { %v3435_v13 = vadd.f32 %v6082_v6, %v3294_v8  ;;  %v3297_v28 = vadd.f32 %v3296_v12, %v898_v33  ;;  %v938_v39 = vadd.f32 %v6779_v53, %v6069_v63 }
 0x5fc   : > { %v3438_v5 = vadd.f32 %v6082_v6, %v3305_v44  ;;  %v3501_v36 = vmax.f32 %v3437_v49, 0.0 }
 0x5fd   : > { %v3436_v18 = vadd.f32 %v6082_v6, %v3297_v28  ;;  %v3499_v40 = vmax.f32 %v3435_v13, 0.0 }
 0x5fe   : > { %v3502_v0 = vmax.f32 %v3438_v5, 0.0 }
 0x5ff   : > { %v3500_v47 = vmax.f32 %v3436_v18, 0.0 }
 0x600   : > { %v3544_v46 = vpack.c.bf16 %v3502_v0, %v3501_v36 }
 0x601   : > { %v3543_v2 = vpack.c.bf16 %v3500_v47, %v3499_v40  ;;  %v6780_v40 = vld [vmem:[#allocation8_spill] sm:$0xff] }
 0x602   : > { %v964_v47 = vadd.f32 %v6780_v40, %v6069_v63 }
 0x603   : > { %4906 = vmatprep.mubr.msk.bf16.mxu0 %vm3594_vm2, %v3543_v2  ;;  %v6781_v2 = vld [vmem:[#allocation6_spill] sm:$0xff] }
 0x604   : > { %4907 = vmatmul.mubr.msk.bf16.gmra.mrb[8].mxu0 %vm3594_vm2, %v3544_v46 }
 0x607   : > { %v4840_v37 = vpop.f32.mrb[204].mxu0 }
 0x608   : > { %v3318_v25 = vadd.f32 %v4840_v37, %v924_v54  ;;  %v3309_v22 = vpop.f32.mrb[205].mxu0  ;;  %v954_v54 = vadd.f32 %v6781_v2, %v6069_v63 }
 0x609   : > { %v3310_v31 = vadd.f32 %v3309_v22, %v914_v15  ;;  %v4841_v61 = vpop.f32.mrb[206].mxu0 }
 0x60a   : > { %v3441_v19 = vadd.f32 %v6082_v6, %v3318_v25  ;;  %v3321_v16 = vadd.f32 %v4841_v61, %v928_v62  ;;  %v3312_v50 = vpop.f32.mrb[207].mxu0  ;;  %v968_v62 = vadd.f32 %v6782_v58, %v6069_v63 }
 0x60b   : > { %v3439_v9 = vadd.f32 %v6082_v6, %v3310_v31  ;;  %v3313_v21 = vadd.f32 %v3312_v50, %v918_v23  ;;  %v958_v23 = vadd.f32 %v6783_v42, %v6069_v63 }
 0x60c   : > { %v3442_v48 = vadd.f32 %v6082_v6, %v3321_v16  ;;  %v3505_v7 = vmax.f32 %v3441_v19, 0.0 }
 0x60d   : > { %v3440_v55 = vadd.f32 %v6082_v6, %v3313_v21  ;;  %v3503_v57 = vmax.f32 %v3439_v9, 0.0 }
 0x60e   : > { %v3506_v52 = vmax.f32 %v3442_v48, 0.0 }
 0x60f   : > { %v3504_v1 = vmax.f32 %v3440_v55, 0.0 }
 0x610   : > { %v3546_v10 = vpack.c.bf16 %v3506_v52, %v3505_v7 }
 0x611   : > { %v3545_v26 = vpack.c.bf16 %v3504_v1, %v3503_v57 }
 0x613   : > { %4910 = vmatprep.mubr.msk.bf16.mxu0 %vm3594_vm2, %v3545_v26 }
 0x614   : > { %4911 = vmatmul.mubr.msk.bf16.gmra.mrb[12].mxu0 %vm3594_vm2, %v3546_v10  ;;  %v6784_v10 = vld [vmem:[#allocation12_spill] sm:$0xff] }
 0x615   : > { %v984_v26 = vadd.f32 %v6784_v10, %v6069_v63 }
 0x617   : > { %v4844_v14 = vpop.f32.mrb[208].mxu0 }
 0x618   : > { %v3334_v4 = vadd.f32 %v4844_v14, %v944_v27  ;;  %v3325_v35 = vpop.f32.mrb[209].mxu0  ;;  %v6785_v27 = vld [vmem:[#allocation10_spill] sm:$0xff] }
 0x619   : > { %v3326_v43 = vadd.f32 %v3325_v35, %v934_v3  ;;  %v4845_v32 = vpop.f32.mrb[210].mxu0  ;;  %v974_v14 = vadd.f32 %v6785_v27, %v6069_v63 }
 0x61a   : > { %v3445_v41 = vadd.f32 %v6082_v6, %v3334_v4  ;;  %v3337_v33 = vadd.f32 %v4845_v32, %v948_v17  ;;  %v3328_v8 = vpop.f32.mrb[211].mxu0  ;;  %v6786_v4 = vld [vmem:[#allocation13_spill] sm:$0xff] }
 0x61b   : > { %v3443_v59 = vadd.f32 %v6082_v6, %v3326_v43  ;;  %v3329_v49 = vadd.f32 %v3328_v8, %v938_v39  ;;  %v988_v35 = vadd.f32 %v6786_v4, %v6069_v63  ;;  %v6787_v43 = vld [vmem:[#allocation11_spill] sm:$0xff] }
 0x61c   : > { %v3446_v44 = vadd.f32 %v6082_v6, %v3337_v33  ;;  %v3509_v13 = vmax.f32 %v3445_v41, 0.0  ;;  %v978_v32 = vadd.f32 %v6787_v43, %v6069_v63 }
 0x61d   : > { %v3444_v12 = vadd.f32 %v6082_v6, %v3329_v49  ;;  %v3507_v5 = vmax.f32 %v3443_v59, 0.0 }
 0x61e   : > { %v3510_v28 = vmax.f32 %v3446_v44, 0.0 }
 0x61f   : > { %v3508_v18 = vmax.f32 %v3444_v12, 0.0 }
 0x620   : > { %v3548_v36 = vpack.c.bf16 %v3510_v28, %v3509_v13 }
 0x621   : > { %v3547_v0 = vpack.c.bf16 %v3508_v18, %v3507_v5 }
 0x623   : > { %4914 = vmatprep.mubr.msk.bf16.mxu0 %vm3594_vm2, %v3547_v0 }
 0x624   : > { %4915 = vmatmul.mubr.msk.bf16.gmra.mrb[16].mxu0 %vm3594_vm2, %v3548_v36  ;;  %v6788_v36 = vld [vmem:[#allocation16_spill] sm:$0xff] }
 0x625   : > { %v1004_v0 = vadd.f32 %v6788_v36, %v6069_v63 }
 0x627   : > { %v4848_v46 = vpop.f32.mrb[212].mxu0 }
 0x628   : > { %v3350_v15 = vadd.f32 %v4848_v46, %v964_v47  ;;  %v3341_v37 = vpop.f32.mrb[213].mxu0  ;;  %v6789_v47 = vld [vmem:[#allocation14_spill] sm:$0xff] }
 0x629   : > { %v3342_v25 = vadd.f32 %v3341_v37, %v954_v54  ;;  %v4849_v22 = vpop.f32.mrb[214].mxu0  ;;  %v994_v46 = vadd.f32 %v6789_v47, %v6069_v63 }
 0x62a   : > { %v3449_v31 = vadd.f32 %v6082_v6, %v3350_v15  ;;  %v3353_v61 = vadd.f32 %v4849_v22, %v968_v62  ;;  %v3344_v19 = vpop.f32.mrb[215].mxu0  ;;  %v6790_v15 = vld [vmem:[#allocation17_spill] sm:$0xff] }
 0x62b   : > { %v3447_v16 = vadd.f32 %v6082_v6, %v3342_v25  ;;  %v3345_v50 = vadd.f32 %v3344_v19, %v958_v23  ;;  %v1008_v37 = vadd.f32 %v6790_v15, %v6069_v63  ;;  %v6791_v25 = vld [vmem:[#allocation15_spill] sm:$0xff] }
 0x62c   : > { %v3450_v9 = vadd.f32 %v6082_v6, %v3353_v61  ;;  %v3513_v48 = vmax.f32 %v3449_v31, 0.0  ;;  %v998_v22 = vadd.f32 %v6791_v25, %v6069_v63 }
 0x62d   : > { %v3448_v21 = vadd.f32 %v6082_v6, %v3345_v50  ;;  %v3511_v7 = vmax.f32 %v3447_v16, 0.0  ;;  %v5024_v50 = vld [vmem:[%s6675_s6] sm:$0x3] }
 0x62e   : > { %v3514_v55 = vmax.f32 %v3450_v9, 0.0  ;;  %v6792_v9 = vsub.s32 1, %v5294_v56 }
 0x62f   : > { %v3512_v52 = vmax.f32 %v3448_v21, 0.0 }
 0x630   : > { %v3550_v57 = vpack.c.bf16 %v3514_v55, %v3513_v48  ;;  %v6329_v21 = vrot.slane %v5024_v50, %v6792_v9  ;;  %v6335_v48 = vld [vmem:[%s6679_s10] ss:$0 sm:$0xff] }
 0x631   : > { %v3549_v1 = vpack.c.bf16 %v3512_v52, %v3511_v7 }
 0x632   : > { %v2633_v10 = vadd.f32 %v5887_v51, %v6329_v21 }
 0x633   : > { %4918 = vmatprep.mubr.msk.bf16.mxu0 %vm3594_vm2, %v3549_v1 }
 0x634   : > { %4919 = vmatmul.mubr.msk.bf16.gmra.mrb[20].mxu0 %vm3594_vm2, %v3550_v57 }
 0x637   : > { %v4852_v20 = vpop.f32.mrb[216].mxu0 }
 0x638   : > { %v3366_v38 = vadd.f32 %v4852_v20, %v984_v26  ;;  %v3357_v3 = vpop.f32.mrb[217].mxu0 }
 0x639   : > { %v3358_v24 = vadd.f32 %v3357_v3, %v974_v14  ;;  %v4853_v17 = vpop.f32.mrb[218].mxu0 }
 0x63a   : > { %v3453_v53 = vadd.f32 %v6082_v6, %v3366_v38  ;;  %v3369_v39 = vadd.f32 %v4853_v17, %v988_v35  ;;  %v3360_v41 = vpop.f32.mrb[219].mxu0  ;;  %v2637_v38 = vadd.f32 %v5890_v30, %v6329_v21  ;;  %v6793_v35 = vld [vmem:[#allocation26_spill] sm:$0xff] }
 0x63b   : > { %v3451_v33 = vadd.f32 %v6082_v6, %v3358_v24  ;;  %v3361_v8 = vadd.f32 %v3360_v41, %v978_v32  ;;  %v2627_v24 = vadd.f32 %v6793_v35, %v6329_v21 }
 0x63c   : > { %v3454_v59 = vadd.f32 %v6082_v6, %v3369_v39  ;;  %v3517_v44 = vmax.f32 %v3453_v53, 0.0  ;;  %v6794_v39 = vld [vmem:[#allocation29_spill] sm:$0xff] }
 0x63d   : > { %v3452_v49 = vadd.f32 %v6082_v6, %v3361_v8  ;;  %v3515_v13 = vmax.f32 %v3451_v33, 0.0  ;;  %v2653_v41 = vadd.f32 %v6794_v39, %v6329_v21 }
 0x63e   : > { %v3518_v12 = vmax.f32 %v3454_v59, 0.0  ;;  %v6795_v59 = vld [vmem:[#allocation27_spill] sm:$0xff] }
 0x63f   : > { %v3516_v28 = vmax.f32 %v3452_v49, 0.0  ;;  %v2643_v49 = vadd.f32 %v6795_v59, %v6329_v21 }
 0x640   : > { %v3552_v5 = vpack.c.bf16 %v3518_v12, %v3517_v44 }
 0x641   : > { %v3551_v18 = vpack.c.bf16 %v3516_v28, %v3515_v13  ;;  %v6796_v13 = vld [vmem:[#allocation30_spill] sm:$0xff] }
 0x642   : > { %v2657_v28 = vadd.f32 %v6796_v13, %v6329_v21 }
 0x643   : > { %4922 = vmatprep.mubr.msk.bf16.mxu0 %vm3594_vm2, %v3551_v18 }
 0x644   : > { %4923 = vmatmul.mubr.msk.bf16.gmra.mrb[24].mxu0 %vm3594_vm2, %v3552_v5 }
 0x647   : > { %v4856_v40 = vpop.f32.mrb[220].mxu0 }
 0x648   : > { %v3382_v2 = vadd.f32 %v4856_v40, %v1004_v0  ;;  %v3373_v54 = vpop.f32.mrb[221].mxu0  ;;  %v6797_v0 = vld [vmem:[#allocation28_spill] sm:$0xff] }
 0x649   : > { %v3374_v58 = vadd.f32 %v3373_v54, %v994_v46  ;;  %v4857_v62 = vpop.f32.mrb[222].mxu0  ;;  %v2647_v40 = vadd.f32 %v6797_v0, %v6329_v21 }
 0x64a   : > { %v3457_v42 = vadd.f32 %v6082_v6, %v3382_v2  ;;  %v3385_v23 = vadd.f32 %v4857_v62, %v1008_v37  ;;  %v3376_v31 = vpop.f32.mrb[223].mxu0  ;;  %v6798_v37 = vld [vmem:[#allocation33_spill] sm:$0xff] }
 0x64b   : > { %v3455_v61 = vadd.f32 %v6082_v6, %v3374_v58  ;;  %v3377_v19 = vadd.f32 %v3376_v31, %v998_v22  ;;  %v2673_v58 = vadd.f32 %v6798_v37, %v6329_v21  ;;  %v6799_v22 = vld [vmem:[#allocation31_spill] sm:$0xff] }
 0x64c   : > { %v3458_v16 = vadd.f32 %v6082_v6, %v3385_v23  ;;  %v3521_v55 = vmax.f32 %v3457_v42, 0.0  ;;  %v2663_v42 = vadd.f32 %v6799_v22, %v6329_v21 }
 0x64d   : > { %v3456_v63 = vadd.f32 %v6082_v6, %v3377_v19  ;;  %v3519_v52 = vmax.f32 %v3455_v61, 0.0  ;;  %v2623_v6 = vadd.f32 %v5880_v29, %v6329_v21  ;;  %v6800_v61 = vld [vmem:[#allocation34_spill] sm:$0xff] }
 0x64e   : > { %v3522_v7 = vmax.f32 %v3458_v16, 0.0  ;;  %v2677_v19 = vadd.f32 %v6800_v61, %v6329_v21 }
 0x64f   : > { %v3520_v57 = vmax.f32 %v3456_v63, 0.0  ;;  %v4868_v1 = vpop.f32.mrb[224].mxu0  ;;  %v6801_v63 = vld [vmem:[#allocation32_spill] sm:$0xff] }
 0x650   : > { %v3554_v26 = vpack.c.bf16 %v3522_v7, %v3521_v55  ;;  %v3734_v56 = vadd.f32 %v4868_v1, %v6335_v48  ;;  %v3725_v20 = vpop.f32.mrb[225].mxu0  ;;  %v2667_v55 = vadd.f32 %v6801_v63, %v6329_v21 }
 0x651   : > { %v3553_v27 = vpack.c.bf16 %v3520_v57, %v3519_v52  ;;  %v3726_v51 = vadd.f32 %v6335_v48, %v3725_v20  ;;  %v4869_v14 = vpop.f32.mrb[226].mxu0 }
 0x652   : > { %v3982_v3 = vadd.f32 %v3734_v56, %v2633_v10  ;;  %v3737_v29 = vadd.f32 %v4869_v14, %v6335_v48  ;;  %v3728_v4 = vpop.f32.mrb[227].mxu0 }
 0x653   : > { %v3980_v17 = vadd.f32 %v3726_v51, %v2623_v6  ;;  %v3729_v43 = vadd.f32 %v6335_v48, %v3728_v4  ;;  %4926 = vmatprep.mubr.msk.bf16.mxu0 %vm3594_vm2, %v3553_v27  ;;  %v6803_v27 = vld [vmem:[#allocation35_spill] sm:$0xff] }
 0x654   : > { %4047 = vst.msk [vmem:[%s6347_s20 + $0x10] sm:$0xff] %vm4044_vm3, %v3982_v3  ;;  %v3983_v32 = vadd.f32 %v3737_v29, %v2637_v38  ;;  %4927 = vmatmul.mubr.msk.bf16.gmra.mrb[28].mxu0 %vm3594_vm2, %v3554_v26  ;;  %v6802_v26 = vld [vmem:[#allocation37_spill] sm:$0xff]  ;;  %v2683_v51 = vadd.f32 %v6803_v27, %v6329_v21  ;;  %v6804_v3 = vld [vmem:[#allocation38_spill] sm:$0xff] }
 0x655   : > { %4045 = vst.msk [vmem:[%s6347_s20] sm:$0xff] %vm4044_vm3, %v3980_v17  ;;  %v3981_v30 = vadd.f32 %v3729_v43, %v2627_v24  ;;  %v2693_v56 = vadd.f32 %v6802_v26, %v6329_v21  ;;  %v2697_v29 = vadd.f32 %v6804_v3, %v6329_v21  ;;  %v6805_v17 = vld [vmem:[#allocation36_spill] sm:$0xff] }
 0x656   : > { %4048 = vst.msk [vmem:[%s6347_s20 + $0x18] sm:$0xff] %vm4044_vm3, %v3983_v32  ;;  %v2687_v43 = vadd.f32 %v6805_v17, %v6329_v21 }
 0x657   : > { %4046 = vst.msk [vmem:[%s6347_s20 + $0x8] sm:$0xff] %vm4044_vm3, %v3981_v30  ;;  %v4872_v53 = vpop.f32.mrb[228].mxu0 }
 0x658   : > { %v3750_v33 = vadd.f32 %v4872_v53, %v6335_v48  ;;  %v3741_v8 = vpop.f32.mrb[229].mxu0 }
 0x659   : > { %v3742_v44 = vadd.f32 %v6335_v48, %v3741_v8  ;;  %v4873_v12 = vpop.f32.mrb[230].mxu0 }
 0x65a   : > { %v3986_v5 = vadd.f32 %v3750_v33, %v2653_v41  ;;  %v3753_v18 = vadd.f32 %v4873_v12, %v6335_v48  ;;  %v3744_v36 = vpop.f32.mrb[231].mxu0  ;;  %v6806_v33 = vld [vmem:[#allocation41_spill] sm:$0xff] }
 0x65b   : > { %v3984_v47 = vadd.f32 %v3742_v44, %v2643_v49  ;;  %v3745_v46 = vadd.f32 %v6335_v48, %v3744_v36  ;;  %v2713_v8 = vadd.f32 %v6806_v33, %v6329_v21  ;;  %v6807_v44 = vld [vmem:[#allocation39_spill] sm:$0xff] }
 0x65c   : > { %4051 = vst.msk [vmem:[%s6347_s20 + $0x30] sm:$0xff] %vm4044_vm3, %v3986_v5  ;;  %v3987_v2 = vadd.f32 %v3753_v18, %v2657_v28  ;;  %v2703_v12 = vadd.f32 %v6807_v44, %v6329_v21  ;;  %v6808_v5 = vld [vmem:[#allocation42_spill] sm:$0xff] }
 0x65d   : > { %4049 = vst.msk [vmem:[%s6347_s20 + $0x20] sm:$0xff] %vm4044_vm3, %v3984_v47  ;;  %v3985_v54 = vadd.f32 %v3745_v46, %v2647_v40  ;;  %v2717_v18 = vadd.f32 %v6808_v5, %v6329_v21  ;;  %v6809_v47 = vld [vmem:[#allocation40_spill] sm:$0xff] }
 0x65e   : > { %4052 = vst.msk [vmem:[%s6347_s20 + $0x38] sm:$0xff] %vm4044_vm3, %v3987_v2  ;;  %v2707_v46 = vadd.f32 %v6809_v47, %v6329_v21 }
 0x65f   : > { %4050 = vst.msk [vmem:[%s6347_s20 + $0x28] sm:$0xff] %vm4044_vm3, %v3985_v54  ;;  %v4876_v15 = vpop.f32.mrb[232].mxu0 }
 0x660   : > { %v3766_v62 = vadd.f32 %v4876_v15, %v6335_v48  ;;  %v3757_v25 = vpop.f32.mrb[233].mxu0 }
 0x661   : > { %v3758_v23 = vadd.f32 %v6335_v48, %v3757_v25  ;;  %v4877_v31 = vpop.f32.mrb[234].mxu0 }
 0x662   : > { %v3990_v16 = vadd.f32 %v3766_v62, %v2673_v58  ;;  %v3769_v50 = vadd.f32 %v4877_v31, %v6335_v48  ;;  %v3760_v9 = vpop.f32.mrb[235].mxu0  ;;  %v6810_v62 = vld [vmem:[#allocation45_spill] sm:$0xff] }
 0x663   : > { %v3988_v7 = vadd.f32 %v3758_v23, %v2663_v42  ;;  %v3761_v52 = vadd.f32 %v6335_v48, %v3760_v9  ;;  %v2733_v25 = vadd.f32 %v6810_v62, %v6329_v21  ;;  %v6811_v23 = vld [vmem:[#allocation43_spill] sm:$0xff] }
 0x664   : > { %4055 = vst.msk [vmem:[%s6347_s20 + $0x50] sm:$0xff] %vm4044_vm3, %v3990_v16  ;;  %v3991_v57 = vadd.f32 %v3769_v50, %v2677_v19  ;;  %v2723_v31 = vadd.f32 %v6811_v23, %v6329_v21  ;;  %v6812_v16 = vld [vmem:[#allocation46_spill] sm:$0xff] }
 0x665   : > { %4053 = vst.msk [vmem:[%s6347_s20 + $0x40] sm:$0xff] %vm4044_vm3, %v3988_v7  ;;  %v3989_v1 = vadd.f32 %v3761_v52, %v2667_v55  ;;  %v2737_v50 = vadd.f32 %v6812_v16, %v6329_v21  ;;  %v6813_v7 = vld [vmem:[#allocation44_spill] sm:$0xff] }
 0x666   : > { %4056 = vst.msk [vmem:[%s6347_s20 + $0x58] sm:$0xff] %vm4044_vm3, %v3991_v57  ;;  %v2727_v52 = vadd.f32 %v6813_v7, %v6329_v21 }
 0x667   : > { %4054 = vst.msk [vmem:[%s6347_s20 + $0x48] sm:$0xff] %vm4044_vm3, %v3989_v1  ;;  %v4880_v10 = vpop.f32.mrb[236].mxu0 }
 0x668   : > { %v3782_v20 = vadd.f32 %v4880_v10, %v6335_v48  ;;  %v3773_v6 = vpop.f32.mrb[237].mxu0 }
 0x669   : > { %v3774_v14 = vadd.f32 %v6335_v48, %v3773_v6  ;;  %v4881_v38 = vpop.f32.mrb[238].mxu0 }
 0x66a   : > { %v3994_v4 = vadd.f32 %v3782_v20, %v2693_v56  ;;  %v3785_v35 = vadd.f32 %v4881_v38, %v6335_v48  ;;  %v3776_v24 = vpop.f32.mrb[239].mxu0  ;;  %v6814_v20 = vld [vmem:[#allocation49_spill] sm:$0xff] }
 0x66b   : > { %v3992_v32 = vadd.f32 %v3774_v14, %v2683_v51  ;;  %v3777_v30 = vadd.f32 %v6335_v48, %v3776_v24  ;;  %v2753_v6 = vadd.f32 %v6814_v20, %v6329_v21  ;;  %v6815_v14 = vld [vmem:[#allocation47_spill] sm:$0xff] }
 0x66c   : > { %4059 = vst.msk [vmem:[%s6347_s20 + $0x70] sm:$0xff] %vm4044_vm3, %v3994_v4  ;;  %v3995_v53 = vadd.f32 %v3785_v35, %v2697_v29  ;;  %v2743_v38 = vadd.f32 %v6815_v14, %v6329_v21  ;;  %v6816_v4 = vld [vmem:[#allocation50_spill] sm:$0xff] }
 0x66d   : > { %4057 = vst.msk [vmem:[%s6347_s20 + $0x60] sm:$0xff] %vm4044_vm3, %v3992_v32  ;;  %v3993_v39 = vadd.f32 %v3777_v30, %v2687_v43  ;;  %v2757_v35 = vadd.f32 %v6816_v4, %v6329_v21  ;;  %v6817_v32 = vld [vmem:[#allocation48_spill] sm:$0xff] }
 0x66e   : > { %4060 = vst.msk [vmem:[%s6347_s20 + $0x78] sm:$0xff] %vm4044_vm3, %v3995_v53  ;;  %v2747_v30 = vadd.f32 %v6817_v32, %v6329_v21 }
 0x66f   : > { %4058 = vst.msk [vmem:[%s6347_s20 + $0x68] sm:$0xff] %vm4044_vm3, %v3993_v39 }
 0x677   : > { %v4884_v41 = vpop.f32.mrb[240].mxu0 }
 0x678   : > { %v3798_v59 = vadd.f32 %v4884_v41, %v6335_v48  ;;  %v3789_v49 = vpop.f32.mrb[241].mxu0 }
 0x679   : > { %v3790_v13 = vadd.f32 %v6335_v48, %v3789_v49  ;;  %v4885_v28 = vpop.f32.mrb[242].mxu0 }
 0x67a   : > { %v3998_v36 = vadd.f32 %v3798_v59, %v2713_v8  ;;  %v3801_v0 = vadd.f32 %v4885_v28, %v6335_v48  ;;  %v3792_v40 = vpop.f32.mrb[243].mxu0  ;;  %v6818_v59 = vld [vmem:[#allocation53_spill] sm:$0xff] }
 0x67b   : > { %v3996_v2 = vadd.f32 %v3790_v13, %v2703_v12  ;;  %v3793_v54 = vadd.f32 %v6335_v48, %v3792_v40  ;;  %v2773_v49 = vadd.f32 %v6818_v59, %v6329_v21  ;;  %v6819_v13 = vld [vmem:[#allocation51_spill] sm:$0xff] }
 0x67c   : > { %4063 = vst.msk [vmem:[%s6347_s20 + $0x90] sm:$0xff] %vm4044_vm3, %v3998_v36  ;;  %v3999_v15 = vadd.f32 %v3801_v0, %v2717_v18  ;;  %v2763_v28 = vadd.f32 %v6819_v13, %v6329_v21  ;;  %v6820_v36 = vld [vmem:[#allocation54_spill] sm:$0xff] }
 0x67d   : > { %4061 = vst.msk [vmem:[%s6347_s20 + $0x80] sm:$0xff] %vm4044_vm3, %v3996_v2  ;;  %v3997_v37 = vadd.f32 %v3793_v54, %v2707_v46  ;;  %v2777_v0 = vadd.f32 %v6820_v36, %v6329_v21  ;;  %v6821_v2 = vld [vmem:[#allocation52_spill] sm:$0xff] }
 0x67e   : > { %4064 = vst.msk [vmem:[%s6347_s20 + $0x98] sm:$0xff] %vm4044_vm3, %v3999_v15  ;;  %v2767_v54 = vadd.f32 %v6821_v2, %v6329_v21 }
 0x67f   : > { %4062 = vst.msk [vmem:[%s6347_s20 + $0x88] sm:$0xff] %vm4044_vm3, %v3997_v37 }
 0x687   : > { %v4888_v58 = vpop.f32.mrb[244].mxu0 }
 0x688   : > { %v3814_v22 = vadd.f32 %v4888_v58, %v6335_v48  ;;  %v3805_v42 = vpop.f32.mrb[245].mxu0 }
 0x689   : > { %v3806_v61 = vadd.f32 %v6335_v48, %v3805_v42  ;;  %v4889_v19 = vpop.f32.mrb[246].mxu0 }
 0x68a   : > { %v4002_v9 = vadd.f32 %v3814_v22, %v2733_v25  ;;  %v3817_v63 = vadd.f32 %v4889_v19, %v6335_v48  ;;  %v3808_v55 = vpop.f32.mrb[247].mxu0  ;;  %v6822_v22 = vld [vmem:[#allocation57_spill] sm:$0xff] }
 0x68b   : > { %v4000_v57 = vadd.f32 %v3806_v61, %v2723_v31  ;;  %v3809_v1 = vadd.f32 %v6335_v48, %v3808_v55  ;;  %v2793_v42 = vadd.f32 %v6822_v22, %v6329_v21  ;;  %v6823_v61 = vld [vmem:[#allocation55_spill] sm:$0xff] }
 0x68c   : > { %4067 = vst.msk [vmem:[%s6347_s20 + $0xb0] sm:$0xff] %vm4044_vm3, %v4002_v9  ;;  %v4003_v10 = vadd.f32 %v3817_v63, %v2737_v50  ;;  %v2783_v19 = vadd.f32 %v6823_v61, %v6329_v21  ;;  %v6824_v9 = vld [vmem:[#allocation58_spill] sm:$0xff] }
 0x68d   : > { %4065 = vst.msk [vmem:[%s6347_s20 + $0xa0] sm:$0xff] %vm4044_vm3, %v4000_v57  ;;  %v4001_v26 = vadd.f32 %v3809_v1, %v2727_v52  ;;  %v2797_v63 = vadd.f32 %v6824_v9, %v6329_v21  ;;  %v6825_v57 = vld [vmem:[#allocation56_spill] sm:$0xff] }
 0x68e   : > { %4068 = vst.msk [vmem:[%s6347_s20 + $0xb8] sm:$0xff] %vm4044_vm3, %v4003_v10  ;;  %v2787_v1 = vadd.f32 %v6825_v57, %v6329_v21 }
 0x68f   : > { %4066 = vst.msk [vmem:[%s6347_s20 + $0xa8] sm:$0xff] %vm4044_vm3, %v4001_v26 }
 0x697   : > { %v4892_v56 = vpop.f32.mrb[248].mxu0 }
 0x698   : > { %v3830_v27 = vadd.f32 %v4892_v56, %v6335_v48  ;;  %v3821_v51 = vpop.f32.mrb[249].mxu0 }
 0x699   : > { %v3822_v3 = vadd.f32 %v6335_v48, %v3821_v51  ;;  %v4893_v29 = vpop.f32.mrb[250].mxu0 }
 0x69a   : > { %v4006_v24 = vadd.f32 %v3830_v27, %v2753_v6  ;;  %v3833_v17 = vadd.f32 %v4893_v29, %v6335_v48  ;;  %v3824_v43 = vpop.f32.mrb[251].mxu0  ;;  %v6826_v27 = vld [vmem:[#allocation61_spill] sm:$0xff] }
 0x69b   : > { %v4004_v53 = vadd.f32 %v3822_v3, %v2743_v38  ;;  %v3825_v39 = vadd.f32 %v6335_v48, %v3824_v43  ;;  %v2813_v51 = vadd.f32 %v6826_v27, %v6329_v21  ;;  %v6827_v3 = vld [vmem:[#allocation59_spill] sm:$0xff] }
 0x69c   : > { %4071 = vst.msk [vmem:[%s6347_s20 + $0xd0] sm:$0xff] %vm4044_vm3, %v4006_v24  ;;  %v4007_v41 = vadd.f32 %v3833_v17, %v2757_v35  ;;  %v2803_v29 = vadd.f32 %v6827_v3, %v6329_v21  ;;  %v6828_v24 = vld [vmem:[#allocation62_spill] sm:$0xff] }
 0x69d   : > { %4069 = vst.msk [vmem:[%s6347_s20 + $0xc0] sm:$0xff] %vm4044_vm3, %v4004_v53  ;;  %v4005_v33 = vadd.f32 %v3825_v39, %v2747_v30  ;;  %v2817_v17 = vadd.f32 %v6828_v24, %v6329_v21  ;;  %v6829_v53 = vld [vmem:[#allocation60_spill] sm:$0xff] }
 0x69e   : > { %4072 = vst.msk [vmem:[%s6347_s20 + $0xd8] sm:$0xff] %vm4044_vm3, %v4007_v41  ;;  %v2807_v39 = vadd.f32 %v6829_v53, %v6329_v21 }
 0x69f   : > { %4070 = vst.msk [vmem:[%s6347_s20 + $0xc8] sm:$0xff] %vm4044_vm3, %v4005_v33 }
 0x6a7   : > { %v4896_v8 = vpop.f32.mrb[252].mxu0 }
 0x6a8   : > { %v3846_v44 = vadd.f32 %v4896_v8, %v6335_v48  ;;  %v3837_v12 = vpop.f32.mrb[253].mxu0 }
 0x6a9   : > { %v3838_v5 = vadd.f32 %v6335_v48, %v3837_v12  ;;  %v4897_v18 = vpop.f32.mrb[254].mxu0 }
 0x6aa   : > { %v4010_v40 = vadd.f32 %v3846_v44, %v2773_v49  ;;  %v3849_v47 = vadd.f32 %v4897_v18, %v6335_v48  ;;  %v3840_v46 = vpop.f32.mrb[255].mxu0  ;;  %v6830_v44 = vld [vmem:[#allocation65_spill] sm:$0xff] }
 0x6ab   : > { %v4008_v15 = vadd.f32 %v3838_v5, %v2763_v28  ;;  %v3841_v37 = vadd.f32 %v6335_v48, %v3840_v46  ;;  %v2833_v12 = vadd.f32 %v6830_v44, %v6329_v21  ;;  %v6831_v5 = vld [vmem:[#allocation63_spill] sm:$0xff] }
 0x6ac   : > { %4075 = vst.msk [vmem:[%s6347_s20 + $0xf0] sm:$0xff] %vm4044_vm3, %v4010_v40  ;;  %v4011_v58 = vadd.f32 %v3849_v47, %v2777_v0  ;;  %v2823_v18 = vadd.f32 %v6831_v5, %v6329_v21  ;;  %v6832_v40 = vld [vmem:[#allocation66_spill] sm:$0xff] }
 0x6ad   : > { %4073 = vst.msk [vmem:[%s6347_s20 + $0xe0] sm:$0xff] %vm4044_vm3, %v4008_v15  ;;  %v4009_v62 = vadd.f32 %v3841_v37, %v2767_v54  ;;  %v2837_v47 = vadd.f32 %v6832_v40, %v6329_v21  ;;  %v6833_v15 = vld [vmem:[#allocation64_spill] sm:$0xff] }
 0x6ae   : > { %4076 = vst.msk [vmem:[%s6347_s20 + $0xf8] sm:$0xff] %vm4044_vm3, %v4011_v58  ;;  %v2827_v37 = vadd.f32 %v6833_v15, %v6329_v21 }
 0x6af   : > { %4074 = vst.msk [vmem:[%s6347_s20 + $0xe8] sm:$0xff] %vm4044_vm3, %v4009_v62 }
 0x6b7   : > { %v4900_v25 = vpop.f32.mrb[0].mxu0 }
 0x6b8   : > { %v3862_v23 = vadd.f32 %v4900_v25, %v6335_v48  ;;  %v3853_v31 = vpop.f32.mrb[1].mxu0 }
 0x6b9   : > { %v3854_v16 = vadd.f32 %v6335_v48, %v3853_v31  ;;  %v4901_v50 = vpop.f32.mrb[2].mxu0 }
 0x6ba   : > { %v4014_v55 = vadd.f32 %v3862_v23, %v2793_v42  ;;  %v3865_v7 = vadd.f32 %v4901_v50, %v6335_v48  ;;  %v3856_v52 = vpop.f32.mrb[3].mxu0  ;;  %v6834_v23 = vld [vmem:[#allocation69_spill] sm:$0xff] }
 0x6bb   : > { %v4012_v10 = vadd.f32 %v3854_v16, %v2783_v19  ;;  %v3857_v26 = vadd.f32 %v6335_v48, %v3856_v52  ;;  %v2853_v31 = vadd.f32 %v6834_v23, %v6329_v21  ;;  %v6835_v16 = vld [vmem:[#allocation67_spill] sm:$0xff] }
 0x6bc   : > { %4079 = vst.msk [vmem:[%s6347_s20 + $0x110] sm:$0xff] %vm4044_vm3, %v4014_v55  ;;  %v4015_v56 = vadd.f32 %v3865_v7, %v2797_v63  ;;  %v2843_v50 = vadd.f32 %v6835_v16, %v6329_v21  ;;  %v6836_v55 = vld [vmem:[#allocation70_spill] sm:$0xff] }
 0x6bd   : > { %4077 = vst.msk [vmem:[%s6347_s20 + $0x100] sm:$0xff] %vm4044_vm3, %v4012_v10  ;;  %v4013_v20 = vadd.f32 %v3857_v26, %v2787_v1  ;;  %v2857_v7 = vadd.f32 %v6836_v55, %v6329_v21  ;;  %v6837_v10 = vld [vmem:[#allocation68_spill] sm:$0xff] }
 0x6be   : > { %4080 = vst.msk [vmem:[%s6347_s20 + $0x118] sm:$0xff] %vm4044_vm3, %v4015_v56  ;;  %v2847_v26 = vadd.f32 %v6837_v10, %v6329_v21 }
 0x6bf   : > { %4078 = vst.msk [vmem:[%s6347_s20 + $0x108] sm:$0xff] %vm4044_vm3, %v4013_v20 }
 0x6c7   : > { %v4904_v6 = vpop.f32.mrb[4].mxu0 }
 0x6c8   : > { %v3878_v14 = vadd.f32 %v4904_v6, %v6335_v48  ;;  %v3869_v38 = vpop.f32.mrb[5].mxu0 }
 0x6c9   : > { %v3870_v4 = vadd.f32 %v6335_v48, %v3869_v38  ;;  %v4905_v35 = vpop.f32.mrb[6].mxu0 }
 0x6ca   : > { %v4018_v43 = vadd.f32 %v3878_v14, %v2813_v51  ;;  %v3881_v32 = vadd.f32 %v4905_v35, %v6335_v48  ;;  %v3872_v30 = vpop.f32.mrb[7].mxu0  ;;  %v6838_v14 = vld [vmem:[#allocation73_spill] sm:$0xff] }
 0x6cb   : > { %v4016_v41 = vadd.f32 %v3870_v4, %v2803_v29  ;;  %v3873_v33 = vadd.f32 %v6335_v48, %v3872_v30  ;;  %v2873_v38 = vadd.f32 %v6838_v14, %v6329_v21  ;;  %v6839_v4 = vld [vmem:[#allocation71_spill] sm:$0xff]  ;;  %v2933_v14 = vadd.f32 %v6120_v11, %v6329_v21  ;;  %v6849_v11 = vld [vmem:[#allocation82_spill] sm:$0xff] }
 0x6cc   : > { %4083 = vst.msk [vmem:[%s6347_s20 + $0x130] sm:$0xff] %vm4044_vm3, %v4018_v43  ;;  %v4019_v8 = vadd.f32 %v3881_v32, %v2817_v17  ;;  %v2863_v35 = vadd.f32 %v6839_v4, %v6329_v21  ;;  %v6840_v43 = vld [vmem:[#allocation74_spill] sm:$0xff] }
 0x6cd   : > { %4081 = vst.msk [vmem:[%s6347_s20 + $0x120] sm:$0xff] %vm4044_vm3, %v4016_v41  ;;  %v4017_v59 = vadd.f32 %v3873_v33, %v2807_v39  ;;  %v2877_v32 = vadd.f32 %v6840_v43, %v6329_v21  ;;  %v6841_v41 = vld [vmem:[#allocation72_spill] sm:$0xff] }
 0x6ce   : > { %4084 = vst.msk [vmem:[%s6347_s20 + $0x138] sm:$0xff] %vm4044_vm3, %v4019_v8  ;;  %v2867_v33 = vadd.f32 %v6841_v41, %v6329_v21 }
 0x6cf   : > { %4082 = vst.msk [vmem:[%s6347_s20 + $0x128] sm:$0xff] %vm4044_vm3, %v4017_v59 }
 0x6d7   : > { %v4908_v49 = vpop.f32.mrb[8].mxu0 }
 0x6d8   : > { %v3894_v13 = vadd.f32 %v4908_v49, %v6335_v48  ;;  %v3885_v28 = vpop.f32.mrb[9].mxu0 }
 0x6d9   : > { %v3886_v36 = vadd.f32 %v6335_v48, %v3885_v28  ;;  %v4909_v0 = vpop.f32.mrb[10].mxu0 }
 0x6da   : > { %v4022_v46 = vadd.f32 %v3894_v13, %v2833_v12  ;;  %v3897_v2 = vadd.f32 %v4909_v0, %v6335_v48  ;;  %v3888_v54 = vpop.f32.mrb[11].mxu0  ;;  %v6842_v13 = vld [vmem:[#allocation77_spill] sm:$0xff] }
 0x6db   : > { %v4020_v58 = vadd.f32 %v3886_v36, %v2823_v18  ;;  %v3889_v62 = vadd.f32 %v6335_v48, %v3888_v54  ;;  %v2893_v28 = vadd.f32 %v6842_v13, %v6329_v21  ;;  %v6843_v36 = vld [vmem:[#allocation75_spill] sm:$0xff] }
 0x6dc   : > { %4087 = vst.msk [vmem:[%s6347_s20 + $0x150] sm:$0xff] %vm4044_vm3, %v4022_v46  ;;  %v4023_v25 = vadd.f32 %v3897_v2, %v2837_v47  ;;  %v2883_v0 = vadd.f32 %v6843_v36, %v6329_v21  ;;  %v6844_v46 = vld [vmem:[#allocation78_spill] sm:$0xff] }
 0x6dd   : > { %4085 = vst.msk [vmem:[%s6347_s20 + $0x140] sm:$0xff] %vm4044_vm3, %v4020_v58  ;;  %v4021_v22 = vadd.f32 %v3889_v62, %v2827_v37  ;;  %v2897_v2 = vadd.f32 %v6844_v46, %v6329_v21  ;;  %v6845_v58 = vld [vmem:[#allocation76_spill] sm:$0xff] }
 0x6de   : > { %4088 = vst.msk [vmem:[%s6347_s20 + $0x158] sm:$0xff] %vm4044_vm3, %v4023_v25  ;;  %v2887_v62 = vadd.f32 %v6845_v58, %v6329_v21 }
 0x6df   : > { %4086 = vst.msk [vmem:[%s6347_s20 + $0x148] sm:$0xff] %vm4044_vm3, %v4021_v22 }
 0x6e7   : > { %v4912_v42 = vpop.f32.mrb[12].mxu0 }
 0x6e8   : > { %v3910_v61 = vadd.f32 %v4912_v42, %v6335_v48  ;;  %v3901_v19 = vpop.f32.mrb[13].mxu0 }
 0x6e9   : > { %v3902_v9 = vadd.f32 %v6335_v48, %v3901_v19  ;;  %v4913_v63 = vpop.f32.mrb[14].mxu0 }
 0x6ea   : > { %v4026_v52 = vadd.f32 %v3910_v61, %v2853_v31  ;;  %v3913_v57 = vadd.f32 %v4913_v63, %v6335_v48  ;;  %v3904_v1 = vpop.f32.mrb[15].mxu0  ;;  %v6846_v61 = vld [vmem:[#allocation81_spill] sm:$0xff] }
 0x6eb   : > { %v4024_v56 = vadd.f32 %v3902_v9, %v2843_v50  ;;  %v3905_v20 = vadd.f32 %v6335_v48, %v3904_v1  ;;  %v2913_v19 = vadd.f32 %v6846_v61, %v6329_v21  ;;  %v6847_v9 = vld [vmem:[#allocation79_spill] sm:$0xff] }
 0x6ec   : > { %4091 = vst.msk [vmem:[%s6347_s20 + $0x170] sm:$0xff] %vm4044_vm3, %v4026_v52  ;;  %v4027_v6 = vadd.f32 %v3913_v57, %v2857_v7  ;;  %v2903_v63 = vadd.f32 %v6847_v9, %v6329_v21  ;;  %v2917_v52 = vadd.f32 %v6098_v60, %v6329_v21 }
 0x6ed   : > { %4089 = vst.msk [vmem:[%s6347_s20 + $0x160] sm:$0xff] %vm4044_vm3, %v4024_v56  ;;  %v4025_v27 = vadd.f32 %v3905_v20, %v2847_v26  ;;  %v6848_v26 = vld [vmem:[#allocation80_spill] sm:$0xff] }
 0x6ee   : > { %4092 = vst.msk [vmem:[%s6347_s20 + $0x178] sm:$0xff] %vm4044_vm3, %v4027_v6  ;;  %v2907_v56 = vadd.f32 %v6848_v26, %v6329_v21 }
 0x6ef   : > { %4090 = vst.msk [vmem:[%s6347_s20 + $0x168] sm:$0xff] %vm4044_vm3, %v4025_v27 }
 0x6f7   : > { %v4916_v51 = vpop.f32.mrb[16].mxu0 }
 0x6f8   : > { %v3926_v3 = vadd.f32 %v4916_v51, %v6335_v48  ;;  %v3917_v29 = vpop.f32.mrb[17].mxu0 }
 0x6f9   : > { %v3918_v24 = vadd.f32 %v6335_v48, %v3917_v29  ;;  %v4917_v17 = vpop.f32.mrb[18].mxu0  ;;  %v2923_v29 = vadd.f32 %v6103_v34, %v6329_v21 }
 0x6fa   : > { %v4030_v30 = vadd.f32 %v3926_v3, %v2873_v38  ;;  %v3929_v53 = vadd.f32 %v4917_v17, %v6335_v48  ;;  %v3920_v39 = vpop.f32.mrb[19].mxu0 }
 0x6fb   : > { %v4028_v8 = vadd.f32 %v3918_v24, %v2863_v35  ;;  %v3921_v59 = vadd.f32 %v6335_v48, %v3920_v39  ;;  %v2937_v24 = vadd.f32 %v6124_v45, %v6329_v21 }
 0x6fc   : > { %4095 = vst.msk [vmem:[%s6347_s20 + $0x190] sm:$0xff] %vm4044_vm3, %v4030_v30  ;;  %v4031_v49 = vadd.f32 %v3929_v53, %v2877_v32  ;;  %v2927_v30 = vadd.f32 %v6849_v11, %v6329_v21 }
 0x6fd   : > { %4093 = vst.msk [vmem:[%s6347_s20 + $0x180] sm:$0xff] %vm4044_vm3, %v4028_v8  ;;  %v4029_v44 = vadd.f32 %v3921_v59, %v2867_v33 }
 0x6fe   : > { %4096 = vst.msk [vmem:[%s6347_s20 + $0x198] sm:$0xff] %vm4044_vm3, %v4031_v49 }
 0x6ff   : > { %4094 = vst.msk [vmem:[%s6347_s20 + $0x188] sm:$0xff] %vm4044_vm3, %v4029_v44 }
 0x707   : > { %v4920_v12 = vpop.f32.mrb[20].mxu0 }
 0x708   : > { %v3942_v5 = vadd.f32 %v4920_v12, %v6335_v48  ;;  %v3933_v18 = vpop.f32.mrb[21].mxu0 }
 0x709   : > { %v3934_v40 = vadd.f32 %v6335_v48, %v3933_v18  ;;  %v4921_v47 = vpop.f32.mrb[22].mxu0 }
 0x70a   : > { %v4034_v54 = vadd.f32 %v3942_v5, %v2893_v28  ;;  %v3945_v15 = vadd.f32 %v4921_v47, %v6335_v48  ;;  %v3936_v37 = vpop.f32.mrb[23].mxu0 }
 0x70b   : > { %v4032_v25 = vadd.f32 %v3934_v40, %v2883_v0  ;;  %v3937_v22 = vadd.f32 %v6335_v48, %v3936_v37 }
 0x70c   : > { %4099 = vst.msk [vmem:[%s6347_s20 + $0x1b0] sm:$0xff] %vm4044_vm3, %v4034_v54  ;;  %v4035_v42 = vadd.f32 %v3945_v15, %v2897_v2 }
 0x70d   : > { %4097 = vst.msk [vmem:[%s6347_s20 + $0x1a0] sm:$0xff] %vm4044_vm3, %v4032_v25  ;;  %v4033_v23 = vadd.f32 %v3937_v22, %v2887_v62 }
 0x70e   : > { %4100 = vst.msk [vmem:[%s6347_s20 + $0x1b8] sm:$0xff] %vm4044_vm3, %v4035_v42 }
 0x70f   : > { %4098 = vst.msk [vmem:[%s6347_s20 + $0x1a8] sm:$0xff] %vm4044_vm3, %v4033_v23 }
 0x717   : > { %v4924_v31 = vpop.f32.mrb[24].mxu0 }
 0x718   : > { %v3958_v16 = vadd.f32 %v4924_v31, %v6335_v48  ;;  %v3949_v50 = vpop.f32.mrb[25].mxu0 }
 0x719   : > { %v3950_v55 = vadd.f32 %v6335_v48, %v3949_v50  ;;  %v4925_v7 = vpop.f32.mrb[26].mxu0 }
 0x71a   : > { %v4038_v57 = vadd.f32 %v3958_v16, %v2913_v19  ;;  %v3961_v1 = vadd.f32 %v4925_v7, %v6335_v48  ;;  %v3952_v10 = vpop.f32.mrb[27].mxu0 }
 0x71b   : > { %v4036_v20 = vadd.f32 %v3950_v55, %v2903_v63  ;;  %v3953_v6 = vadd.f32 %v6335_v48, %v3952_v10 }
 0x71c   : > { %4103 = vst.msk [vmem:[%s6347_s20 + $0x1d0] sm:$0xff] %vm4044_vm3, %v4038_v57  ;;  %v4039_v27 = vadd.f32 %v3961_v1, %v2917_v52 }
 0x71d   : > { %4101 = vst.msk [vmem:[%s6347_s20 + $0x1c0] sm:$0xff] %vm4044_vm3, %v4036_v20  ;;  %v4037_v51 = vadd.f32 %v3953_v6, %v2907_v56 }
 0x71e   : > { %4104 = vst.msk [vmem:[%s6347_s20 + $0x1d8] sm:$0xff] %vm4044_vm3, %v4039_v27 }
 0x71f   : > { %4102 = vst.msk [vmem:[%s6347_s20 + $0x1c8] sm:$0xff] %vm4044_vm3, %v4037_v51 }
 0x727   : > { %v4928_v60 = vpop.f32.mrb[28].mxu0 }
 0x728   : > { %v3974_v38 = vadd.f32 %v4928_v60, %v6335_v48  ;;  %v3965_v3 = vpop.f32.mrb[29].mxu0 }
 0x729   : > { %v3966_v4 = vadd.f32 %v6335_v48, %v3965_v3  ;;  %v4929_v35 = vpop.f32.mrb[30].mxu0 }
 0x72a   : > { %v4042_v17 = vadd.f32 %v3974_v38, %v2933_v14  ;;  %v3977_v43 = vadd.f32 %v4929_v35, %v6335_v48  ;;  %v3968_v32 = vpop.f32.mrb[31].mxu0 }
 0x72b   : > { %v4040_v53 = vadd.f32 %v3966_v4, %v2923_v29  ;;  %v3969_v39 = vadd.f32 %v6335_v48, %v3968_v32 }
 0x72c   : > { %4107 = vst.msk [vmem:[%s6347_s20 + $0x1f0] sm:$0xff] %vm4044_vm3, %v4042_v17  ;;  %v4043_v41 = vadd.f32 %v3977_v43, %v2937_v24 }
 0x72d   : > { %4105 = vst.msk [vmem:[%s6347_s20 + $0x1e0] sm:$0xff] %vm4044_vm3, %v4040_v53  ;;  %v4041_v34 = vadd.f32 %v3969_v39, %v2927_v30 }
 0x72e   : > { %4108 = vst.msk [vmem:[%s6347_s20 + $0x1f8] sm:$0xff] %vm4044_vm3, %v4043_v41 }
 0x72f   : > { %4106 = vst.msk [vmem:[%s6347_s20 + $0x1e8] sm:$0xff] %vm4044_vm3, %v4041_v34 }
 0x730 PF: > { %s21_s17 = sadd.s32 1, %s5031_s17  }
 0x731   : > { %p18_p4 = scmp.ge.s32.totalorder %s21_s17, 6  }
 0x733   :  { %20 = sbr.rel (!%p18_p4) target bundleno = 1 (0x1), region = 98 }

</bundles_post_ra>
